<compile_context>
chip_gen: v7x
topology: tpu7x:2x2x1
jax: 0.10.0
libtpu: 0.0.40
codegen_flags: <defaults>
</compile_context>

<pallas_src>
from functools import partial

import jax
import jax.numpy as jnp
from jax.experimental import pallas as pl
from jax.experimental.pallas import tpu as pltpu


# ----------------------------- in-kernel helpers -----------------------------

_SQRT2_INV = 0.7071067811865476


def _erf_approx(z):
    # Abramowitz & Stegun 7.1.26 erf (|err| < 1.5e-7 vs exact erf used by torch.nn.GELU()).
    # The inner divide runs on the EUP via pl.reciprocal(approx=True); this adds only a
    # ~1e-4-level absolute error to erf, acceptable for inference.
    a1, a2, a3, a4, a5 = 0.254829592, -0.284496736, 1.421413741, -1.453152027, 1.061405429
    pc = 0.3275911
    sgn = jnp.where(z >= 0.0, 1.0, -1.0)
    za = jnp.abs(z)
    t = pl.reciprocal(1.0 + pc * za, approx=True)
    poly = ((((a5 * t + a4) * t + a3) * t + a2) * t + a1) * t
    return sgn * (1.0 - poly * jnp.exp(-za * za))


def _gelu_exact(x):
    return 0.5 * x * (1.0 + _erf_approx(x * _SQRT2_INV))


def _layer_norm(x, g, b):
    mu = jnp.mean(x, axis=-1, keepdims=True)
    xc = x - mu
    var = jnp.mean(xc * xc, axis=-1, keepdims=True)
    return xc * jax.lax.rsqrt(var + 1e-5) * g + b


# ------------------------------ fused block kernel ----------------------------

def _block_kernel(x_ref, ln1g_ref, ln1b_ref, dw_ref, bnb_ref,
                  wqkv_ref, wp_ref, bp_ref, ln2g_ref, ln2b_ref,
                  w1_ref, b1_ref, w2_ref, b2_ref,
                  o_ref, pad_ref, qkv_ref, *, h, w, num_heads):
    # Token order inside the kernel is PERMUTED: [spatial_0 .. spatial_{hw-1}, cls].
    HW = h * w
    T = HW + 1
    C = x_ref.shape[-1]
    top = ((w + 1 + 7) // 8) * 8          # zero rows above/below the flat spatial slab

    x = x_ref[0]                          # (T, C) residual source

    # ---- LayerNorm1 ----
    xn1 = _layer_norm(x, ln1g_ref[0], ln1b_ref[0])

    # ---- shared zero-padded flat spatial buffer (row padding only, aligned stores) ----
    # Only the pad rows are zeroed (the middle HW rows are fully overwritten every step).
    zpad = jnp.zeros((top, C), jnp.float32)
    pad_ref[0:top, :] = zpad
    pad_ref[top + HW:top + HW + top, :] = zpad
    pad_ref[top:top + HW, :] = xn1[0:HW, :]
    padded = pad_ref[...]                 # (HW + 2*top, C)

    # column-validity masks for left / right neighbour taps on the flat token axis
    col = jax.lax.broadcasted_iota(jnp.int32, (HW, C), 0) % w
    lmask = col != 0
    rmask = col != (w - 1)

    # ---- depthwise 3x3 conv for q/k/v in one pass (windows shared across the three).
    #      BatchNorm scale is pre-folded into the taps in the wrapper. ----
    dw_all = dw_ref[...]                  # (27, C): rows 0-8 q taps, 9-17 k, 18-26 v
    accs = [jnp.zeros((HW, C), jnp.float32) for _ in range(3)]
    for dr in (-1, 0, 1):
        for dc in (-1, 0, 1):
            off = top + dr * w + dc
            win = padded[off:off + HW, :]
            if dc == -1:
                win = jnp.where(lmask, win, 0.0)
            elif dc == 1:
                win = jnp.where(rmask, win, 0.0)
            tap = (dr + 1) * 3 + (dc + 1)
            for i in range(3):
                accs[i] = accs[i] + win * dw_all[9 * i + tap][None, :]

    # ---- fused q|k|v operand: (T, 3C) assembled with one aligned spatial store + cls row ----
    bnb = bnb_ref[...]                    # (3, C) folded BN bias
    spat3 = jnp.concatenate([accs[0] + bnb[0][None, :],
                             accs[1] + bnb[1][None, :],
                             accs[2] + bnb[2][None, :]], axis=-1)       # (HW, 3C)
    cls = xn1[HW:HW + 1, :]               # cls row bypasses conv+BN, shared by q/k/v
    qkv_ref[0:HW, :] = spat3
    qkv_ref[HW:HW + 1, :] = jnp.concatenate([cls, cls, cls], axis=-1)

    # single K=3C matmul against the block-diagonal weight (scale folded into the q block)
    xqkv = jnp.dot(qkv_ref[...], wqkv_ref[...], preferred_element_type=jnp.float32)
    xq = xqkv[:, 0:C]
    xk = xqkv[:, C:2 * C]
    xv = xqkv[:, 2 * C:3 * C]
    xk_t = xk.T                           # single hoisted (T, C) -> (C, T) transpose

    # ---- per-head attention with lane masks (no per-head slices / transposes / concat) ----
    d = C // num_heads
    lane = jax.lax.broadcasted_iota(jnp.int32, (1, C), 1)
    ctx = jnp.zeros((T, C), jnp.float32)
    for hh in range(num_heads):
        hm = (lane >= hh * d) & (lane < (hh + 1) * d)                   # (1, C) head mask
        s = jnp.dot(jnp.where(hm, xq, 0.0), xk_t,
                    preferred_element_type=jnp.float32)                 # (T, T) = q_h k_h^T
        m = jnp.max(s, axis=-1, keepdims=True)
        p = jnp.exp(s - m)
        inv = pl.reciprocal(jnp.sum(p, axis=-1, keepdims=True), approx=True)
        ctx = ctx + jnp.dot(p, jnp.where(hm, xv, 0.0),
                            preferred_element_type=jnp.float32) * inv   # lane-dense accumulate

    y = jnp.dot(ctx, wp_ref[...], preferred_element_type=jnp.float32) + bp_ref[0]
    x1 = x + y                            # first residual

    # ---- LayerNorm2 + MLP + second residual ----
    xn2 = _layer_norm(x1, ln2g_ref[0], ln2b_ref[0])
    h1 = jnp.dot(xn2, w1_ref[...], preferred_element_type=jnp.float32) + b1_ref[0]
    h1 = _gelu_exact(h1)
    y2 = jnp.dot(h1, w2_ref[...], preferred_element_type=jnp.float32) + b2_ref[0]
    o_ref[0] = (x1 + y2).astype(o_ref.dtype)


# ------------------------------- Block forward --------------------------------

def _full(shape):
    n = len(shape)
    return pl.BlockSpec(shape, lambda b, _n=n: (0,) * _n)


def block_forward(x, p, h, w, num_heads):
    """x: (B, T, C) with T = 1 + h*w (with_cls_token=True), cls token first."""
    B, T, C = x.shape
    assert T == 1 + h * w
    Hd = p["w1"].shape[1]
    top = ((w + 1 + 7) // 8) * 8

    # move the cls token to the END so every in-kernel sublane store is 8-row aligned
    x_perm = jnp.concatenate([x[:, 1:, :], x[:, :1, :]], axis=1)

    # block-diagonal fused QKV weight (attention scale dim_out**-0.5 folded into the q block)
    scale = float(C) ** (-0.5)
    wqkv = jnp.zeros((3 * C, 3 * C), jnp.float32)
    wqkv = wqkv.at[0:C, 0:C].set(p["wq"] * scale)
    wqkv = wqkv.at[C:2 * C, C:2 * C].set(p["wk"])
    wqkv = wqkv.at[2 * C:, 2 * C:].set(p["wv"])

    # depthwise taps with the (inference-mode) BatchNorm scale folded in; only the bias
    # is applied inside the kernel.
    dw = jnp.concatenate([p["dwq_w"] * p["bnq_scale"][None, :],
                          p["dwk_w"] * p["bnk_scale"][None, :],
                          p["dwv_w"] * p["bnv_scale"][None, :]], axis=0)   # (27, C)
    bnb = jnp.stack([p["bnq_bias"], p["bnk_bias"], p["bnv_bias"]], axis=0)  # (3, C)

    # NOTE: on single-TC chips (v5e/v6e), processing several images per grid step would
    # amortize per-step overhead; with B=2 here the ("parallel",) batch grid already maps
    # one image per v7x TensorCore, so we keep one image per step.
    kern = partial(_block_kernel, h=h, w=w, num_heads=num_heads)
    out_perm = pl.pallas_call(
        kern,
        out_shape=jax.ShapeDtypeStruct((B, T, C), x.dtype),
        grid=(B,),
        in_specs=[
            pl.BlockSpec((1, T, C), lambda b: (b, 0, 0)),   # x (permuted)
            _full((1, C)), _full((1, C)),                   # ln1 gamma/beta
            _full((27, C)), _full((3, C)),                  # dw taps (BN-scaled), bn bias
            _full((3 * C, 3 * C)),                          # fused block-diag Wqkv
            _full((C, C)), _full((1, C)),                   # Wproj, bproj
            _full((1, C)), _full((1, C)),                   # ln2 gamma/beta
            _full((C, Hd)), _full((1, Hd)),                 # fc1
            _full((Hd, C)), _full((1, C)),                  # fc2
        ],
        out_specs=pl.BlockSpec((1, T, C), lambda b: (b, 0, 0)),
        scratch_shapes=[
            pltpu.VMEM((h * w + 2 * top, C), jnp.float32),  # padded flat spatial slab
            pltpu.VMEM((T, 3 * C), jnp.float32),            # fused q|k|v staging buffer
        ],
        compiler_params=pltpu.CompilerParams(dimension_semantics=("parallel",)),
    )(x_perm,
      p["ln1_g"].reshape(1, C), p["ln1_b"].reshape(1, C),
      dw, bnb, wqkv, p["wp"], p["bp"].reshape(1, C),
      p["ln2_g"].reshape(1, C), p["ln2_b"].reshape(1, C),
      p["w1"], p["b1"].reshape(1, Hd), p["w2"], p["b2"].reshape(1, C))

    # permute back: cls token first again
    return jnp.concatenate([out_perm[:, h * w:, :], out_perm[:, :h * w, :]], axis=1)


# ------------------------------ parameter init --------------------------------

def init_params(key, dim, hidden):
    ks = jax.random.split(key, 32)
    ki = iter(range(32))
    p = {}
    f32 = jnp.float32
    eps = 1e-5

    p["ln1_g"] = jnp.ones((dim,), f32)
    p["ln1_b"] = jnp.zeros((dim,), f32)
    p["ln2_g"] = jnp.ones((dim,), f32)
    p["ln2_b"] = jnp.zeros((dim,), f32)

    # depthwise conv (torch weight [C,1,3,3] stored as [9, C], row = kh*3+kw) plus
    # inference-mode BatchNorm folded to y = scale * conv(x) + bias.
    for name in ("q", "k", "v"):
        p[f"dw{name}_w"] = 0.1 * jax.random.normal(ks[next(ki)], (9, dim), f32)
        gamma = 1.0 + 0.1 * jax.random.normal(ks[next(ki)], (dim,), f32)
        beta = 0.1 * jax.random.normal(ks[next(ki)], (dim,), f32)
        r_mean = 0.05 * jax.random.normal(ks[next(ki)], (dim,), f32)
        r_var = 1.0 + 0.1 * jax.random.uniform(ks[next(ki)], (dim,), f32)
        scale = gamma / jnp.sqrt(r_var + eps)
        p[f"bn{name}_scale"] = scale
        p[f"bn{name}_bias"] = beta - r_mean * scale

    # linear projections stored as [in, out] (torch weight transposed); qkv_bias=False.
    p["wq"] = 0.02 * jax.random.normal(ks[next(ki)], (dim, dim), f32)
    p["wk"] = 0.02 * jax.random.normal(ks[next(ki)], (dim, dim), f32)
    p["wv"] = 0.02 * jax.random.normal(ks[next(ki)], (dim, dim), f32)
    p["wp"] = 0.02 * jax.random.normal(ks[next(ki)], (dim, dim), f32)
    p["bp"] = 0.01 * jax.random.normal(ks[next(ki)], (dim,), f32)

    # MLP
    p["w1"] = 0.02 * jax.random.normal(ks[next(ki)], (dim, hidden), f32)
    p["b1"] = 0.01 * jax.random.normal(ks[next(ki)], (hidden,), f32)
    p["w2"] = 0.02 * jax.random.normal(ks[next(ki)], (hidden, dim), f32)
    p["b2"] = 0.01 * jax.random.normal(ks[next(ki)], (dim,), f32)
    return p


# ----------------------------------- main --------------------------------------

if __name__ == "__main__":
    # TODO(synk): dropout / drop_path rates are 0.0 in this config -> identity (not implemented).
    B, C, num_heads = 2, 32, 4
    h = w = 8
    T = 1 + h * w                         # with_cls_token=True
    mlp_hidden = int(C * 4.0)

    key = jax.random.PRNGKey(0)
    k_param, k_x = jax.random.split(key)
    params = init_params(k_param, C, mlp_hidden)
    x = jax.random.normal(k_x, (B, T, C), jnp.float32)

    fwd = jax.jit(lambda xx, pp: block_forward(xx, pp, h, w, num_heads))
    out = jax.block_until_ready(fwd(x, params))

    assert out.shape == (B, T, C) and out.dtype == jnp.float32
    assert bool(jnp.all(jnp.isfinite(out)))
    print("KERNEL_OK")
</pallas_src>

<mosaic_0001>
module attributes {stable_mosaic.version = 11 : i64} {
  func.func @_block_kernel(%arg0: i32, %arg1: memref<1x65x32xf32, #tpu.memory_space<vmem>>, %arg2: memref<1x32xf32, #tpu.memory_space<vmem>>, %arg3: memref<1x32xf32, #tpu.memory_space<vmem>>, %arg4: memref<27x32xf32, #tpu.memory_space<vmem>>, %arg5: memref<3x32xf32, #tpu.memory_space<vmem>>, %arg6: memref<96x96xf32, #tpu.memory_space<vmem>>, %arg7: memref<32x32xf32, #tpu.memory_space<vmem>>, %arg8: memref<1x32xf32, #tpu.memory_space<vmem>>, %arg9: memref<1x32xf32, #tpu.memory_space<vmem>>, %arg10: memref<1x32xf32, #tpu.memory_space<vmem>>, %arg11: memref<32x128xf32, #tpu.memory_space<vmem>>, %arg12: memref<1x128xf32, #tpu.memory_space<vmem>>, %arg13: memref<128x32xf32, #tpu.memory_space<vmem>>, %arg14: memref<1x32xf32, #tpu.memory_space<vmem>>, %arg15: memref<1x65x32xf32, #tpu.memory_space<vmem>>, %arg16: memref<96x32xf32, #tpu.memory_space<vmem>>, %arg17: memref<65x96xf32, #tpu.memory_space<vmem>>) attributes {dimension_semantics = [#tpu.dimension_semantics<parallel>], iteration_bounds = array<i64: 2>, scalar_prefetch = 0 : i64, scratch_operands = 2 : i64, tpu.core_type = #tpu.core_type<tc>, window_params = [{transform_indices = @transform_0, window_bounds = array<i64: 1, 65, 32>}, {pipeline_mode = #tpu.pipeline_mode<synchronous>, transform_indices = @transform_1, window_bounds = array<i64: 1, 32>}, {pipeline_mode = #tpu.pipeline_mode<synchronous>, transform_indices = @transform_2, window_bounds = array<i64: 1, 32>}, {pipeline_mode = #tpu.pipeline_mode<synchronous>, transform_indices = @transform_3, window_bounds = array<i64: 27, 32>}, {pipeline_mode = #tpu.pipeline_mode<synchronous>, transform_indices = @transform_4, window_bounds = array<i64: 3, 32>}, {pipeline_mode = #tpu.pipeline_mode<synchronous>, transform_indices = @transform_5, window_bounds = array<i64: 96, 96>}, {pipeline_mode = #tpu.pipeline_mode<synchronous>, transform_indices = @transform_6, window_bounds = array<i64: 32, 32>}, {pipeline_mode = #tpu.pipeline_mode<synchronous>, transform_indices = @transform_7, window_bounds = array<i64: 1, 32>}, {pipeline_mode = #tpu.pipeline_mode<synchronous>, transform_indices = @transform_8, window_bounds = array<i64: 1, 32>}, {pipeline_mode = #tpu.pipeline_mode<synchronous>, transform_indices = @transform_9, window_bounds = array<i64: 1, 32>}, {pipeline_mode = #tpu.pipeline_mode<synchronous>, transform_indices = @transform_10, window_bounds = array<i64: 32, 128>}, {pipeline_mode = #tpu.pipeline_mode<synchronous>, transform_indices = @transform_11, window_bounds = array<i64: 1, 128>}, {pipeline_mode = #tpu.pipeline_mode<synchronous>, transform_indices = @transform_12, window_bounds = array<i64: 128, 32>}, {pipeline_mode = #tpu.pipeline_mode<synchronous>, transform_indices = @transform_13, window_bounds = array<i64: 1, 32>}, {transform_indices = @transform_14, window_bounds = array<i64: 1, 65, 32>}]} {
    %c0 = arith.constant 0 : index
    %c0_0 = arith.constant 0 : index
    %c0_1 = arith.constant 0 : index
    %0 = vector.load %arg1[%c0, %c0_0, %c0_1] : memref<1x65x32xf32, #tpu.memory_space<vmem>>, vector<1x65x32xf32>
    %1 = vector.shape_cast %0 : vector<1x65x32xf32> to vector<65x32xf32>
    %c0_2 = arith.constant 0 : index
    %c0_3 = arith.constant 0 : index
    %2 = vector.load %arg2[%c0_2, %c0_3] : memref<1x32xf32, #tpu.memory_space<vmem>>, vector<1x32xf32>
    %3 = vector.shape_cast %2 : vector<1x32xf32> to vector<32xf32>
    %c0_4 = arith.constant 0 : index
    %c0_5 = arith.constant 0 : index
    %4 = vector.load %arg3[%c0_4, %c0_5] : memref<1x32xf32, #tpu.memory_space<vmem>>, vector<1x32xf32>
    %5 = vector.shape_cast %4 : vector<1x32xf32> to vector<32xf32>
    %cst = arith.constant dense<0.000000e+00> : vector<65xf32>
    %6 = vector.multi_reduction <add>, %1, %cst [1] : vector<65x32xf32> to vector<65xf32>
    %7 = vector.shape_cast %6 : vector<65xf32> to vector<65x1xf32>
    %cst_6 = arith.constant 3.200000e+01 : f32
    %8 = vector.broadcast %cst_6 : f32 to vector<65x1xf32>
    %9 = arith.divf %7, %8 : vector<65x1xf32>
    %10 = vector.broadcast %9 : vector<65x1xf32> to vector<65x32xf32>
    %11 = arith.subf %1, %10 : vector<65x32xf32>
    %12 = arith.mulf %11, %11 : vector<65x32xf32>
    %cst_7 = arith.constant dense<0.000000e+00> : vector<65xf32>
    %13 = vector.multi_reduction <add>, %12, %cst_7 [1] : vector<65x32xf32> to vector<65xf32>
    %14 = vector.shape_cast %13 : vector<65xf32> to vector<65x1xf32>
    %cst_8 = arith.constant 3.200000e+01 : f32
    %15 = vector.broadcast %cst_8 : f32 to vector<65x1xf32>
    %16 = arith.divf %14, %15 : vector<65x1xf32>
    %cst_9 = arith.constant 9.99999974E-6 : f32
    %17 = vector.broadcast %cst_9 : f32 to vector<65x1xf32>
    %18 = arith.addf %16, %17 : vector<65x1xf32>
    %19 = math.rsqrt %18 : vector<65x1xf32>
    %20 = vector.broadcast %19 : vector<65x1xf32> to vector<65x32xf32>
    %21 = arith.mulf %11, %20 : vector<65x32xf32>
    %22 = vector.shape_cast %3 : vector<32xf32> to vector<1x32xf32>
    %23 = vector.broadcast %22 : vector<1x32xf32> to vector<65x32xf32>
    %24 = arith.mulf %21, %23 : vector<65x32xf32>
    %25 = vector.shape_cast %5 : vector<32xf32> to vector<1x32xf32>
    %26 = vector.broadcast %25 : vector<1x32xf32> to vector<65x32xf32>
    %27 = arith.addf %24, %26 : vector<65x32xf32>
    %cst_10 = arith.constant 0.000000e+00 : f32
    %28 = vector.broadcast %cst_10 : f32 to vector<16x32xf32>
    %c0_11 = arith.constant 0 : index
    %c0_12 = arith.constant 0 : index
    %29 = vector.load %arg16[%c0_11, %c0_12] : memref<96x32xf32, #tpu.memory_space<vmem>>, vector<16x32xf32>
    tpu.vector_store %arg16[%c0_11, %c0_12], %28 {strides = array<i32>} : memref<96x32xf32, #tpu.memory_space<vmem>>, vector<16x32xf32>,
    %c80 = arith.constant 80 : index
    %c0_13 = arith.constant 0 : index
    %30 = vector.load %arg16[%c80, %c0_13] : memref<96x32xf32, #tpu.memory_space<vmem>>, vector<16x32xf32>
    tpu.vector_store %arg16[%c80, %c0_13], %28 {strides = array<i32>} : memref<96x32xf32, #tpu.memory_space<vmem>>, vector<16x32xf32>,
    %31 = vector.extract_strided_slice %27 {offsets = [0, 0], sizes = [64, 32], strides = [1, 1]} : vector<65x32xf32> to vector<64x32xf32>
    %c16 = arith.constant 16 : index
    %c0_14 = arith.constant 0 : index
    %32 = vector.load %arg16[%c16, %c0_14] : memref<96x32xf32, #tpu.memory_space<vmem>>, vector<64x32xf32>
    tpu.vector_store %arg16[%c16, %c0_14], %31 {strides = array<i32>} : memref<96x32xf32, #tpu.memory_space<vmem>>, vector<64x32xf32>,
    %c0_15 = arith.constant 0 : index
    %c0_16 = arith.constant 0 : index
    %33 = vector.load %arg16[%c0_15, %c0_16] : memref<96x32xf32, #tpu.memory_space<vmem>>, vector<96x32xf32>
    %34 = tpu.iota {dimensions = array<i32: 0>} : vector<64x32xi32>
    %c8_i32 = arith.constant 8 : i32
    %c0_i32 = arith.constant 0 : i32
    %35 = arith.cmpi eq, %c8_i32, %c0_i32 : i32
    %c1_i32 = arith.constant 1 : i32
    %36 = arith.select %35, %c1_i32, %c8_i32 : i32
    %37 = vector.broadcast %36 : i32 to vector<64x32xi32>
    %38 = arith.remsi %34, %37 : vector<64x32xi32>
    %c0_i32_17 = arith.constant 0 : i32
    %39 = vector.broadcast %c0_i32_17 : i32 to vector<64x32xi32>
    %40 = arith.cmpi ne, %38, %39 : vector<64x32xi32>
    %c0_i32_18 = arith.constant 0 : i32
    %41 = vector.broadcast %c0_i32_18 : i32 to vector<64x32xi32>
    %42 = arith.cmpi slt, %38, %41 : vector<64x32xi32>
    %c0_i32_19 = arith.constant 0 : i32
    %43 = arith.cmpi slt, %36, %c0_i32_19 : i32
    %44 = vector.broadcast %43 : i1 to vector<64x32xi1>
    %45 = vector.broadcast %44 : vector<64x32xi1> to vector<64x32xi1>
    %46 = arith.xori %42, %45 : vector<64x32xi1>
    %47 = arith.andi %46, %40 : vector<64x32xi1>
    %48 = vector.broadcast %36 : i32 to vector<64x32xi32>
    %49 = arith.addi %38, %48 : vector<64x32xi32>
    %50 = arith.select %47, %49, %38 : vector<64x32xi1>, vector<64x32xi32>
    %c0_i32_20 = arith.constant 0 : i32
    %51 = vector.broadcast %c0_i32_20 : i32 to vector<64x32xi32>
    %52 = arith.cmpi ne, %50, %51 : vector<64x32xi32>
    %c7_i32 = arith.constant 7 : i32
    %53 = vector.broadcast %c7_i32 : i32 to vector<64x32xi32>
    %54 = arith.cmpi ne, %50, %53 : vector<64x32xi32>
    %c0_21 = arith.constant 0 : index
    %c0_22 = arith.constant 0 : index
    %55 = vector.load %arg4[%c0_21, %c0_22] : memref<27x32xf32, #tpu.memory_space<vmem>>, vector<27x32xf32>
    %cst_23 = arith.constant 0.000000e+00 : f32
    %56 = vector.broadcast %cst_23 : f32 to vector<64x32xf32>
    %cst_24 = arith.constant 0.000000e+00 : f32
    %57 = vector.broadcast %cst_24 : f32 to vector<64x32xf32>
    %cst_25 = arith.constant 0.000000e+00 : f32
    %58 = vector.broadcast %cst_25 : f32 to vector<64x32xf32>
    %59 = vector.extract_strided_slice %33 {offsets = [7, 0], sizes = [64, 32], strides = [1, 1]} : vector<96x32xf32> to vector<64x32xf32>
    %cst_26 = arith.constant 0.000000e+00 : f32
    %60 = vector.broadcast %cst_26 : f32 to vector<64x32xf32>
    %61 = arith.select %52, %59, %60 : vector<64x32xi1>, vector<64x32xf32>
    %62 = vector.extract_strided_slice %55 {offsets = [0, 0], sizes = [1, 32], strides = [1, 1]} : vector<27x32xf32> to vector<1x32xf32>
    %63 = vector.shape_cast %62 : vector<1x32xf32> to vector<32xf32>
    %64 = vector.shape_cast %63 : vector<32xf32> to vector<1x32xf32>
    %65 = vector.broadcast %64 : vector<1x32xf32> to vector<64x32xf32>
    %66 = arith.mulf %61, %65 : vector<64x32xf32>
    %67 = arith.addf %56, %66 : vector<64x32xf32>
    %68 = vector.extract_strided_slice %55 {offsets = [9, 0], sizes = [1, 32], strides = [1, 1]} : vector<27x32xf32> to vector<1x32xf32>
    %69 = vector.shape_cast %68 : vector<1x32xf32> to vector<32xf32>
    %70 = vector.shape_cast %69 : vector<32xf32> to vector<1x32xf32>
    %71 = vector.broadcast %70 : vector<1x32xf32> to vector<64x32xf32>
    %72 = arith.mulf %61, %71 : vector<64x32xf32>
    %73 = arith.addf %57, %72 : vector<64x32xf32>
    %74 = vector.extract_strided_slice %55 {offsets = [18, 0], sizes = [1, 32], strides = [1, 1]} : vector<27x32xf32> to vector<1x32xf32>
    %75 = vector.shape_cast %74 : vector<1x32xf32> to vector<32xf32>
    %76 = vector.shape_cast %75 : vector<32xf32> to vector<1x32xf32>
    %77 = vector.broadcast %76 : vector<1x32xf32> to vector<64x32xf32>
    %78 = arith.mulf %61, %77 : vector<64x32xf32>
    %79 = arith.addf %58, %78 : vector<64x32xf32>
    %80 = vector.extract_strided_slice %33 {offsets = [8, 0], sizes = [64, 32], strides = [1, 1]} : vector<96x32xf32> to vector<64x32xf32>
    %81 = vector.extract_strided_slice %55 {offsets = [1, 0], sizes = [1, 32], strides = [1, 1]} : vector<27x32xf32> to vector<1x32xf32>
    %82 = vector.shape_cast %81 : vector<1x32xf32> to vector<32xf32>
    %83 = vector.shape_cast %82 : vector<32xf32> to vector<1x32xf32>
    %84 = vector.broadcast %83 : vector<1x32xf32> to vector<64x32xf32>
    %85 = arith.mulf %80, %84 : vector<64x32xf32>
    %86 = arith.addf %67, %85 : vector<64x32xf32>
    %87 = vector.extract_strided_slice %55 {offsets = [10, 0], sizes = [1, 32], strides = [1, 1]} : vector<27x32xf32> to vector<1x32xf32>
    %88 = vector.shape_cast %87 : vector<1x32xf32> to vector<32xf32>
    %89 = vector.shape_cast %88 : vector<32xf32> to vector<1x32xf32>
    %90 = vector.broadcast %89 : vector<1x32xf32> to vector<64x32xf32>
    %91 = arith.mulf %80, %90 : vector<64x32xf32>
    %92 = arith.addf %73, %91 : vector<64x32xf32>
    %93 = vector.extract_strided_slice %55 {offsets = [19, 0], sizes = [1, 32], strides = [1, 1]} : vector<27x32xf32> to vector<1x32xf32>
    %94 = vector.shape_cast %93 : vector<1x32xf32> to vector<32xf32>
    %95 = vector.shape_cast %94 : vector<32xf32> to vector<1x32xf32>
    %96 = vector.broadcast %95 : vector<1x32xf32> to vector<64x32xf32>
    %97 = arith.mulf %80, %96 : vector<64x32xf32>
    %98 = arith.addf %79, %97 : vector<64x32xf32>
    %99 = vector.extract_strided_slice %33 {offsets = [9, 0], sizes = [64, 32], strides = [1, 1]} : vector<96x32xf32> to vector<64x32xf32>
    %cst_27 = arith.constant 0.000000e+00 : f32
    %100 = vector.broadcast %cst_27 : f32 to vector<64x32xf32>
    %101 = arith.select %54, %99, %100 : vector<64x32xi1>, vector<64x32xf32>
    %102 = vector.extract_strided_slice %55 {offsets = [2, 0], sizes = [1, 32], strides = [1, 1]} : vector<27x32xf32> to vector<1x32xf32>
    %103 = vector.shape_cast %102 : vector<1x32xf32> to vector<32xf32>
    %104 = vector.shape_cast %103 : vector<32xf32> to vector<1x32xf32>
    %105 = vector.broadcast %104 : vector<1x32xf32> to vector<64x32xf32>
    %106 = arith.mulf %101, %105 : vector<64x32xf32>
    %107 = arith.addf %86, %106 : vector<64x32xf32>
    %108 = vector.extract_strided_slice %55 {offsets = [11, 0], sizes = [1, 32], strides = [1, 1]} : vector<27x32xf32> to vector<1x32xf32>
    %109 = vector.shape_cast %108 : vector<1x32xf32> to vector<32xf32>
    %110 = vector.shape_cast %109 : vector<32xf32> to vector<1x32xf32>
    %111 = vector.broadcast %110 : vector<1x32xf32> to vector<64x32xf32>
    %112 = arith.mulf %101, %111 : vector<64x32xf32>
    %113 = arith.addf %92, %112 : vector<64x32xf32>
    %114 = vector.extract_strided_slice %55 {offsets = [20, 0], sizes = [1, 32], strides = [1, 1]} : vector<27x32xf32> to vector<1x32xf32>
    %115 = vector.shape_cast %114 : vector<1x32xf32> to vector<32xf32>
    %116 = vector.shape_cast %115 : vector<32xf32> to vector<1x32xf32>
    %117 = vector.broadcast %116 : vector<1x32xf32> to vector<64x32xf32>
    %118 = arith.mulf %101, %117 : vector<64x32xf32>
    %119 = arith.addf %98, %118 : vector<64x32xf32>
    %120 = vector.extract_strided_slice %33 {offsets = [15, 0], sizes = [64, 32], strides = [1, 1]} : vector<96x32xf32> to vector<64x32xf32>
    %cst_28 = arith.constant 0.000000e+00 : f32
    %121 = vector.broadcast %cst_28 : f32 to vector<64x32xf32>
    %122 = arith.select %52, %120, %121 : vector<64x32xi1>, vector<64x32xf32>
    %123 = vector.extract_strided_slice %55 {offsets = [3, 0], sizes = [1, 32], strides = [1, 1]} : vector<27x32xf32> to vector<1x32xf32>
    %124 = vector.shape_cast %123 : vector<1x32xf32> to vector<32xf32>
    %125 = vector.shape_cast %124 : vector<32xf32> to vector<1x32xf32>
    %126 = vector.broadcast %125 : vector<1x32xf32> to vector<64x32xf32>
    %127 = arith.mulf %122, %126 : vector<64x32xf32>
    %128 = arith.addf %107, %127 : vector<64x32xf32>
    %129 = vector.extract_strided_slice %55 {offsets = [12, 0], sizes = [1, 32], strides = [1, 1]} : vector<27x32xf32> to vector<1x32xf32>
    %130 = vector.shape_cast %129 : vector<1x32xf32> to vector<32xf32>
    %131 = vector.shape_cast %130 : vector<32xf32> to vector<1x32xf32>
    %132 = vector.broadcast %131 : vector<1x32xf32> to vector<64x32xf32>
    %133 = arith.mulf %122, %132 : vector<64x32xf32>
    %134 = arith.addf %113, %133 : vector<64x32xf32>
    %135 = vector.extract_strided_slice %55 {offsets = [21, 0], sizes = [1, 32], strides = [1, 1]} : vector<27x32xf32> to vector<1x32xf32>
    %136 = vector.shape_cast %135 : vector<1x32xf32> to vector<32xf32>
    %137 = vector.shape_cast %136 : vector<32xf32> to vector<1x32xf32>
    %138 = vector.broadcast %137 : vector<1x32xf32> to vector<64x32xf32>
    %139 = arith.mulf %122, %138 : vector<64x32xf32>
    %140 = arith.addf %119, %139 : vector<64x32xf32>
    %141 = vector.extract_strided_slice %33 {offsets = [16, 0], sizes = [64, 32], strides = [1, 1]} : vector<96x32xf32> to vector<64x32xf32>
    %142 = vector.extract_strided_slice %55 {offsets = [4, 0], sizes = [1, 32], strides = [1, 1]} : vector<27x32xf32> to vector<1x32xf32>
    %143 = vector.shape_cast %142 : vector<1x32xf32> to vector<32xf32>
    %144 = vector.shape_cast %143 : vector<32xf32> to vector<1x32xf32>
    %145 = vector.broadcast %144 : vector<1x32xf32> to vector<64x32xf32>
    %146 = arith.mulf %141, %145 : vector<64x32xf32>
    %147 = arith.addf %128, %146 : vector<64x32xf32>
    %148 = vector.extract_strided_slice %55 {offsets = [13, 0], sizes = [1, 32], strides = [1, 1]} : vector<27x32xf32> to vector<1x32xf32>
    %149 = vector.shape_cast %148 : vector<1x32xf32> to vector<32xf32>
    %150 = vector.shape_cast %149 : vector<32xf32> to vector<1x32xf32>
    %151 = vector.broadcast %150 : vector<1x32xf32> to vector<64x32xf32>
    %152 = arith.mulf %141, %151 : vector<64x32xf32>
    %153 = arith.addf %134, %152 : vector<64x32xf32>
    %154 = vector.extract_strided_slice %55 {offsets = [22, 0], sizes = [1, 32], strides = [1, 1]} : vector<27x32xf32> to vector<1x32xf32>
    %155 = vector.shape_cast %154 : vector<1x32xf32> to vector<32xf32>
    %156 = vector.shape_cast %155 : vector<32xf32> to vector<1x32xf32>
    %157 = vector.broadcast %156 : vector<1x32xf32> to vector<64x32xf32>
    %158 = arith.mulf %141, %157 : vector<64x32xf32>
    %159 = arith.addf %140, %158 : vector<64x32xf32>
    %160 = vector.extract_strided_slice %33 {offsets = [17, 0], sizes = [64, 32], strides = [1, 1]} : vector<96x32xf32> to vector<64x32xf32>
    %cst_29 = arith.constant 0.000000e+00 : f32
    %161 = vector.broadcast %cst_29 : f32 to vector<64x32xf32>
    %162 = arith.select %54, %160, %161 : vector<64x32xi1>, vector<64x32xf32>
    %163 = vector.extract_strided_slice %55 {offsets = [5, 0], sizes = [1, 32], strides = [1, 1]} : vector<27x32xf32> to vector<1x32xf32>
    %164 = vector.shape_cast %163 : vector<1x32xf32> to vector<32xf32>
    %165 = vector.shape_cast %164 : vector<32xf32> to vector<1x32xf32>
    %166 = vector.broadcast %165 : vector<1x32xf32> to vector<64x32xf32>
    %167 = arith.mulf %162, %166 : vector<64x32xf32>
    %168 = arith.addf %147, %167 : vector<64x32xf32>
    %169 = vector.extract_strided_slice %55 {offsets = [14, 0], sizes = [1, 32], strides = [1, 1]} : vector<27x32xf32> to vector<1x32xf32>
    %170 = vector.shape_cast %169 : vector<1x32xf32> to vector<32xf32>
    %171 = vector.shape_cast %170 : vector<32xf32> to vector<1x32xf32>
    %172 = vector.broadcast %171 : vector<1x32xf32> to vector<64x32xf32>
    %173 = arith.mulf %162, %172 : vector<64x32xf32>
    %174 = arith.addf %153, %173 : vector<64x32xf32>
    %175 = vector.extract_strided_slice %55 {offsets = [23, 0], sizes = [1, 32], strides = [1, 1]} : vector<27x32xf32> to vector<1x32xf32>
    %176 = vector.shape_cast %175 : vector<1x32xf32> to vector<32xf32>
    %177 = vector.shape_cast %176 : vector<32xf32> to vector<1x32xf32>
    %178 = vector.broadcast %177 : vector<1x32xf32> to vector<64x32xf32>
    %179 = arith.mulf %162, %178 : vector<64x32xf32>
    %180 = arith.addf %159, %179 : vector<64x32xf32>
    %181 = vector.extract_strided_slice %33 {offsets = [23, 0], sizes = [64, 32], strides = [1, 1]} : vector<96x32xf32> to vector<64x32xf32>
    %cst_30 = arith.constant 0.000000e+00 : f32
    %182 = vector.broadcast %cst_30 : f32 to vector<64x32xf32>
    %183 = arith.select %52, %181, %182 : vector<64x32xi1>, vector<64x32xf32>
    %184 = vector.extract_strided_slice %55 {offsets = [6, 0], sizes = [1, 32], strides = [1, 1]} : vector<27x32xf32> to vector<1x32xf32>
    %185 = vector.shape_cast %184 : vector<1x32xf32> to vector<32xf32>
    %186 = vector.shape_cast %185 : vector<32xf32> to vector<1x32xf32>
    %187 = vector.broadcast %186 : vector<1x32xf32> to vector<64x32xf32>
    %188 = arith.mulf %183, %187 : vector<64x32xf32>
    %189 = arith.addf %168, %188 : vector<64x32xf32>
    %190 = vector.extract_strided_slice %55 {offsets = [15, 0], sizes = [1, 32], strides = [1, 1]} : vector<27x32xf32> to vector<1x32xf32>
    %191 = vector.shape_cast %190 : vector<1x32xf32> to vector<32xf32>
    %192 = vector.shape_cast %191 : vector<32xf32> to vector<1x32xf32>
    %193 = vector.broadcast %192 : vector<1x32xf32> to vector<64x32xf32>
    %194 = arith.mulf %183, %193 : vector<64x32xf32>
    %195 = arith.addf %174, %194 : vector<64x32xf32>
    %196 = vector.extract_strided_slice %55 {offsets = [24, 0], sizes = [1, 32], strides = [1, 1]} : vector<27x32xf32> to vector<1x32xf32>
    %197 = vector.shape_cast %196 : vector<1x32xf32> to vector<32xf32>
    %198 = vector.shape_cast %197 : vector<32xf32> to vector<1x32xf32>
    %199 = vector.broadcast %198 : vector<1x32xf32> to vector<64x32xf32>
    %200 = arith.mulf %183, %199 : vector<64x32xf32>
    %201 = arith.addf %180, %200 : vector<64x32xf32>
    %202 = vector.extract_strided_slice %33 {offsets = [24, 0], sizes = [64, 32], strides = [1, 1]} : vector<96x32xf32> to vector<64x32xf32>
    %203 = vector.extract_strided_slice %55 {offsets = [7, 0], sizes = [1, 32], strides = [1, 1]} : vector<27x32xf32> to vector<1x32xf32>
    %204 = vector.shape_cast %203 : vector<1x32xf32> to vector<32xf32>
    %205 = vector.shape_cast %204 : vector<32xf32> to vector<1x32xf32>
    %206 = vector.broadcast %205 : vector<1x32xf32> to vector<64x32xf32>
    %207 = arith.mulf %202, %206 : vector<64x32xf32>
    %208 = arith.addf %189, %207 : vector<64x32xf32>
    %209 = vector.extract_strided_slice %55 {offsets = [16, 0], sizes = [1, 32], strides = [1, 1]} : vector<27x32xf32> to vector<1x32xf32>
    %210 = vector.shape_cast %209 : vector<1x32xf32> to vector<32xf32>
    %211 = vector.shape_cast %210 : vector<32xf32> to vector<1x32xf32>
    %212 = vector.broadcast %211 : vector<1x32xf32> to vector<64x32xf32>
    %213 = arith.mulf %202, %212 : vector<64x32xf32>
    %214 = arith.addf %195, %213 : vector<64x32xf32>
    %215 = vector.extract_strided_slice %55 {offsets = [25, 0], sizes = [1, 32], strides = [1, 1]} : vector<27x32xf32> to vector<1x32xf32>
    %216 = vector.shape_cast %215 : vector<1x32xf32> to vector<32xf32>
    %217 = vector.shape_cast %216 : vector<32xf32> to vector<1x32xf32>
    %218 = vector.broadcast %217 : vector<1x32xf32> to vector<64x32xf32>
    %219 = arith.mulf %202, %218 : vector<64x32xf32>
    %220 = arith.addf %201, %219 : vector<64x32xf32>
    %221 = vector.extract_strided_slice %33 {offsets = [25, 0], sizes = [64, 32], strides = [1, 1]} : vector<96x32xf32> to vector<64x32xf32>
    %cst_31 = arith.constant 0.000000e+00 : f32
    %222 = vector.broadcast %cst_31 : f32 to vector<64x32xf32>
    %223 = arith.select %54, %221, %222 : vector<64x32xi1>, vector<64x32xf32>
    %224 = vector.extract_strided_slice %55 {offsets = [8, 0], sizes = [1, 32], strides = [1, 1]} : vector<27x32xf32> to vector<1x32xf32>
    %225 = vector.shape_cast %224 : vector<1x32xf32> to vector<32xf32>
    %226 = vector.shape_cast %225 : vector<32xf32> to vector<1x32xf32>
    %227 = vector.broadcast %226 : vector<1x32xf32> to vector<64x32xf32>
    %228 = arith.mulf %223, %227 : vector<64x32xf32>
    %229 = arith.addf %208, %228 : vector<64x32xf32>
    %230 = vector.extract_strided_slice %55 {offsets = [17, 0], sizes = [1, 32], strides = [1, 1]} : vector<27x32xf32> to vector<1x32xf32>
    %231 = vector.shape_cast %230 : vector<1x32xf32> to vector<32xf32>
    %232 = vector.shape_cast %231 : vector<32xf32> to vector<1x32xf32>
    %233 = vector.broadcast %232 : vector<1x32xf32> to vector<64x32xf32>
    %234 = arith.mulf %223, %233 : vector<64x32xf32>
    %235 = arith.addf %214, %234 : vector<64x32xf32>
    %236 = vector.extract_strided_slice %55 {offsets = [26, 0], sizes = [1, 32], strides = [1, 1]} : vector<27x32xf32> to vector<1x32xf32>
    %237 = vector.shape_cast %236 : vector<1x32xf32> to vector<32xf32>
    %238 = vector.shape_cast %237 : vector<32xf32> to vector<1x32xf32>
    %239 = vector.broadcast %238 : vector<1x32xf32> to vector<64x32xf32>
    %240 = arith.mulf %223, %239 : vector<64x32xf32>
    %241 = arith.addf %220, %240 : vector<64x32xf32>
    %c0_32 = arith.constant 0 : index
    %c0_33 = arith.constant 0 : index
    %242 = vector.load %arg5[%c0_32, %c0_33] : memref<3x32xf32, #tpu.memory_space<vmem>>, vector<3x32xf32>
    %243 = vector.extract_strided_slice %242 {offsets = [0, 0], sizes = [1, 32], strides = [1, 1]} : vector<3x32xf32> to vector<1x32xf32>
    %244 = vector.shape_cast %243 : vector<1x32xf32> to vector<32xf32>
    %245 = vector.shape_cast %244 : vector<32xf32> to vector<1x32xf32>
    %246 = vector.broadcast %245 : vector<1x32xf32> to vector<64x32xf32>
    %247 = arith.addf %229, %246 : vector<64x32xf32>
    %248 = vector.extract_strided_slice %242 {offsets = [1, 0], sizes = [1, 32], strides = [1, 1]} : vector<3x32xf32> to vector<1x32xf32>
    %249 = vector.shape_cast %248 : vector<1x32xf32> to vector<32xf32>
    %250 = vector.shape_cast %249 : vector<32xf32> to vector<1x32xf32>
    %251 = vector.broadcast %250 : vector<1x32xf32> to vector<64x32xf32>
    %252 = arith.addf %235, %251 : vector<64x32xf32>
    %253 = vector.extract_strided_slice %242 {offsets = [2, 0], sizes = [1, 32], strides = [1, 1]} : vector<3x32xf32> to vector<1x32xf32>
    %254 = vector.shape_cast %253 : vector<1x32xf32> to vector<32xf32>
    %255 = vector.shape_cast %254 : vector<32xf32> to vector<1x32xf32>
    %256 = vector.broadcast %255 : vector<1x32xf32> to vector<64x32xf32>
    %257 = arith.addf %241, %256 : vector<64x32xf32>
    %258 = tpu.concatenate %247, %252, %257 in 1 : vector<64x32xf32>, vector<64x32xf32>, vector<64x32xf32> -> vector<64x96xf32>
    %259 = vector.extract_strided_slice %27 {offsets = [64, 0], sizes = [1, 32], strides = [1, 1]} : vector<65x32xf32> to vector<1x32xf32>
    %c0_34 = arith.constant 0 : index
    %c0_35 = arith.constant 0 : index
    %260 = vector.load %arg17[%c0_34, %c0_35] : memref<65x96xf32, #tpu.memory_space<vmem>>, vector<64x96xf32>
    tpu.vector_store %arg17[%c0_34, %c0_35], %258 {strides = array<i32>} : memref<65x96xf32, #tpu.memory_space<vmem>>, vector<64x96xf32>,
    %261 = tpu.concatenate %259, %259, %259 in 1 : vector<1x32xf32>, vector<1x32xf32>, vector<1x32xf32> -> vector<1x96xf32>
    %c64 = arith.constant 64 : index
    %c0_36 = arith.constant 0 : index
    %262 = vector.load %arg17[%c64, %c0_36] : memref<65x96xf32, #tpu.memory_space<vmem>>, vector<1x96xf32>
    tpu.vector_store %arg17[%c64, %c0_36], %261 {strides = array<i32>} : memref<65x96xf32, #tpu.memory_space<vmem>>, vector<1x96xf32>,
    %c0_37 = arith.constant 0 : index
    %c0_38 = arith.constant 0 : index
    %263 = vector.load %arg17[%c0_37, %c0_38] : memref<65x96xf32, #tpu.memory_space<vmem>>, vector<65x96xf32>
    %c0_39 = arith.constant 0 : index
    %c0_40 = arith.constant 0 : index
    %264 = vector.load %arg6[%c0_39, %c0_40] : memref<96x96xf32, #tpu.memory_space<vmem>>, vector<96x96xf32>
    %cst_41 = arith.constant dense<0.000000e+00> : vector<65x96xf32>
    %265 = tpu.matmul %263, %264, %cst_41 {dimension_numbers = #tpu.dot_dimension_numbers<[1], [0], [0], [1], [0, 0, 1, 1], [], []>} : vector<65x96xf32>, vector<96x96xf32>, vector<65x96xf32> -> vector<65x96xf32>
    %266 = vector.extract_strided_slice %265 {offsets = [0, 0], sizes = [65, 32], strides = [1, 1]} : vector<65x96xf32> to vector<65x32xf32>
    %267 = vector.extract_strided_slice %265 {offsets = [0, 32], sizes = [65, 32], strides = [1, 1]} : vector<65x96xf32> to vector<65x32xf32>
    %268 = vector.extract_strided_slice %265 {offsets = [0, 64], sizes = [65, 32], strides = [1, 1]} : vector<65x96xf32> to vector<65x32xf32>
    %269 = tpu.transpose %267, [1, 0] : vector<65x32xf32> -> vector<32x65xf32>
    %270 = tpu.iota {dimensions = array<i32: 1>} : vector<1x32xi32>
    %cst_42 = arith.constant 0.000000e+00 : f32
    %271 = vector.broadcast %cst_42 : f32 to vector<65x32xf32>
    %c0_i32_43 = arith.constant 0 : i32
    %272 = vector.broadcast %c0_i32_43 : i32 to vector<1x32xi32>
    %273 = arith.cmpi sge, %270, %272 : vector<1x32xi32>
    %c8_i32_44 = arith.constant 8 : i32
    %274 = vector.broadcast %c8_i32_44 : i32 to vector<1x32xi32>
    %275 = arith.cmpi slt, %270, %274 : vector<1x32xi32>
    %276 = arith.andi %273, %275 : vector<1x32xi1>
    %cst_45 = arith.constant 0.000000e+00 : f32
    %277 = vector.shape_cast %276 : vector<1x32xi1> to vector<1x32xi1>
    %278 = vector.broadcast %277 : vector<1x32xi1> to vector<65x32xi1>
    %279 = vector.broadcast %cst_45 : f32 to vector<65x32xf32>
    %280 = arith.select %278, %266, %279 : vector<65x32xi1>, vector<65x32xf32>
    %cst_46 = arith.constant dense<0.000000e+00> : vector<65x65xf32>
    %281 = tpu.matmul %280, %269, %cst_46 {dimension_numbers = #tpu.dot_dimension_numbers<[1], [0], [0], [1], [0, 0, 1, 1], [], []>} : vector<65x32xf32>, vector<32x65xf32>, vector<65x65xf32> -> vector<65x65xf32>
    %cst_47 = arith.constant dense<0xFF800000> : vector<65xf32>
    %282 = vector.multi_reduction <maximumf>, %281, %cst_47 [1] : vector<65x65xf32> to vector<65xf32>
    %283 = vector.shape_cast %282 : vector<65xf32> to vector<65x1xf32>
    %284 = vector.broadcast %283 : vector<65x1xf32> to vector<65x65xf32>
    %285 = arith.subf %281, %284 : vector<65x65xf32>
    %286 = math.exp %285 : vector<65x65xf32>
    %cst_48 = arith.constant dense<0.000000e+00> : vector<65xf32>
    %287 = vector.multi_reduction <add>, %286, %cst_48 [1] : vector<65x65xf32> to vector<65xf32>
    %288 = vector.shape_cast %287 : vector<65xf32> to vector<65x1xf32>
    %289 = tpu.reciprocal %288 {approx = true} : vector<65x1xf32> -> vector<65x1xf32>
    %cst_49 = arith.constant 0.000000e+00 : f32
    %290 = vector.shape_cast %276 : vector<1x32xi1> to vector<1x32xi1>
    %291 = vector.broadcast %290 : vector<1x32xi1> to vector<65x32xi1>
    %292 = vector.broadcast %cst_49 : f32 to vector<65x32xf32>
    %293 = arith.select %291, %268, %292 : vector<65x32xi1>, vector<65x32xf32>
    %cst_50 = arith.constant dense<0.000000e+00> : vector<65x32xf32>
    %294 = tpu.matmul %286, %293, %cst_50 {dimension_numbers = #tpu.dot_dimension_numbers<[1], [0], [0], [1], [0, 0, 1, 1], [], []>} : vector<65x65xf32>, vector<65x32xf32>, vector<65x32xf32> -> vector<65x32xf32>
    %295 = vector.broadcast %289 : vector<65x1xf32> to vector<65x32xf32>
    %296 = arith.mulf %294, %295 : vector<65x32xf32>
    %297 = arith.addf %271, %296 : vector<65x32xf32>
    %c8_i32_51 = arith.constant 8 : i32
    %298 = vector.broadcast %c8_i32_51 : i32 to vector<1x32xi32>
    %299 = arith.cmpi sge, %270, %298 : vector<1x32xi32>
    %c16_i32 = arith.constant 16 : i32
    %300 = vector.broadcast %c16_i32 : i32 to vector<1x32xi32>
    %301 = arith.cmpi slt, %270, %300 : vector<1x32xi32>
    %302 = arith.andi %299, %301 : vector<1x32xi1>
    %cst_52 = arith.constant 0.000000e+00 : f32
    %303 = vector.shape_cast %302 : vector<1x32xi1> to vector<1x32xi1>
    %304 = vector.broadcast %303 : vector<1x32xi1> to vector<65x32xi1>
    %305 = vector.broadcast %cst_52 : f32 to vector<65x32xf32>
    %306 = arith.select %304, %266, %305 : vector<65x32xi1>, vector<65x32xf32>
    %cst_53 = arith.constant dense<0.000000e+00> : vector<65x65xf32>
    %307 = tpu.matmul %306, %269, %cst_53 {dimension_numbers = #tpu.dot_dimension_numbers<[1], [0], [0], [1], [0, 0, 1, 1], [], []>} : vector<65x32xf32>, vector<32x65xf32>, vector<65x65xf32> -> vector<65x65xf32>
    %cst_54 = arith.constant dense<0xFF800000> : vector<65xf32>
    %308 = vector.multi_reduction <maximumf>, %307, %cst_54 [1] : vector<65x65xf32> to vector<65xf32>
    %309 = vector.shape_cast %308 : vector<65xf32> to vector<65x1xf32>
    %310 = vector.broadcast %309 : vector<65x1xf32> to vector<65x65xf32>
    %311 = arith.subf %307, %310 : vector<65x65xf32>
    %312 = math.exp %311 : vector<65x65xf32>
    %cst_55 = arith.constant dense<0.000000e+00> : vector<65xf32>
    %313 = vector.multi_reduction <add>, %312, %cst_55 [1] : vector<65x65xf32> to vector<65xf32>
    %314 = vector.shape_cast %313 : vector<65xf32> to vector<65x1xf32>
    %315 = tpu.reciprocal %314 {approx = true} : vector<65x1xf32> -> vector<65x1xf32>
    %cst_56 = arith.constant 0.000000e+00 : f32
    %316 = vector.shape_cast %302 : vector<1x32xi1> to vector<1x32xi1>
    %317 = vector.broadcast %316 : vector<1x32xi1> to vector<65x32xi1>
    %318 = vector.broadcast %cst_56 : f32 to vector<65x32xf32>
    %319 = arith.select %317, %268, %318 : vector<65x32xi1>, vector<65x32xf32>
    %cst_57 = arith.constant dense<0.000000e+00> : vector<65x32xf32>
    %320 = tpu.matmul %312, %319, %cst_57 {dimension_numbers = #tpu.dot_dimension_numbers<[1], [0], [0], [1], [0, 0, 1, 1], [], []>} : vector<65x65xf32>, vector<65x32xf32>, vector<65x32xf32> -> vector<65x32xf32>
    %321 = vector.broadcast %315 : vector<65x1xf32> to vector<65x32xf32>
    %322 = arith.mulf %320, %321 : vector<65x32xf32>
    %323 = arith.addf %297, %322 : vector<65x32xf32>
    %c16_i32_58 = arith.constant 16 : i32
    %324 = vector.broadcast %c16_i32_58 : i32 to vector<1x32xi32>
    %325 = arith.cmpi sge, %270, %324 : vector<1x32xi32>
    %c24_i32 = arith.constant 24 : i32
    %326 = vector.broadcast %c24_i32 : i32 to vector<1x32xi32>
    %327 = arith.cmpi slt, %270, %326 : vector<1x32xi32>
    %328 = arith.andi %325, %327 : vector<1x32xi1>
    %cst_59 = arith.constant 0.000000e+00 : f32
    %329 = vector.shape_cast %328 : vector<1x32xi1> to vector<1x32xi1>
    %330 = vector.broadcast %329 : vector<1x32xi1> to vector<65x32xi1>
    %331 = vector.broadcast %cst_59 : f32 to vector<65x32xf32>
    %332 = arith.select %330, %266, %331 : vector<65x32xi1>, vector<65x32xf32>
    %cst_60 = arith.constant dense<0.000000e+00> : vector<65x65xf32>
    %333 = tpu.matmul %332, %269, %cst_60 {dimension_numbers = #tpu.dot_dimension_numbers<[1], [0], [0], [1], [0, 0, 1, 1], [], []>} : vector<65x32xf32>, vector<32x65xf32>, vector<65x65xf32> -> vector<65x65xf32>
    %cst_61 = arith.constant dense<0xFF800000> : vector<65xf32>
    %334 = vector.multi_reduction <maximumf>, %333, %cst_61 [1] : vector<65x65xf32> to vector<65xf32>
    %335 = vector.shape_cast %334 : vector<65xf32> to vector<65x1xf32>
    %336 = vector.broadcast %335 : vector<65x1xf32> to vector<65x65xf32>
    %337 = arith.subf %333, %336 : vector<65x65xf32>
    %338 = math.exp %337 : vector<65x65xf32>
    %cst_62 = arith.constant dense<0.000000e+00> : vector<65xf32>
    %339 = vector.multi_reduction <add>, %338, %cst_62 [1] : vector<65x65xf32> to vector<65xf32>
    %340 = vector.shape_cast %339 : vector<65xf32> to vector<65x1xf32>
    %341 = tpu.reciprocal %340 {approx = true} : vector<65x1xf32> -> vector<65x1xf32>
    %cst_63 = arith.constant 0.000000e+00 : f32
    %342 = vector.shape_cast %328 : vector<1x32xi1> to vector<1x32xi1>
    %343 = vector.broadcast %342 : vector<1x32xi1> to vector<65x32xi1>
    %344 = vector.broadcast %cst_63 : f32 to vector<65x32xf32>
    %345 = arith.select %343, %268, %344 : vector<65x32xi1>, vector<65x32xf32>
    %cst_64 = arith.constant dense<0.000000e+00> : vector<65x32xf32>
    %346 = tpu.matmul %338, %345, %cst_64 {dimension_numbers = #tpu.dot_dimension_numbers<[1], [0], [0], [1], [0, 0, 1, 1], [], []>} : vector<65x65xf32>, vector<65x32xf32>, vector<65x32xf32> -> vector<65x32xf32>
    %347 = vector.broadcast %341 : vector<65x1xf32> to vector<65x32xf32>
    %348 = arith.mulf %346, %347 : vector<65x32xf32>
    %349 = arith.addf %323, %348 : vector<65x32xf32>
    %c24_i32_65 = arith.constant 24 : i32
    %350 = vector.broadcast %c24_i32_65 : i32 to vector<1x32xi32>
    %351 = arith.cmpi sge, %270, %350 : vector<1x32xi32>
    %c32_i32 = arith.constant 32 : i32
    %352 = vector.broadcast %c32_i32 : i32 to vector<1x32xi32>
    %353 = arith.cmpi slt, %270, %352 : vector<1x32xi32>
    %354 = arith.andi %351, %353 : vector<1x32xi1>
    %cst_66 = arith.constant 0.000000e+00 : f32
    %355 = vector.shape_cast %354 : vector<1x32xi1> to vector<1x32xi1>
    %356 = vector.broadcast %355 : vector<1x32xi1> to vector<65x32xi1>
    %357 = vector.broadcast %cst_66 : f32 to vector<65x32xf32>
    %358 = arith.select %356, %266, %357 : vector<65x32xi1>, vector<65x32xf32>
    %cst_67 = arith.constant dense<0.000000e+00> : vector<65x65xf32>
    %359 = tpu.matmul %358, %269, %cst_67 {dimension_numbers = #tpu.dot_dimension_numbers<[1], [0], [0], [1], [0, 0, 1, 1], [], []>} : vector<65x32xf32>, vector<32x65xf32>, vector<65x65xf32> -> vector<65x65xf32>
    %cst_68 = arith.constant dense<0xFF800000> : vector<65xf32>
    %360 = vector.multi_reduction <maximumf>, %359, %cst_68 [1] : vector<65x65xf32> to vector<65xf32>
    %361 = vector.shape_cast %360 : vector<65xf32> to vector<65x1xf32>
    %362 = vector.broadcast %361 : vector<65x1xf32> to vector<65x65xf32>
    %363 = arith.subf %359, %362 : vector<65x65xf32>
    %364 = math.exp %363 : vector<65x65xf32>
    %cst_69 = arith.constant dense<0.000000e+00> : vector<65xf32>
    %365 = vector.multi_reduction <add>, %364, %cst_69 [1] : vector<65x65xf32> to vector<65xf32>
    %366 = vector.shape_cast %365 : vector<65xf32> to vector<65x1xf32>
    %367 = tpu.reciprocal %366 {approx = true} : vector<65x1xf32> -> vector<65x1xf32>
    %cst_70 = arith.constant 0.000000e+00 : f32
    %368 = vector.shape_cast %354 : vector<1x32xi1> to vector<1x32xi1>
    %369 = vector.broadcast %368 : vector<1x32xi1> to vector<65x32xi1>
    %370 = vector.broadcast %cst_70 : f32 to vector<65x32xf32>
    %371 = arith.select %369, %268, %370 : vector<65x32xi1>, vector<65x32xf32>
    %cst_71 = arith.constant dense<0.000000e+00> : vector<65x32xf32>
    %372 = tpu.matmul %364, %371, %cst_71 {dimension_numbers = #tpu.dot_dimension_numbers<[1], [0], [0], [1], [0, 0, 1, 1], [], []>} : vector<65x65xf32>, vector<65x32xf32>, vector<65x32xf32> -> vector<65x32xf32>
    %373 = vector.broadcast %367 : vector<65x1xf32> to vector<65x32xf32>
    %374 = arith.mulf %372, %373 : vector<65x32xf32>
    %375 = arith.addf %349, %374 : vector<65x32xf32>
    %c0_72 = arith.constant 0 : index
    %c0_73 = arith.constant 0 : index
    %376 = vector.load %arg7[%c0_72, %c0_73] : memref<32x32xf32, #tpu.memory_space<vmem>>, vector<32x32xf32>
    %cst_74 = arith.constant dense<0.000000e+00> : vector<65x32xf32>
    %377 = tpu.matmul %375, %376, %cst_74 {dimension_numbers = #tpu.dot_dimension_numbers<[1], [0], [0], [1], [0, 0, 1, 1], [], []>} : vector<65x32xf32>, vector<32x32xf32>, vector<65x32xf32> -> vector<65x32xf32>
    %c0_75 = arith.constant 0 : index
    %c0_76 = arith.constant 0 : index
    %378 = vector.load %arg8[%c0_75, %c0_76] : memref<1x32xf32, #tpu.memory_space<vmem>>, vector<1x32xf32>
    %379 = vector.shape_cast %378 : vector<1x32xf32> to vector<32xf32>
    %380 = vector.shape_cast %379 : vector<32xf32> to vector<1x32xf32>
    %381 = vector.broadcast %380 : vector<1x32xf32> to vector<65x32xf32>
    %382 = arith.addf %377, %381 : vector<65x32xf32>
    %383 = arith.addf %1, %382 : vector<65x32xf32>
    %c0_77 = arith.constant 0 : index
    %c0_78 = arith.constant 0 : index
    %384 = vector.load %arg9[%c0_77, %c0_78] : memref<1x32xf32, #tpu.memory_space<vmem>>, vector<1x32xf32>
    %385 = vector.shape_cast %384 : vector<1x32xf32> to vector<32xf32>
    %c0_79 = arith.constant 0 : index
    %c0_80 = arith.constant 0 : index
    %386 = vector.load %arg10[%c0_79, %c0_80] : memref<1x32xf32, #tpu.memory_space<vmem>>, vector<1x32xf32>
    %387 = vector.shape_cast %386 : vector<1x32xf32> to vector<32xf32>
    %cst_81 = arith.constant dense<0.000000e+00> : vector<65xf32>
    %388 = vector.multi_reduction <add>, %383, %cst_81 [1] : vector<65x32xf32> to vector<65xf32>
    %389 = vector.shape_cast %388 : vector<65xf32> to vector<65x1xf32>
    %cst_82 = arith.constant 3.200000e+01 : f32
    %390 = vector.broadcast %cst_82 : f32 to vector<65x1xf32>
    %391 = arith.divf %389, %390 : vector<65x1xf32>
    %392 = vector.broadcast %391 : vector<65x1xf32> to vector<65x32xf32>
    %393 = arith.subf %383, %392 : vector<65x32xf32>
    %394 = arith.mulf %393, %393 : vector<65x32xf32>
    %cst_83 = arith.constant dense<0.000000e+00> : vector<65xf32>
    %395 = vector.multi_reduction <add>, %394, %cst_83 [1] : vector<65x32xf32> to vector<65xf32>
    %396 = vector.shape_cast %395 : vector<65xf32> to vector<65x1xf32>
    %cst_84 = arith.constant 3.200000e+01 : f32
    %397 = vector.broadcast %cst_84 : f32 to vector<65x1xf32>
    %398 = arith.divf %396, %397 : vector<65x1xf32>
    %cst_85 = arith.constant 9.99999974E-6 : f32
    %399 = vector.broadcast %cst_85 : f32 to vector<65x1xf32>
    %400 = arith.addf %398, %399 : vector<65x1xf32>
    %401 = math.rsqrt %400 : vector<65x1xf32>
    %402 = vector.broadcast %401 : vector<65x1xf32> to vector<65x32xf32>
    %403 = arith.mulf %393, %402 : vector<65x32xf32>
    %404 = vector.shape_cast %385 : vector<32xf32> to vector<1x32xf32>
    %405 = vector.broadcast %404 : vector<1x32xf32> to vector<65x32xf32>
    %406 = arith.mulf %403, %405 : vector<65x32xf32>
    %407 = vector.shape_cast %387 : vector<32xf32> to vector<1x32xf32>
    %408 = vector.broadcast %407 : vector<1x32xf32> to vector<65x32xf32>
    %409 = arith.addf %406, %408 : vector<65x32xf32>
    %c0_86 = arith.constant 0 : index
    %c0_87 = arith.constant 0 : index
    %410 = vector.load %arg11[%c0_86, %c0_87] : memref<32x128xf32, #tpu.memory_space<vmem>>, vector<32x128xf32>
    %cst_88 = arith.constant dense<0.000000e+00> : vector<65x128xf32>
    %411 = tpu.matmul %409, %410, %cst_88 {dimension_numbers = #tpu.dot_dimension_numbers<[1], [0], [0], [1], [0, 0, 1, 1], [], []>} : vector<65x32xf32>, vector<32x128xf32>, vector<65x128xf32> -> vector<65x128xf32>
    %c0_89 = arith.constant 0 : index
    %c0_90 = arith.constant 0 : index
    %412 = vector.load %arg12[%c0_89, %c0_90] : memref<1x128xf32, #tpu.memory_space<vmem>>, vector<1x128xf32>
    %413 = vector.shape_cast %412 : vector<1x128xf32> to vector<128xf32>
    %414 = vector.shape_cast %413 : vector<128xf32> to vector<1x128xf32>
    %415 = vector.broadcast %414 : vector<1x128xf32> to vector<65x128xf32>
    %416 = arith.addf %411, %415 : vector<65x128xf32>
    %cst_91 = arith.constant 5.000000e-01 : f32
    %417 = vector.broadcast %cst_91 : f32 to vector<65x128xf32>
    %418 = arith.mulf %417, %416 : vector<65x128xf32>
    %cst_92 = arith.constant 0.707106769 : f32
    %419 = vector.broadcast %cst_92 : f32 to vector<65x128xf32>
    %420 = arith.mulf %416, %419 : vector<65x128xf32>
    %cst_93 = arith.constant 0.000000e+00 : f32
    %421 = vector.broadcast %cst_93 : f32 to vector<65x128xf32>
    %422 = arith.cmpf oge, %420, %421 : vector<65x128xf32>
    %cst_94 = arith.constant 1.000000e+00 : f32
    %cst_95 = arith.constant -1.000000e+00 : f32
    %423 = vector.broadcast %cst_94 : f32 to vector<65x128xf32>
    %424 = vector.broadcast %cst_95 : f32 to vector<65x128xf32>
    %425 = arith.select %422, %423, %424 : vector<65x128xi1>, vector<65x128xf32>
    %426 = math.absf %420 : vector<65x128xf32>
    %cst_96 = arith.constant 0.327591091 : f32
    %427 = vector.broadcast %cst_96 : f32 to vector<65x128xf32>
    %428 = arith.mulf %427, %426 : vector<65x128xf32>
    %cst_97 = arith.constant 1.000000e+00 : f32
    %429 = vector.broadcast %cst_97 : f32 to vector<65x128xf32>
    %430 = arith.addf %429, %428 : vector<65x128xf32>
    %431 = tpu.reciprocal %430 {approx = true} : vector<65x128xf32> -> vector<65x128xf32>
    %cst_98 = arith.constant 1.06140542 : f32
    %432 = vector.broadcast %cst_98 : f32 to vector<65x128xf32>
    %433 = arith.mulf %432, %431 : vector<65x128xf32>
    %cst_99 = arith.constant -1.45315206 : f32
    %434 = vector.broadcast %cst_99 : f32 to vector<65x128xf32>
    %435 = arith.addf %433, %434 : vector<65x128xf32>
    %436 = arith.mulf %435, %431 : vector<65x128xf32>
    %cst_100 = arith.constant 1.42141378 : f32
    %437 = vector.broadcast %cst_100 : f32 to vector<65x128xf32>
    %438 = arith.addf %436, %437 : vector<65x128xf32>
    %439 = arith.mulf %438, %431 : vector<65x128xf32>
    %cst_101 = arith.constant -0.284496725 : f32
    %440 = vector.broadcast %cst_101 : f32 to vector<65x128xf32>
    %441 = arith.addf %439, %440 : vector<65x128xf32>
    %442 = arith.mulf %441, %431 : vector<65x128xf32>
    %cst_102 = arith.constant 0.254829586 : f32
    %443 = vector.broadcast %cst_102 : f32 to vector<65x128xf32>
    %444 = arith.addf %442, %443 : vector<65x128xf32>
    %445 = arith.mulf %444, %431 : vector<65x128xf32>
    %cst_103 = arith.constant 0.000000e+00 : f32
    %446 = vector.broadcast %cst_103 : f32 to vector<65x128xf32>
    %447 = arith.subf %446, %426 : vector<65x128xf32>
    %448 = arith.mulf %447, %426 : vector<65x128xf32>
    %449 = math.exp %448 : vector<65x128xf32>
    %450 = arith.mulf %445, %449 : vector<65x128xf32>
    %cst_104 = arith.constant 1.000000e+00 : f32
    %451 = vector.broadcast %cst_104 : f32 to vector<65x128xf32>
    %452 = arith.subf %451, %450 : vector<65x128xf32>
    %453 = arith.mulf %425, %452 : vector<65x128xf32>
    %cst_105 = arith.constant 1.000000e+00 : f32
    %454 = vector.broadcast %cst_105 : f32 to vector<65x128xf32>
    %455 = arith.addf %454, %453 : vector<65x128xf32>
    %456 = arith.mulf %418, %455 : vector<65x128xf32>
    %c0_106 = arith.constant 0 : index
    %c0_107 = arith.constant 0 : index
    %457 = vector.load %arg13[%c0_106, %c0_107] : memref<128x32xf32, #tpu.memory_space<vmem>>, vector<128x32xf32>
    %cst_108 = arith.constant dense<0.000000e+00> : vector<65x32xf32>
    %458 = tpu.matmul %456, %457, %cst_108 {dimension_numbers = #tpu.dot_dimension_numbers<[1], [0], [0], [1], [0, 0, 1, 1], [], []>} : vector<65x128xf32>, vector<128x32xf32>, vector<65x32xf32> -> vector<65x32xf32>
    %c0_109 = arith.constant 0 : index
    %c0_110 = arith.constant 0 : index
    %459 = vector.load %arg14[%c0_109, %c0_110] : memref<1x32xf32, #tpu.memory_space<vmem>>, vector<1x32xf32>
    %460 = vector.shape_cast %459 : vector<1x32xf32> to vector<32xf32>
    %461 = vector.shape_cast %460 : vector<32xf32> to vector<1x32xf32>
    %462 = vector.broadcast %461 : vector<1x32xf32> to vector<65x32xf32>
    %463 = arith.addf %458, %462 : vector<65x32xf32>
    %464 = arith.addf %383, %463 : vector<65x32xf32>
    %c0_111 = arith.constant 0 : index
    %c0_112 = arith.constant 0 : index
    %c0_113 = arith.constant 0 : index
    %465 = vector.load %arg15[%c0_111, %c0_112, %c0_113] : memref<1x65x32xf32, #tpu.memory_space<vmem>>, vector<1x65x32xf32>
    %466 = vector.shape_cast %465 : vector<1x65x32xf32> to vector<65x32xf32>
    %467 = vector.shape_cast %464 : vector<65x32xf32> to vector<1x65x32xf32>
    tpu.vector_store %arg15[%c0_111, %c0_112, %c0_113], %467 {strides = array<i32>} : memref<1x65x32xf32, #tpu.memory_space<vmem>>, vector<1x65x32xf32>,
    return
  }
  func.func @transform_0(%arg0: i32) -> (i32, i32, i32) {
    %c0_i32 = arith.constant 0 : i32
    %c0_i32_0 = arith.constant 0 : i32
    %c0_i32_1 = arith.constant 0 : i32
    return %arg0, %c0_i32, %c0_i32_0 : i32, i32, i32
  }
  func.func @transform_1(%arg0: i32) -> (i32, i32) {
    %c0_i32 = arith.constant 0 : i32
    %c0_i32_0 = arith.constant 0 : i32
    %c0_i32_1 = arith.constant 0 : i32
    return %c0_i32, %c0_i32_0 : i32, i32
  }
  func.func @transform_2(%arg0: i32) -> (i32, i32) {
    %c0_i32 = arith.constant 0 : i32
    %c0_i32_0 = arith.constant 0 : i32
    %c0_i32_1 = arith.constant 0 : i32
    return %c0_i32, %c0_i32_0 : i32, i32
  }
  func.func @transform_3(%arg0: i32) -> (i32, i32) {
    %c0_i32 = arith.constant 0 : i32
    %c0_i32_0 = arith.constant 0 : i32
    %c0_i32_1 = arith.constant 0 : i32
    return %c0_i32, %c0_i32_0 : i32, i32
  }
  func.func @transform_4(%arg0: i32) -> (i32, i32) {
    %c0_i32 = arith.constant 0 : i32
    %c0_i32_0 = arith.constant 0 : i32
    %c0_i32_1 = arith.constant 0 : i32
    return %c0_i32, %c0_i32_0 : i32, i32
  }
  func.func @transform_5(%arg0: i32) -> (i32, i32) {
    %c0_i32 = arith.constant 0 : i32
    %c0_i32_0 = arith.constant 0 : i32
    %c0_i32_1 = arith.constant 0 : i32
    return %c0_i32, %c0_i32_0 : i32, i32
  }
  func.func @transform_6(%arg0: i32) -> (i32, i32) {
    %c0_i32 = arith.constant 0 : i32
    %c0_i32_0 = arith.constant 0 : i32
    %c0_i32_1 = arith.constant 0 : i32
    return %c0_i32, %c0_i32_0 : i32, i32
  }
  func.func @transform_7(%arg0: i32) -> (i32, i32) {
    %c0_i32 = arith.constant 0 : i32
    %c0_i32_0 = arith.constant 0 : i32
    %c0_i32_1 = arith.constant 0 : i32
    return %c0_i32, %c0_i32_0 : i32, i32
  }
  func.func @transform_8(%arg0: i32) -> (i32, i32) {
    %c0_i32 = arith.constant 0 : i32
    %c0_i32_0 = arith.constant 0 : i32
    %c0_i32_1 = arith.constant 0 : i32
    return %c0_i32, %c0_i32_0 : i32, i32
  }
  func.func @transform_9(%arg0: i32) -> (i32, i32) {
    %c0_i32 = arith.constant 0 : i32
    %c0_i32_0 = arith.constant 0 : i32
    %c0_i32_1 = arith.constant 0 : i32
    return %c0_i32, %c0_i32_0 : i32, i32
  }
  func.func @transform_10(%arg0: i32) -> (i32, i32) {
    %c0_i32 = arith.constant 0 : i32
    %c0_i32_0 = arith.constant 0 : i32
    %c0_i32_1 = arith.constant 0 : i32
    return %c0_i32, %c0_i32_0 : i32, i32
  }
  func.func @transform_11(%arg0: i32) -> (i32, i32) {
    %c0_i32 = arith.constant 0 : i32
    %c0_i32_0 = arith.constant 0 : i32
    %c0_i32_1 = arith.constant 0 : i32
    return %c0_i32, %c0_i32_0 : i32, i32
  }
  func.func @transform_12(%arg0: i32) -> (i32, i32) {
    %c0_i32 = arith.constant 0 : i32
    %c0_i32_0 = arith.constant 0 : i32
    %c0_i32_1 = arith.constant 0 : i32
    return %c0_i32, %c0_i32_0 : i32, i32
  }
  func.func @transform_13(%arg0: i32) -> (i32, i32) {
    %c0_i32 = arith.constant 0 : i32
    %c0_i32_0 = arith.constant 0 : i32
    %c0_i32_1 = arith.constant 0 : i32
    return %c0_i32, %c0_i32_0 : i32, i32
  }
  func.func @transform_14(%arg0: i32) -> (i32, i32, i32) {
    %c0_i32 = arith.constant 0 : i32
    %c0_i32_0 = arith.constant 0 : i32
    %c0_i32_1 = arith.constant 0 : i32
    return %arg0, %c0_i32, %c0_i32_0 : i32, i32, i32
  }
}

</mosaic_0001>

<bundles_post_ra>
// kernel: _lambda_.1
= control target key start
LH: loop header
LB: loop body
LE: loop exit
PB: predicated region body
PF: predicated region fallthrough
CT: control target
= control target key end

     0   :  { %s5849_s29 = smov 0   ;;  %s8685_s0 = inlined_call_operand.vmem [shape: f32[2,65,32], index: 0, kind: input, shape index: {}]   ;;  %s8686_s1 = inlined_call_operand.vmem [shape: f32[1,32], index: 1, kind: input, shape index: {}]   ;;  %s8687_s2 = inlined_call_operand.vmem [shape: f32[1,32], index: 2, kind: input, shape index: {}]   ;;  %s8688_s3 = inlined_call_operand.vmem [shape: f32[27,32], index: 3, kind: input, shape index: {}]   ;;  %s8689_s4 = inlined_call_operand.vmem [shape: f32[3,32], index: 4, kind: input, shape index: {}]   ;;  %s8690_s5 = inlined_call_operand.vmem [shape: f32[96,96], index: 5, kind: input, shape index: {}]   ;;  %s8691_s6 = inlined_call_operand.vmem [shape: f32[32,32], index: 6, kind: input, shape index: {}]   ;;  %s8692_s7 = inlined_call_operand.vmem [shape: f32[1,32], index: 7, kind: input, shape index: {}]   ;;  %s8693_s8 = inlined_call_operand.vmem [shape: f32[1,32], index: 8, kind: input, shape index: {}]   ;;  %s8694_s9 = inlined_call_operand.vmem [shape: f32[1,32], index: 9, kind: input, shape index: {}]   ;;  %s8695_s10 = inlined_call_operand.vmem [shape: f32[32,128], index: 10, kind: input, shape index: {}]   ;;  %s8696_s11 = inlined_call_operand.vmem [shape: f32[1,128], index: 11, kind: input, shape index: {}]   ;;  %s8697_s12 = inlined_call_operand.vmem [shape: f32[128,32], index: 12, kind: input, shape index: {}]   ;;  %s8698_s13 = inlined_call_operand.vmem [shape: f32[1,32], index: 13, kind: input, shape index: {}]   ;;  %s8699_s14 = inlined_call_operand.vmem [shape: f32[2,65,32], index: 14, kind: output, shape index: {}]  }
   0x1 LB: > { %s4340_s30 = sadd.s32 4294967295, %s5765_s29   ;;  %p4344_p0 = scmp.ge.s32.totalorder %s5765_s29, 1  ;;  %s5765_s29 = sphi %s5849_s29, %s24_s29  }
   0x2   : > { %p412_p1 = scmp.lt.s32.totalorder %s5765_s29, 3 }
   0x4   : > { %p413_p2 = pnand %p4344_p0, %p412_p1 }
   0x6   : > { %416 = sbr.rel (%p413_p2) target bundleno = 2718 (0xa9e), region = 76 }
   0xd   : > { %p458_p3 = scmp.lt.s32.totalorder %s4340_s30, 1  ;;  %vm479_vm0 = vcmask 261120   ;;  %vm504_vm1 = vcmask 253952   ;;  %v8701_v63 = vmov 0.0   ;;  %vm787_vm2 = vcmask 1040384   ;;  %s5769_s25 = smov 64  }
   0xe   : > { %629 = vst.msk [vmem:[#allocation2] sm:$0xff] %vm479_vm0, %v8701_v63  ;;  %630 = vst.msk [vmem:[#allocation2 + $0x8] sm:$0xff] %vm479_vm0, %v8701_v63  ;;  %vm942_vm4 = vcmask 1046528   ;;  %s5770_s26 = smov 32   ;;  %s5772_s22 = smov 96  }
   0xf   : > { %s8930_s30 = smov (!%p458_p3, %s4340_s30), 1  ;;  %631 = vst.msk [vmem:[#allocation2 + $0x50] sm:$0xff] %vm479_vm0, %v8701_v63  ;;  %632 = vst.msk [vmem:[#allocation2 + $0x58] sm:$0xff] %vm479_vm0, %v8701_v63 }
  0x10   : > { %s5469_s15 = smul.u32 72, %s8930_s30 }
  0x12   : > { %s5865_s18 = scalar_lea.vmem %s8685_s0, %s5469_s15  ;;  %s8653_s19 = scalar_lea.vmem %s8699_s14, %s5469_s15 }
  0x13   : > { %v468_v0 = vld [vmem:[%s5865_s18] sm:$0xff]  ;;  %v470_v1 = vld [vmem:[%s5865_s18 + $0x10] sm:$0xff]  ;;  %v469_v2 = vld [vmem:[%s5865_s18 + $0x8] sm:$0xff] }
  0x14   : > { %v480_v3 = vsel %vm479_vm0, %v468_v0, 0.0  ;;  %v486_v4 = vsel %vm479_vm0, %v470_v1, 0.0  ;;  %v471_v5 = vld [vmem:[%s5865_s18 + $0x18] sm:$0xff]  ;;  %v483_v6 = vsel %vm479_vm0, %v469_v2, 0.0  ;;  %v472_v8 = vld [vmem:[%s5865_s18 + $0x20] sm:$0xff]  ;;  %v473_v9 = vld [vmem:[%s5865_s18 + $0x28] sm:$0xff] }
  0x15   : > { %481 = vadd.xlane.f32.xlu0 %v480_v3  ;;  %487 = vadd.xlane.f32.xlu1 %v486_v4  ;;  %v489_v7 = vsel %vm479_vm0, %v471_v5, 0.0  ;;  %v492_v10 = vsel %vm479_vm0, %v472_v8, 0.0  ;;  %v495_v11 = vsel %vm479_vm0, %v473_v9, 0.0  ;;  %v474_v12 = vld [vmem:[%s5865_s18 + $0x30] sm:$0xff]  ;;  %v475_v13 = vld [vmem:[%s5865_s18 + $0x38] sm:$0xff]  ;;  %v641_v3 = vld [vmem:[#allocation2] sm:$0xff] }
  0x16   : > { %v498_v14 = vsel %vm479_vm0, %v474_v12, 0.0  ;;  %v501_v15 = vsel %vm479_vm0, %v475_v13, 0.0  ;;  %v476_v16 = vld [vmem:[%s5865_s18 + $0x40] sm:$0x1]  ;;  %v5944_v4 = vld [vmem:[#allocation2 + $0x8] sm:$0xff] }
  0x17   : > { %v505_v17 = vsel %vm504_vm1, %v476_v16, 0.0 }
  0x19   : > { %484 = vadd.xlane.f32.xlu0 %v483_v6  ;;  %490 = vadd.xlane.f32.xlu1 %v489_v7  ;;  %v788_v7 = vrot.slane %v641_v3, 7 }
  0x1d   : > { %493 = vadd.xlane.f32.xlu0 %v492_v10  ;;  %496 = vadd.xlane.f32.xlu1 %v495_v11 }
  0x21   : > { %499 = vadd.xlane.f32.xlu0 %v498_v14  ;;  %502 = vadd.xlane.f32.xlu1 %v501_v15 }
  0x25   : > { %506 = vadd.xlane.f32.xlu0 %v505_v17 }
  0xa2   : > { %v482_v18 = vpop.xlane.xlu0 %481  ;;  %v488_v19 = vpop.xlane.xlu1 %487 }
  0xa3   : > { %v509_v20 = vmul.f32 0.03125, %v482_v18  ;;  %v511_v21 = vmul.f32 0.03125, %v488_v19 }
  0xa5   : > { %v5885_v22 = vsub.f32 %v468_v0, %v509_v20  ;;  %v5887_v23 = vsub.f32 %v470_v1, %v511_v21  ;;  %v8700_v0 = vlaneseq }
  0xa6   : > { %v485_v24 = vpop.xlane.xlu0 %484  ;;  %v491_v25 = vpop.xlane.xlu1 %490 }
  0xa7   : > { %v510_v26 = vmul.f32 0.03125, %v485_v24  ;;  %v512_v27 = vmul.f32 0.03125, %v491_v25  ;;  %v527_v28 = vmul.f32 %v5885_v22, %v5885_v22  ;;  %v529_v29 = vmul.f32 %v5887_v23, %v5887_v23 }
  0xa8   : > { %v5939_v1 = vshrl.u32 %v8700_v0, 7 }
  0xa9   : > { %v5893_v30 = vsub.f32 %v469_v2, %v510_v26  ;;  %v5895_v31 = vsub.f32 %v471_v5, %v512_v27  ;;  %v536_v32 = vsel %vm479_vm0, %v527_v28, 0.0  ;;  %v542_v35 = vsel %vm479_vm0, %v529_v29, 0.0  ;;  %v5949_v5 = vld [vmem:[%s8688_s3] sm:$0xff] }
  0xaa   : > { %537 = vadd.xlane.f32.xlu1 %v536_v32  ;;  %v494_v33 = vpop.xlane.xlu0 %493  ;;  %v497_v34 = vpop.xlane.xlu1 %496  ;;  %v5942_v2 = vsub.s32 1, %v5939_v1  ;;  %v666_v6 = vand.u32 7, %v5939_v1  ;;  %v5981_v27 = vsub.s32 2, %v5939_v1  ;;  %v5984_v28 = vsub.s32 3, %v5939_v1 }
  0xab   : > { %v513_v36 = vmul.f32 0.03125, %v494_v33  ;;  %v514_v37 = vmul.f32 0.03125, %v497_v34  ;;  %v528_v38 = vmul.f32 %v5893_v30, %v5893_v30  ;;  %v530_v39 = vmul.f32 %v5895_v31, %v5895_v31  ;;  %v5989_v33 = vld [vmem:[%s8688_s3 + $0x10] sm:$0xff] }
  0xac   : > { %vm5958_vm3 = vcmp.ne.s32.totalorder %v666_v6, 0  ;;  %vm6119_vm5 = vcmp.ne.s32.totalorder %v666_v6, 7  ;;  %v6152_v63 = vadd.s32 32, %v5939_v1 }
  0xad   : > { %v5903_v40 = vsub.f32 %v472_v8, %v513_v36  ;;  %v5905_v41 = vsub.f32 %v473_v9, %v514_v37  ;;  %v539_v42 = vsel %vm479_vm0, %v528_v38, 0.0  ;;  %v545_v45 = vsel %vm479_vm0, %v530_v39, 0.0  ;;  %v5994_v36 = vld [vmem:[%s8688_s3 + $0x8] sm:$0xff] }
  0xae   : > { %543 = vadd.xlane.f32.xlu1 %v542_v35  ;;  %540 = vadd.xlane.f32.xlu0 %v539_v42  ;;  %v500_v43 = vpop.xlane.xlu0 %499  ;;  %v503_v44 = vpop.xlane.xlu1 %502  ;;  %v8703_v8 = vrot.slane %v5944_v4, 7  ;;  %v5954_v9 = vsub.s32 0, %v5939_v1  ;;  %v5998_v37 = vrot.slane %v5989_v33, %v5981_v27  ;;  %v6001_v38 = vsub.s32 6, %v5939_v1 }
  0xaf   : > { %v515_v46 = vmul.f32 0.03125, %v500_v43  ;;  %v516_v47 = vmul.f32 0.03125, %v503_v44  ;;  %v531_v48 = vmul.f32 %v5903_v40, %v5903_v40  ;;  %v532_v49 = vmul.f32 %v5905_v41, %v5905_v41 }
  0xb0   : > { %8754 = vst [vmem:[#allocation5_spill] sm:$0xff] %v5954_v9  ;;  %v790_v11 = vsel %vm787_vm2, %v788_v7, %v8703_v8  ;;  %8759 = vst [vmem:[#allocation8_spill] sm:$0xff] %v6001_v38  ;;  %v6005_v43 = vrot.slane %v5994_v36, %v5942_v2  ;;  %v6009_v44 = vrot.slane %v5989_v33, %v5984_v28 }
  0xb1   : > { %v5913_v50 = vsub.f32 %v474_v12, %v515_v46  ;;  %v5915_v51 = vsub.f32 %v475_v13, %v516_v47  ;;  %v548_v52 = vsel %vm479_vm0, %v531_v48, 0.0  ;;  %v551_v55 = vsel %vm479_vm0, %v532_v49, 0.0 }
  0xb2   : > { %546 = vadd.xlane.f32.xlu0 %v545_v45  ;;  %549 = vadd.xlane.f32.xlu1 %v548_v52  ;;  %v507_v53 = vpop.xlane.xlu0 %506  ;;  %v5967_v12 = vrot.slane %v5949_v5, %v5954_v9  ;;  %v5971_v13 = vrot.slane %v5949_v5, %v5942_v2  ;;  %v813_v14 = vsel %vm5958_vm3, %v790_v11, 0.0  ;;  %v6012_v47 = vsub.s32 4, %v5939_v1 }
  0xb3   : > { %v517_v54 = vmul.f32 0.03125, %v507_v53  ;;  %v533_v56 = vmul.f32 %v5913_v50, %v5913_v50  ;;  %v534_v57 = vmul.f32 %v5915_v51, %v5915_v51  ;;  %v6015_v48 = vsub.s32 5, %v5939_v1 }
  0xb4   : > { %8757 = vst [vmem:[#allocation6_spill] sm:$0xff] %v5967_v12  ;;  %8758 = vst [vmem:[#allocation7_spill] sm:$0xff] %v5971_v13  ;;  %v825_v15 = vmul.f32 %v5967_v12, %v813_v14  ;;  %v865_v53 = vmul.f32 %v5998_v37, %v813_v14  ;;  %v6035_v3 = vrot.slane %v5994_v36, %v5984_v28 }
  0xb5   : > { %v5923_v58 = vsub.f32 %v476_v16, %v517_v54  ;;  %v554_v59 = vsel %vm479_vm0, %v533_v56, 0.0  ;;  %v557_v60 = vsel %vm479_vm0, %v534_v57, 0.0  ;;  %v885_v16 = vmul.f32 %v5971_v13, %v5944_v4  ;;  %8760 = vst [vmem:[#allocation9_spill] sm:$0xff] %v6012_v47 }
  0xb6   : > { %552 = vadd.xlane.f32.xlu0 %v551_v55  ;;  %555 = vadd.xlane.f32.xlu1 %v554_v59  ;;  %v925_v54 = vmul.f32 %v6009_v44, %v5944_v4  ;;  %v6023_v56 = vrot.slane %v5989_v33, %v6001_v38  ;;  %v6039_v7 = vrot.slane %v5989_v33, %v6012_v47  ;;  %v6155_v55 = vadd.s32 40, %v5939_v1 }
  0xb7   : > { %8753 = vst [vmem:[#allocation4_spill] sm:$0xff] %v5923_v58  ;;  %v535_v61 = vmul.f32 %v5923_v58, %v5923_v58  ;;  %v5978_v17 = vadd.f32 %v885_v16, %v825_v15  ;;  %v6044_v15 = vld [vmem:[%s8686_s1] ss:$0 sm:$0xff] }
  0xb8   : > { %8764 = vst [vmem:[#allocation11_spill] sm:$0xff] %v6155_v55 }
  0xb9   : > { %v560_v62 = vsel %vm504_vm1, %v535_v61, 0.0  ;;  %v845_v61 = vmul.f32 %v6005_v43, %v813_v14 }
  0xba   : > { %558 = vadd.xlane.f32.xlu0 %v557_v60  ;;  %561 = vadd.xlane.f32.xlu1 %v560_v62  ;;  %v777_v60 = vld [vmem:[%s8688_s3 + $0x18] sm:$0x7]  ;;  %v6031_v62 = vrot.slane %v5949_v5, %v5981_v27 }
 0x137   : > { %v538_v18 = vpop.xlane.xlu1 %537 }
 0x138   : > { %v563_v19 = vmul.f32 0.03125, %v538_v18  ;;  %v6048_v18 = vrot.slane %v5989_v33, %v6015_v48 }
 0x13a   : > { %v572_v20 = vadd.f32 1e-05, %v563_v19  ;;  %v6052_v19 = vrot.slane %v5994_v36, %v5981_v27 }
 0x13b   : > { %v544_v21 = vpop.xlane.xlu1 %543  ;;  %v541_v24 = vpop.xlane.xlu0 %540 }
 0x13c   : > { %5525 = vrsqrt.f32 %v572_v20  ;;  %v565_v25 = vmul.f32 0.03125, %v544_v21  ;;  %v564_v26 = vmul.f32 0.03125, %v541_v24  ;;  %v6055_v24 = vadd.f32 %v925_v54, %v865_v53 }
 0x13d   : > { %v6092_v54 = vrot.slane %v777_v60, %v5954_v9 }
 0x13e   : > { %v574_v29 = vadd.f32 1e-05, %v565_v25  ;;  %v573_v32 = vadd.f32 1e-05, %v564_v26  ;;  %v6058_v25 = vsub.s32 7, %v5939_v1  ;;  %v6061_v26 = vrot.slane %v777_v60, %v5942_v2 }
 0x13f   : > { %v550_v34 = vpop.xlane.xlu1 %549  ;;  %v547_v35 = vpop.xlane.xlu0 %546 }
 0x140   : > { %5527 = vrsqrt.f32 %v574_v29  ;;  %v567_v39 = vmul.f32 0.03125, %v550_v34  ;;  %v566_v42 = vmul.f32 0.03125, %v547_v35  ;;  %8761 = vst [vmem:[#allocation10_spill] sm:$0xff] %v6058_v25  ;;  %v6066_v29 = vld [vmem:[%s8687_s2] ss:$0 sm:$0xff]  ;;  %v905_v34 = vmul.f32 %v6052_v19, %v5944_v4 }
 0x141   : > { %5529 = vrsqrt.f32 %v573_v32  ;;  %v6089_v53 = vrot.slane %v5989_v33, %v6058_v25 }
 0x142   : > { %v576_v45 = vadd.f32 1e-05, %v567_v39  ;;  %v575_v46 = vadd.f32 1e-05, %v566_v42  ;;  %v6076_v39 = vadd.s32 8, %v5939_v1  ;;  %v1589_v42 = vld [vmem:[%s8690_s5] sm:$0xff]  ;;  %v6113_v0 = vadd.f32 %v905_v34, %v845_v61 }
 0x143   : > { %v556_v49 = vpop.xlane.xlu1 %555  ;;  %v553_v52 = vpop.xlane.xlu0 %552  ;;  %v1593_v61 = vld [vmem:[%s8690_s5 + $0x20] sm:$0xff]  ;;  %v1594_v34 = vld [vmem:[%s8690_s5 + $0x28] sm:$0xff] }
 0x144   : > { %5531 = vrsqrt.f32 %v576_v45  ;;  %v569_v57 = vmul.f32 0.03125, %v556_v49  ;;  %v568_v59 = vmul.f32 0.03125, %v553_v52  ;;  %v1590_v45 = vld [vmem:[%s8690_s5 + $0x8] sm:$0xff] }
 0x145   : > { %5533 = vrsqrt.f32 %v575_v46  ;;  %v1591_v46 = vld [vmem:[%s8690_s5 + $0x10] sm:$0xff] }
 0x146   : > { %v5526_v11 = vpop.eup %5525  ;;  %v578_v14 = vadd.f32 1e-05, %v569_v57  ;;  %v577_v16 = vadd.f32 1e-05, %v568_v59  ;;  %v8704_v57 = vmov 0.0|0.0   ;;  %v5284_v59 = vpack.c.bf16 %v1590_v45, %v1589_v42 }
 0x147   : > { %v590_v20 = vmul.f32 %v5526_v11, %v5885_v22  ;;  %v559_v21 = vpop.xlane.xlu0 %558  ;;  %v6072_v22 = vrot.slane %v5994_v36, %v6012_v47  ;;  %5283 = vmatprep.subr.bf16.mxu0 %v8704_v57  ;;  %v1592_v11 = vld [vmem:[%s8690_s5 + $0x18] sm:$0xff]  ;;  %5301 = vmatprep.subr.bf16.mxu1 %v8704_v57  ;;  %v6111_v45 = vrot.slane %v777_v60, %v5981_v27  ;;  %v6125_v60 = vadd.s32 16, %v5939_v1 }
 0x148   : > { %5535 = vrsqrt.f32 %v578_v14  ;;  %v570_v32 = vmul.f32 0.03125, %v559_v21  ;;  %v6103_v21 = vrot.slane %v5994_v36, %v6015_v48  ;;  %5285 = vmatpush3.bf16.msra.mxu0 %v5284_v59  ;;  %v6140_v59 = vrot.slane %v5994_v36, %v6001_v38 }
 0x149   : > { %v605_v35 = vmul.f32 %v6044_v15, %v590_v20  ;;  %5537 = vrsqrt.f32 %v577_v16  ;;  %5286 = vmatprep.subr.bf16.mxu0 %v8704_v57  ;;  %v5290_v57 = vpack.c.bf16 %v1594_v34, %v1593_v61 }
 0x14a   : > { %v5528_v49 = vpop.eup %5527  ;;  %v579_v52 = vadd.f32 1e-05, %v570_v32  ;;  %v6107_v32 = vrot.slane %v5989_v33, %v5954_v9  ;;  %v6170_v9 = vadd.s32 48, %v5939_v1 }
 0x14b   : > { %v5530_v14 = vpop.eup %5529  ;;  %v620_v16 = vadd.f32 %v6066_v29, %v605_v35  ;;  %v592_v20 = vmul.f32 %v5528_v49, %v5887_v23  ;;  %v5287_v35 = vpack.c.bf16 %v1592_v11, %v1591_v46  ;;  %v6144_v11 = vrot.slane %v5994_v36, %v6058_v25 }
 0x14c   : > { %v591_v42 = vmul.f32 %v5530_v14, %v5893_v30  ;;  %5539 = vrsqrt.f32 %v579_v52  ;;  %v1442_v52 = vld [vmem:[%s8689_s4] sm:$0x7]  ;;  %v6147_v14 = vadd.s32 24, %v5939_v1  ;;  %v6161_v36 = vrot.slane %v5989_v33, %v5942_v2  ;;  %8765 = vst [vmem:[#allocation12_spill] sm:$0xff] %v6170_v9  ;;  %v1596_v33 = vld [vmem:[%s8690_s5 + $0x38] sm:$0xff] }
 0x14d   : > { %633 = vst.msk [vmem:[#allocation2 + $0x10] sm:$0xff] %vm479_vm0, %v620_v16  ;;  %v607_v23 = vmul.f32 %v6044_v15, %v592_v20  ;;  %5288 = vmatpush3.bf16.msra.mxu0 %v5287_v35  ;;  %v6182_v61 = vrot.slane %v1442_v52, %v5942_v2  ;;  %v8776_v25 = vrot.slane %v5944_v4, 1 }
 0x14e   : > { %v5532_v46 = vpop.eup %5531  ;;  %v606_v6 = vmul.f32 %v6044_v15, %v591_v42 }
 0x14f   : > { %v5534_v16 = vpop.eup %5533  ;;  %v622_v20 = vadd.f32 %v6066_v29, %v607_v23  ;;  %v594_v42 = vmul.f32 %v5532_v46, %v5903_v40  ;;  %v6166_v23 = vrot.slane %v1442_v52, %v5981_v27 }
 0x150   : > { %v621_v8 = vadd.f32 %v6066_v29, %v606_v6  ;;  %v593_v30 = vmul.f32 %v5534_v16, %v5895_v31  ;;  %v8766_v6 = vmov 0.0|0.0   ;;  %v1595_v31 = vld [vmem:[%s8690_s5 + $0x30] sm:$0xff]  ;;  %v6186_v16 = vadd.s32 56, %v5939_v1 }
 0x151   : > { %635 = vst.msk [vmem:[#allocation2 + $0x20] sm:$0xff] %vm479_vm0, %v622_v20  ;;  %v609_v40 = vmul.f32 %v6044_v15, %v594_v42  ;;  %5289 = vmatprep.subr.bf16.mxu0 %v8766_v6  ;;  %v6200_v1 = vrot.slane %v5949_v5, %v5984_v28 }
 0x152   : > { %v5536_v35 = vpop.eup %5535  ;;  %634 = vst.msk [vmem:[#allocation2 + $0x18] sm:$0xff] %vm479_vm0, %v621_v8  ;;  %v608_v27 = vmul.f32 %v6044_v15, %v593_v30  ;;  %8767 = vst [vmem:[#allocation13_spill] sm:$0xff] %v6186_v16  ;;  %v6192_v8 = vld [vmem:[#allocation2 + $0x50] sm:$0xff]  ;;  %5291 = vmatpush3.bf16.msra.mxu0 %v5290_v57 }
 0x153   : > { %v5538_v20 = vpop.eup %5537  ;;  %v624_v42 = vadd.f32 %v6066_v29, %v609_v40  ;;  %v596_v46 = vmul.f32 %v5536_v35, %v5913_v50  ;;  %8768 = vst [vmem:[#allocation14_spill] sm:$0xff] %v6192_v8  ;;  %8770 = vst [vmem:[#allocation16_spill] sm:$0xff] %v6200_v1  ;;  %v5293_v40 = vpack.c.bf16 %v1596_v33, %v1595_v31  ;;  %5292 = vmatprep.subr.bf16.mxu0 %v8766_v6 }
 0x154   : > { %v623_v30 = vadd.f32 %v6066_v29, %v608_v27  ;;  %v595_v2 = vmul.f32 %v5538_v20, %v5905_v41  ;;  %v6196_v52 = vld [vmem:[#allocation2 + $0x10] sm:$0xff]  ;;  %v8771_v27 = vand.u32 7, %v6076_v39  ;;  %v6220_v31 = vrot.slane %v5949_v5, %v6015_v48 }
 0x155   : > { %8769 = vst [vmem:[#allocation15_spill] sm:$0xff] %v6196_v52  ;;  %637 = vst.msk [vmem:[#allocation2 + $0x30] sm:$0xff] %vm479_vm0, %v624_v42  ;;  %v611_v50 = vmul.f32 %v6044_v15, %v596_v46  ;;  %v791_v35 = vrot.slane %v6196_v52, 7  ;;  %v944_v38 = vrot.slane %v6196_v52, 1  ;;  %v906_v10 = vmul.f32 %v6052_v19, %v6196_v52 }
 0x156   : > { %vm6208_vm6 = vcmp.ne.s32.totalorder %v8771_v27, 0  ;;  %636 = vst.msk [vmem:[#allocation2 + $0x28] sm:$0xff] %vm479_vm0, %v623_v30  ;;  %v610_v28 = vmul.f32 %v6044_v15, %v595_v2  ;;  %8774 = vst [vmem:[#allocation17_spill] sm:$0xff] %v6220_v31  ;;  %v5540_v33 = vpop.eup %5539  ;;  %v8775_v27 = vrot.slane %v5944_v4, 7  ;;  %v8777_v2 = vand.u32 7, %v6076_v39  ;;  %5294 = vmatpush3.bf16.msra.mxu0 %v5293_v40 }
 0x157   : > { %v626_v42 = vadd.f32 %v6066_v29, %v611_v50  ;;  %v945_v30 = vsel %vm942_vm4, %v8776_v25, %v944_v38  ;;  %v597_v50 = vmul.f32 %v5540_v33, %v5915_v51  ;;  %5295 = vmatprep.subr.bf16.mxu0 %v8766_v6 }
 0x158   : > { %v792_v20 = vsel %vm787_vm2, %v8775_v27, %v791_v35  ;;  %vm6231_vm7 = vcmp.ne.s32.totalorder %v8777_v2, 7  ;;  %v625_v48 = vadd.f32 %v6066_v29, %v610_v28  ;;  %v6238_v46 = vld [vmem:[#allocation2 + $0x20] sm:$0xff]  ;;  %v968_v27 = vsel %vm6119_vm5, %v945_v30, 0.0 }
 0x159   : > { %v6244_v4 = vsel %vm5958_vm3, %v792_v20, 0.0  ;;  %639 = vst.msk [vmem:[#allocation2 + $0x40] sm:$0xff] %vm479_vm0, %v626_v42  ;;  %v6247_v25 = vld [vmem:[#allocation2 + $0x18] sm:$0xff]  ;;  %v980_v28 = vmul.f32 %v6031_v62, %v968_v27  ;;  %v1000_v51 = vmul.f32 %v6035_v3, %v968_v27  ;;  %v1020_v33 = vmul.f32 %v6039_v7, %v968_v27 }
 0x15a   : > { %8780 = vst [vmem:[#allocation18_spill] sm:$0xff] %v6244_v4  ;;  %638 = vst.msk [vmem:[#allocation2 + $0x38] sm:$0xff] %vm479_vm0, %v625_v48  ;;  %v612_v30 = vmul.f32 %v6044_v15, %v597_v50  ;;  %v793_v40 = vrot.slane %v6247_v25, 7  ;;  %v946_v42 = vrot.slane %v6247_v25, 1  ;;  %v1151_v2 = vmul.f32 %v6023_v56, %v6196_v52 }
 0x15b   : > { %v6261_v5 = vadd.f32 %v980_v28, %v5978_v17  ;;  %v1028_v34 = vadd.f32 %v1020_v33, %v6055_v24  ;;  %v1091_v27 = vmul.f32 %v6048_v18, %v6244_v4  ;;  %v1008_v39 = vadd.f32 %v1000_v51, %v6113_v0 }
 0x15c   : > { %v627_v48 = vadd.f32 %v6066_v29, %v612_v30  ;;  %v794_v15 = vsel %vm787_vm2, %v791_v35, %v793_v40  ;;  %v947_v50 = vsel %vm942_vm4, %v944_v38, %v946_v42  ;;  %v8782_v47 = vrot.slane %v6238_v46, 1 }
 0x15d   : > { %8781 = vst [vmem:[#allocation19_spill] sm:$0xff] %v6261_v5  ;;  %v1099_v17 = vadd.f32 %v1091_v27, %v1028_v34  ;;  %v6277_v24 = vsel %vm6119_vm5, %v947_v50, 0.0  ;;  %v6281_v28 = vsel %vm5958_vm3, %v794_v15, 0.0  ;;  %v1071_v38 = vmul.f32 %v6072_v22, %v6244_v4 }
 0x15e   : > { %v6273_v6 = vsel %vm942_vm4, %v946_v42, %v8782_v47  ;;  %8783 = vst [vmem:[#allocation20_spill] sm:$0xff] %v6277_v24  ;;  %8784 = vst [vmem:[#allocation21_spill] sm:$0xff] %v6281_v28  ;;  %v1131_v47 = vmul.f32 %v6103_v21, %v6196_v52  ;;  %v886_v29 = vmul.f32 %v5971_v13, %v6196_v52  ;;  %v8786_v34 = vand.u32 7, %v6125_v60 }
 0x15f   : > { %v6286_v0 = vsel %vm6119_vm5, %v6273_v6, 0.0  ;;  %640 = vst.msk [vmem:[#allocation2 + $0x48] sm:$0xff] %vm479_vm0, %v627_v48  ;;  %v1159_v35 = vadd.f32 %v1151_v2, %v1099_v17  ;;  %v1223_v51 = vmul.f32 %v6089_v53, %v6277_v24  ;;  %v1354_v33 = vmul.f32 %v6061_v26, %v6247_v25 }
 0x160   : > { %8785 = vst [vmem:[#allocation22_spill] sm:$0xff] %v6286_v0  ;;  %vm6299_vm8 = vcmp.ne.s32.totalorder %v8786_v34, 0  ;;  %v6309_v30 = vmul.f32 %v6009_v44, %v6196_v52  ;;  %v1294_v42 = vmul.f32 %v6092_v54, %v6281_v28  ;;  %v1426_v27 = vmul.f32 %v6111_v45, %v6286_v0  ;;  %v6315_v34 = vld [vmem:[#allocation2 + $0x28] sm:$0xff] }
 0x161   : > { %v1079_v48 = vadd.f32 %v1071_v38, %v1008_v39  ;;  %v814_v2 = vsel %vm6208_vm6, %v792_v20, 0.0  ;;  %v1231_v17 = vadd.f32 %v1223_v51, %v1159_v35  ;;  %v795_v58 = vrot.slane %v6238_v46, 7 }
 0x162   : > { %v826_v5 = vmul.f32 %v5967_v12, %v814_v2  ;;  %v846_v52 = vmul.f32 %v6005_v43, %v814_v2  ;;  %v8789_v4 = vand.u32 7, %v6125_v60  ;;  %v1203_v39 = vmul.f32 %v6140_v59, %v6277_v24 }
 0x163   : > { %v1139_v1 = vadd.f32 %v1131_v47, %v1079_v48  ;;  %v1274_v20 = vmul.f32 %v6144_v11, %v6281_v28  ;;  %v969_v38 = vsel %vm6231_vm7, %v947_v50, 0.0  ;;  %v1302_v35 = vadd.f32 %v1294_v42, %v1231_v17 }
 0x164   : > { %vm6324_vm9 = vcmp.ne.s32.totalorder %v8789_v4, 7  ;;  %v894_v51 = vadd.f32 %v886_v29, %v826_v5  ;;  %v950_v16 = vrot.slane %v6315_v34, 1  ;;  %v981_v60 = vmul.f32 %v6031_v62, %v969_v38 }
 0x165   : > { %v1211_v4 = vadd.f32 %v1203_v39, %v1139_v1  ;;  %v1334_v9 = vmul.f32 %v6107_v32, %v6247_v25  ;;  %v914_v47 = vadd.f32 %v906_v10, %v846_v52  ;;  %v1001_v48 = vmul.f32 %v6035_v3, %v969_v38 }
 0x166   : > { %v1362_v24 = vadd.f32 %v1354_v33, %v1302_v35  ;;  %v6340_v55 = vsel %vm787_vm2, %v793_v40, %v795_v58  ;;  %v6342_v28 = vadd.f32 %v981_v60, %v894_v51  ;;  %v6346_v5 = vsel %vm6208_vm6, %v794_v15, 0.0 }
 0x167   : > { %8793 = vst [vmem:[#allocation24_spill] sm:$0xff] %v6346_v5  ;;  %v1282_v50 = vadd.f32 %v1274_v20, %v1211_v4  ;;  %v1009_v29 = vadd.f32 %v1001_v48, %v914_v47  ;;  %v1072_v1 = vmul.f32 %v6072_v22, %v6346_v5  ;;  %v6353_v52 = vsel %vm6231_vm7, %v6273_v6, 0.0 }
 0x168   : > { %8792 = vst [vmem:[#allocation23_spill] sm:$0xff] %v6342_v28  ;;  %8794 = vst [vmem:[#allocation25_spill] sm:$0xff] %v6353_v52  ;;  %v1434_v10 = vadd.f32 %v1426_v27, %v1362_v24  ;;  %v1406_v40 = vmul.f32 %v6161_v36, %v6286_v0  ;;  %v866_v33 = vmul.f32 %v5998_v37, %v814_v2  ;;  %v8795_v42 = vrot.slane %v6238_v46, 1  ;;  %v6373_v2 = vld [vmem:[#allocation2 + $0x30] sm:$0xff] }
 0x169   : > { %v1342_v39 = vadd.f32 %v1334_v9, %v1282_v50  ;;  %v1080_v20 = vadd.f32 %v1072_v1, %v1009_v29  ;;  %v1132_v35 = vmul.f32 %v6103_v21, %v6247_v25  ;;  %v6368_v51 = vsel %vm6208_vm6, %v6340_v55, 0.0 }
 0x16a   : > { %v6361_v17 = vsel %vm942_vm4, %v8795_v42, %v950_v16  ;;  %8796 = vst [vmem:[#allocation26_spill] sm:$0xff] %v6368_v51  ;;  %v1471_v24 = vadd.f32 %v6166_v23, %v1434_v10  ;;  %v1204_v27 = vmul.f32 %v6140_v59, %v6353_v52  ;;  %v815_v9 = vsel %vm6299_vm8, %v794_v15, 0.0 }
 0x16b   : > { %v1414_v4 = vadd.f32 %v1406_v40, %v1342_v39  ;;  %v1140_v47 = vadd.f32 %v1132_v35, %v1080_v20  ;;  %v827_v48 = vmul.f32 %v5967_v12, %v815_v9  ;;  %v847_v41 = vmul.f32 %v6005_v43, %v815_v9 }
 0x16c   : > { %v8797_v50 = vand.u32 7, %v6147_v14  ;;  %1519 = vrot.lane.b32.xlu1 %v1471_v24, %s5769_s25  ;;  %v1275_v1 = vmul.f32 %v6144_v11, %v6368_v51  ;;  %v6392_v15 = vsel %vm6231_vm7, %v6361_v17, 0.0  ;;  %v887_v10 = vmul.f32 %v5971_v13, %v6247_v25 }
 0x16d   : > { %8800 = vst [vmem:[#allocation27_spill] sm:$0xff] %v6392_v15  ;;  %v907_v40 = vmul.f32 %v6052_v19, %v6247_v25  ;;  %v1459_v42 = vadd.f32 %v6182_v61, %v1414_v4  ;;  %v1212_v39 = vadd.f32 %v1204_v27, %v1140_v47  ;;  %v8726_v20 = vrot.slane %v6373_v2, 1 }
 0x16e   : > { %vm6382_vm10 = vcmp.ne.s32.totalorder %v8797_v50, 0  ;;  %v6403_v35 = vsel %vm6324_vm9, %v6273_v6, 0.0  ;;  %v895_v24 = vadd.f32 %v887_v10, %v827_v48  ;;  %v8801_v0 = vand.u32 7, %v6147_v14 }
 0x16f   : > { %v915_v57 = vadd.f32 %v907_v40, %v847_v41  ;;  %v982_v50 = vmul.f32 %v6031_v62, %v6403_v35  ;;  %v1002_v60 = vmul.f32 %v6035_v3, %v6403_v35  ;;  %1487 = vrot.lane.b32.xlu0 %v1459_v42, %s5770_s26  ;;  %v1283_v27 = vadd.f32 %v1275_v1, %v1212_v39  ;;  %v6437_v40 = vld [vmem:[#allocation2 + $0x58] sm:$0xff] }
 0x170   : > { %vm6411_vm11 = vcmp.ne.s32.totalorder %v8801_v0, 7  ;;  %v1335_v6 = vmul.f32 %v6107_v32, %v6238_v46  ;;  %v8804_v47 = vrot.slane %v6315_v34, 7  ;;  %v6426_v14 = vsel %vm6299_vm8, %v6340_v55, 0.0  ;;  %8807 = vst [vmem:[#allocation30_spill] sm:$0xff] %v6437_v40 }
 0x171   : > { %8805 = vst [vmem:[#allocation28_spill] sm:$0xff] %v6426_v14  ;;  %v6431_v0 = vsel %vm942_vm4, %v950_v16, %v8726_v20  ;;  %v6433_v41 = vadd.f32 %v982_v50, %v895_v24  ;;  %v1010_v1 = vadd.f32 %v1002_v60, %v915_v57  ;;  %v1073_v10 = vmul.f32 %v6072_v22, %v6426_v14 }
 0x172   : > { %v6421_v48 = vsel %vm787_vm2, %v795_v58, %v8804_v47  ;;  %v1021_v58 = vmul.f32 %v6039_v7, %v969_v38  ;;  %v1343_v42 = vadd.f32 %v1335_v6, %v1283_v27  ;;  %v1407_v39 = vmul.f32 %v6161_v36, %v6392_v15 }
 0x173   : > { %8806 = vst [vmem:[#allocation29_spill] sm:$0xff] %v6433_v41  ;;  %v6445_v47 = vsel %vm6324_vm9, %v6361_v17, 0.0  ;;  %v1081_v16 = vadd.f32 %v1073_v10, %v1010_v1  ;;  %v1133_v60 = vmul.f32 %v6103_v21, %v6238_v46  ;;  %v6452_v24 = vsel %vm6299_vm8, %v6421_v48, 0.0 }
 0x174   : > { %8808 = vst [vmem:[#allocation31_spill] sm:$0xff] %v6445_v47  ;;  %8809 = vst [vmem:[#allocation32_spill] sm:$0xff] %v6452_v24  ;;  %v6456_v38 = vmul.f32 %v6107_v32, %v6192_v8  ;;  %v1415_v57 = vadd.f32 %v1407_v39, %v1343_v42  ;;  %v6461_v50 = vsel %vm6324_vm9, %v6431_v0, 0.0  ;;  %v934_v27 = vadd.f32 %v6309_v30, %v866_v33 }
 0x175   : > { %8811 = vst [vmem:[#allocation34_spill] sm:$0xff] %v6461_v50  ;;  %v867_v1 = vmul.f32 %v5998_v37, %v815_v9  ;;  %v1141_v10 = vadd.f32 %v1133_v60, %v1081_v16  ;;  %v1205_v49 = vmul.f32 %v6140_v59, %v6445_v47  ;;  %v1336_v20 = vmul.f32 %v6107_v32, %v6315_v34 }
 0x176   : > { %8810 = vst [vmem:[#allocation33_spill] sm:$0xff] %v6456_v38  ;;  %v1460_v42 = vadd.f32 %v6182_v61, %v1415_v57  ;;  %v1276_v31 = vmul.f32 %v6144_v11, %v6452_v24  ;;  %v1029_v39 = vadd.f32 %v1021_v58, %v934_v27  ;;  %v1092_v30 = vmul.f32 %v6048_v18, %v6346_v5  ;;  %v6484_v58 = vld [vmem:[#allocation2 + $0x38] sm:$0xff] }
 0x177   : > { %v1213_v33 = vadd.f32 %v1205_v49, %v1141_v10  ;;  %v1408_v9 = vmul.f32 %v6161_v36, %v6461_v50  ;;  %v816_v60 = vsel %vm6382_vm10, %v6340_v55, 0.0  ;;  %v1152_v6 = vmul.f32 %v6023_v56, %v6247_v25 }
 0x178   : > { %1489 = vrot.lane.b32.xlu1 %v1460_v42, %s5770_s26  ;;  %v1100_v57 = vadd.f32 %v1092_v30, %v1029_v39  ;;  %v828_v27 = vmul.f32 %v5967_v12, %v816_v60  ;;  %v848_v10 = vmul.f32 %v6005_v43, %v816_v60  ;;  %v8812_v49 = vand.u32 7, %v6152_v63 }
 0x179   : > { %v1284_v41 = vadd.f32 %v1276_v31, %v1213_v33  ;;  %v1224_v55 = vmul.f32 %v6089_v53, %v6353_v52  ;;  %v8815_v42 = vrot.slane %v6373_v2, 7  ;;  %v8816_v39 = vrot.slane %v6315_v34, 7 }
 0x17a   : > { %vm6490_vm12 = vcmp.ne.s32.totalorder %v8812_v49, 0  ;;  %v888_v28 = vmul.f32 %v5971_v13, %v6238_v46  ;;  %v1160_v5 = vadd.f32 %v1152_v6, %v1100_v57  ;;  %v908_v49 = vmul.f32 %v6052_v19, %v6238_v46 }
 0x17b   : > { %v6501_v30 = vsel %vm787_vm2, %v8816_v39, %v8815_v42  ;;  %v6510_v31 = vsel %vm6411_vm11, %v6361_v17, 0.0  ;;  %v6515_v33 = vsel %vm6382_vm10, %v6421_v48, 0.0  ;;  %v1344_v52 = vadd.f32 %v1336_v20, %v1284_v41 }
 0x17c   : > { %8817 = vst [vmem:[#allocation35_spill] sm:$0xff] %v6515_v33  ;;  %v896_v42 = vadd.f32 %v888_v28, %v828_v27  ;;  %v8734_v39 = vrot.slane %v6484_v58, 1  ;;  %v983_v6 = vmul.f32 %v6031_v62, %v6510_v31  ;;  %v1232_v57 = vadd.f32 %v1224_v55, %v1160_v5 }
 0x17d   : > { %v1295_v38 = vmul.f32 %v6092_v54, %v6368_v51  ;;  %v916_v40 = vadd.f32 %v908_v49, %v848_v10  ;;  %v1003_v17 = vmul.f32 %v6035_v3, %v6510_v31  ;;  %v8818_v8 = vand.u32 7, %v6152_v63 }
 0x17e   : > { %v1416_v28 = vadd.f32 %v1408_v9, %v1344_v52  ;;  %v1355_v20 = vmul.f32 %v6061_v26, %v6238_v46  ;;  %v6532_v41 = vadd.f32 %v983_v6, %v896_v42  ;;  %v1074_v5 = vmul.f32 %v6072_v22, %v6515_v33 }
 0x17f   : > { %vm6526_vm13 = vcmp.ne.s32.totalorder %v8818_v8, 7  ;;  %v1303_v27 = vadd.f32 %v1295_v38, %v1232_v57  ;;  %v1011_v10 = vadd.f32 %v1003_v17, %v916_v40  ;;  %v6539_v55 = vsel %vm6411_vm11, %v6431_v0, 0.0 }
 0x180   : > { %8821 = vst [vmem:[#allocation36_spill] sm:$0xff] %v6532_v41  ;;  %8822 = vst [vmem:[#allocation37_spill] sm:$0xff] %v6539_v55  ;;  %v6544_v63 = vsel %vm6382_vm10, %v6501_v30, 0.0  ;;  %v1022_v8 = vmul.f32 %v6039_v7, %v6403_v35  ;;  %v1461_v52 = vadd.f32 %v6182_v61, %v1416_v28  ;;  %v1427_v9 = vmul.f32 %v6111_v45, %v6392_v15 }
 0x181   : > { %8823 = vst [vmem:[#allocation38_spill] sm:$0xff] %v6544_v63  ;;  %v8824_v40 = vrot.slane %v6373_v2, 1  ;;  %v1363_v49 = vadd.f32 %v1355_v20, %v1303_v27  ;;  %v1082_v42 = vadd.f32 %v1074_v5, %v1011_v10  ;;  %v1134_v29 = vmul.f32 %v6103_v21, %v6315_v34  ;;  %v6579_v10 = vld [vmem:[#allocation2 + $0x40] sm:$0xff] }
 0x182   : > { %v927_v35 = vmul.f32 %v6009_v44, %v6247_v25  ;;  %1491 = vrot.lane.b32.xlu0 %v1461_v52, %s5770_s26  ;;  %v6564_v6 = vmul.f32 %v5998_v37, %v816_v60  ;;  %v1206_v57 = vmul.f32 %v6140_v59, %v6539_v55  ;;  %v1277_v17 = vmul.f32 %v6144_v11, %v6544_v63  ;;  %v8826_v52 = vld [vmem:[#allocation11_spill] sm:$0xff] }
 0x183   : > { %v6556_v38 = vsel %vm942_vm4, %v8824_v40, %v8734_v39  ;;  %v1337_v28 = vmul.f32 %v6107_v32, %v6373_v2  ;;  %v1435_v20 = vadd.f32 %v1427_v9, %v1363_v49  ;;  %v1142_v5 = vadd.f32 %v1134_v29, %v1082_v42 }
 0x184   : > { %v6575_v25 = vsel %vm6411_vm11, %v6556_v38, 0.0  ;;  %v935_v27 = vadd.f32 %v927_v35, %v867_v1  ;;  %v1093_v60 = vmul.f32 %v6048_v18, %v6426_v14  ;;  %v817_v40 = vsel %vm6490_vm12, %v6421_v48, 0.0  ;;  %vm7278_vm11 = vmpackc.low %vm479_vm0, %vm479_vm0 }
 0x185   : > { %8825 = vst [vmem:[#allocation39_spill] sm:$0xff] %v6575_v25  ;;  %v889_v9 = vmul.f32 %v5971_v13, %v6315_v34  ;;  %v1472_v49 = vadd.f32 %v6166_v23, %v1435_v20  ;;  %v1214_v4 = vadd.f32 %v1206_v57, %v1142_v5  ;;  %v829_v1 = vmul.f32 %v5967_v12, %v817_v40 }
 0x186   : > { %v1030_v42 = vadd.f32 %v1022_v8, %v935_v27  ;;  %v1409_v29 = vmul.f32 %v6161_v36, %v6575_v25  ;;  %v1153_v35 = vmul.f32 %v6023_v56, %v6238_v46  ;;  %v849_v39 = vmul.f32 %v6005_v43, %v817_v40 }
 0x187   : > { %v909_v48 = vmul.f32 %v6052_v19, %v6315_v34  ;;  %v8827_v15 = vand.u32 7, %v8826_v52  ;;  %1521 = vrot.lane.b32.xlu1 %v1472_v49, %s5769_s25  ;;  %v1285_v8 = vadd.f32 %v1277_v17, %v1214_v4  ;;  %v897_v20 = vadd.f32 %v889_v9, %v829_v1 }
 0x188   : > { %v1101_v57 = vadd.f32 %v1093_v60, %v1030_v42  ;;  %v8740_v5 = vrot.slane %v6579_v10, 1  ;;  %v1225_v27 = vmul.f32 %v6089_v53, %v6445_v47  ;;  %v8830_v41 = vrot.slane %v6484_v58, 7 }
 0x189   : > { %vm6598_vm14 = vcmp.ne.s32.totalorder %v8827_v15, 0  ;;  %v8831_v14 = vrot.slane %v6373_v2, 7  ;;  %v917_v15 = vadd.f32 %v909_v48, %v849_v39  ;;  %v6616_v49 = vsel %vm6526_vm13, %v6431_v0, 0.0 }
 0x18a   : > { %v1345_v17 = vadd.f32 %v1337_v28, %v1285_v8  ;;  %v1161_v60 = vadd.f32 %v1153_v35, %v1101_v57  ;;  %v984_v9 = vmul.f32 %v6031_v62, %v6616_v49  ;;  %v6623_v4 = vsel %vm6490_vm12, %v6501_v30, 0.0 }
 0x18b   : > { %v6611_v25 = vsel %vm787_vm2, %v8831_v14, %v8830_v41  ;;  %v8832_v42 = vand.u32 7, %v8826_v52  ;;  %v1023_v0 = vmul.f32 %v6039_v7, %v6510_v31  ;;  %v1296_v39 = vmul.f32 %v6092_v54, %v6452_v24  ;;  %v8840_v24 = vld [vmem:[#allocation12_spill] sm:$0xff] }
 0x18c   : > { %v8835_v41 = vrot.slane %v6484_v58, 1  ;;  %v1004_v52 = vmul.f32 %v6035_v3, %v6616_v49  ;;  %v1417_v1 = vadd.f32 %v1409_v29, %v1345_v17  ;;  %v1233_v35 = vadd.f32 %v1225_v27, %v1161_v60  ;;  %v8838_v17 = vld [vmem:[#allocation34_spill] sm:$0xff] }
 0x18d   : > { %vm6627_vm15 = vcmp.ne.s32.totalorder %v8832_v42, 7  ;;  %v1356_v48 = vmul.f32 %v6061_v26, %v6315_v34  ;;  %v6646_v8 = vadd.f32 %v984_v9, %v897_v20  ;;  %v1075_v57 = vmul.f32 %v6072_v22, %v6623_v4 }
 0x18e   : > { %v6640_v28 = vsel %vm942_vm4, %v8835_v41, %v8740_v5  ;;  %v1012_v31 = vadd.f32 %v1004_v52, %v917_v15  ;;  %v6653_v42 = vsel %vm6526_vm13, %v6556_v38, 0.0  ;;  %v6658_v41 = vsel %vm6490_vm12, %v6611_v25, 0.0 }
 0x18f   : > { %8836 = vst [vmem:[#allocation11_spill] sm:$0xff] %v6646_v8  ;;  %8837 = vst [vmem:[#allocation40_spill] sm:$0xff] %v6653_v42  ;;  %v1462_v29 = vadd.f32 %v6182_v61, %v1417_v1  ;;  %v1304_v27 = vadd.f32 %v1296_v39, %v1233_v35  ;;  %v1428_v20 = vmul.f32 %v6111_v45, %v8838_v17  ;;  %v6666_v15 = vsel %vm6526_vm13, %v6640_v28, 0.0 }
 0x190   : > { %8839 = vst [vmem:[#allocation41_spill] sm:$0xff] %v6666_v15  ;;  %v6669_v60 = vmul.f32 %v5998_v37, %v817_v40  ;;  %v1083_v9 = vadd.f32 %v1075_v57, %v1012_v31  ;;  %v1135_v16 = vmul.f32 %v6103_v21, %v6373_v2  ;;  %v928_v52 = vmul.f32 %v6009_v44, %v6238_v46 }
 0x191   : > { %1493 = vrot.lane.b32.xlu0 %v1462_v29, %s5770_s26  ;;  %v1364_v39 = vadd.f32 %v1356_v48, %v1304_v27  ;;  %v1207_v1 = vmul.f32 %v6140_v59, %v6653_v42  ;;  %v1278_v50 = vmul.f32 %v6144_v11, %v6658_v41  ;;  %v1338_v40 = vmul.f32 %v6107_v32, %v6484_v58  ;;  %v6687_v29 = vld [vmem:[#allocation2 + $0x48] sm:$0xff] }
 0x192   : > { %v1143_v35 = vadd.f32 %v1135_v16, %v1083_v9  ;;  %v1410_v31 = vmul.f32 %v6161_v36, %v6666_v15  ;;  %v936_v57 = vadd.f32 %v928_v52, %v6564_v6  ;;  %v1094_v46 = vmul.f32 %v6048_v18, %v6515_v33 }
 0x193   : > { %v1436_v48 = vadd.f32 %v1428_v20, %v1364_v39  ;;  %v1154_v27 = vmul.f32 %v6023_v56, %v6315_v34  ;;  %v6695_v9 = vsel %vm6598_vm14, %v6501_v30, 0.0  ;;  %v890_v52 = vmul.f32 %v5971_v13, %v6373_v2 }
 0x194   : > { %v1215_v16 = vadd.f32 %v1207_v1, %v1143_v35  ;;  %v1031_v17 = vadd.f32 %v1023_v0, %v936_v57  ;;  %v830_v6 = vmul.f32 %v5967_v12, %v6695_v9  ;;  %v8841_v20 = vand.u32 7, %v8840_v24 }
 0x195   : > { %v1473_v5 = vadd.f32 %v6166_v23, %v1436_v48  ;;  %v850_v30 = vmul.f32 %v6005_v43, %v6695_v9  ;;  %v910_v0 = vmul.f32 %v6052_v19, %v6373_v2  ;;  %v1226_v47 = vmul.f32 %v6089_v53, %v6539_v55 }
 0x196   : > { %vm6703_vm3 = vcmp.ne.s32.totalorder %v8841_v20, 0  ;;  %v1286_v35 = vadd.f32 %v1278_v50, %v1215_v16  ;;  %v1102_v57 = vadd.f32 %v1094_v46, %v1031_v17  ;;  %v6718_v20 = vsel %vm6627_vm15, %v6556_v38, 0.0 }
 0x197   : > { %1523 = vrot.lane.b32.xlu1 %v1473_v5, %s5769_s25  ;;  %v898_v48 = vadd.f32 %v890_v52, %v830_v6  ;;  %v918_v8 = vadd.f32 %v910_v0, %v850_v30  ;;  %v985_v33 = vmul.f32 %v6031_v62, %v6718_v20  ;;  %v1005_v1 = vmul.f32 %v6035_v3, %v6718_v20 }
 0x198   : > { %v1346_v50 = vadd.f32 %v1338_v40, %v1286_v35  ;;  %v1162_v17 = vadd.f32 %v1154_v27, %v1102_v57  ;;  %v8844_v46 = vrot.slane %v6579_v10, 7  ;;  %v8845_v16 = vrot.slane %v6484_v58, 7  ;;  %v562_v57 = vpop.xlane.xlu1 %561 }
 0x199   : > { %v6735_v38 = vsel %vm6598_vm14, %v6611_v25, 0.0  ;;  %v8846_v5 = vand.u32 7, %v8840_v24  ;;  %v8849_v40 = vrot.slane %v6687_v29, 1  ;;  %v8850_v27 = vrot.slane %v6579_v10, 1 }
 0x19a   : > { %v6730_v55 = vsel %vm787_vm2, %v8845_v16, %v8844_v46  ;;  %v6750_v30 = vadd.f32 %v985_v33, %v898_v48  ;;  %v1013_v0 = vadd.f32 %v1005_v1, %v918_v8  ;;  %v1076_v35 = vmul.f32 %v6072_v22, %v6735_v38 }
 0x19b   : > { %vm6739_vm5 = vcmp.ne.s32.totalorder %v8846_v5, 7  ;;  %v6748_v52 = vsel %vm942_vm4, %v8850_v27, %v8849_v40  ;;  %v1418_v46 = vadd.f32 %v1410_v31, %v1346_v50  ;;  %v1234_v24 = vadd.f32 %v1226_v47, %v1162_v17 }
 0x19c   : > { %8851 = vst [vmem:[#allocation12_spill] sm:$0xff] %v6750_v30  ;;  %v1297_v16 = vmul.f32 %v6092_v54, %v6544_v63  ;;  %v6759_v5 = vsel %vm6627_vm15, %v6640_v28, 0.0  ;;  %v1357_v40 = vmul.f32 %v6061_v26, %v6373_v2  ;;  %v1084_v33 = vadd.f32 %v1076_v35, %v1013_v0  ;;  %v8853_v35 = vld [vmem:[#allocation13_spill] sm:$0xff] }
 0x19d   : > { %v1136_v8 = vmul.f32 %v6103_v21, %v6484_v58  ;;  %v6768_v31 = vsel %vm6598_vm14, %v6730_v55, 0.0  ;;  %v1463_v47 = vadd.f32 %v6182_v61, %v1418_v46  ;;  %v6774_v48 = vsel %vm6627_vm15, %v6748_v52, 0.0 }
 0x19e   : > { %v1305_v1 = vadd.f32 %v1297_v16, %v1234_v24  ;;  %8852 = vst [vmem:[#allocation42_spill] sm:$0xff] %v6774_v48  ;;  %v929_v50 = vmul.f32 %v6009_v44, %v6315_v34  ;;  %v6778_v17 = vmul.f32 0.03125, %v562_v57  ;;  %v1024_v27 = vmul.f32 %v6039_v7, %v6616_v49  ;;  %v8857_v16 = vld [vmem:[#allocation39_spill] sm:$0xff]  ;;  %v8875_v24 = vld [vmem:[#allocation18_spill] sm:$0xff] }
 0x19f   : > { %v1144_v0 = vadd.f32 %v1136_v8, %v1084_v33  ;;  %v1208_v51 = vmul.f32 %v6140_v59, %v6759_v5  ;;  %v8854_v46 = vand.u32 7, %v8853_v35  ;;  %1495 = vrot.lane.b32.xlu0 %v1463_v47, %s5770_s26  ;;  %v1429_v34 = vmul.f32 %v6111_v45, %v8857_v16 }
 0x1a0   : > { %v1365_v14 = vadd.f32 %v1357_v40, %v1305_v1  ;;  %v1279_v57 = vmul.f32 %v6144_v11, %v6768_v31  ;;  %v937_v49 = vadd.f32 %v929_v50, %v6669_v60  ;;  %v1339_v63 = vmul.f32 %v6107_v32, %v6579_v10 }
 0x1a1   : > { %vm6786_vm6 = vcmp.ne.s32.totalorder %v8854_v46, 0  ;;  %v8858_v33 = vmov %v8854_v46  ;;  %v1216_v46 = vadd.f32 %v1208_v51, %v1144_v0  ;;  %v1411_v40 = vmul.f32 %v6161_v36, %v6774_v48 }
 0x1a2   : > { %vm6798_vm7 = vcmp.ne.s32.totalorder %v8858_v33, 7  ;;  %v819_v47 = vsel %vm6703_vm3, %v6611_v25, 0.0  ;;  %v1437_v1 = vadd.f32 %v1429_v34, %v1365_v14  ;;  %v1032_v16 = vadd.f32 %v1024_v27, %v937_v49 }
 0x1a3   : > { %v1095_v60 = vmul.f32 %v6048_v18, %v6623_v4  ;;  %v831_v50 = vmul.f32 %v5967_v12, %v819_v47  ;;  %v1287_v35 = vadd.f32 %v1279_v57, %v1216_v46  ;;  %v1155_v0 = vmul.f32 %v6023_v56, %v6373_v2 }
 0x1a4   : > { %v1227_v51 = vmul.f32 %v6089_v53, %v6653_v42  ;;  %v851_v33 = vmul.f32 %v6005_v43, %v819_v47  ;;  %v1474_v30 = vadd.f32 %v6166_v23, %v1437_v1  ;;  %v891_v25 = vmul.f32 %v5971_v13, %v6484_v58 }
 0x1a5   : > { %v1103_v48 = vadd.f32 %v1095_v60, %v1032_v16  ;;  %v911_v27 = vmul.f32 %v6052_v19, %v6484_v58  ;;  %v1347_v14 = vadd.f32 %v1339_v63, %v1287_v35  ;;  %v974_v34 = vsel %vm6739_vm5, %v6640_v28, 0.0 }
 0x1a6   : > { %v8751_v57 = vrot.slane %v6687_v29, 7  ;;  %v6829_v49 = vsel %vm6703_vm3, %v6730_v55, 0.0  ;;  %1525 = vrot.lane.b32.xlu1 %v1474_v30, %s5769_s25  ;;  %v899_v46 = vadd.f32 %v891_v25, %v831_v50  ;;  %v986_v60 = vmul.f32 %v6031_v62, %v974_v34 }
 0x1a7   : > { %v1163_v16 = vadd.f32 %v1155_v0, %v1103_v48  ;;  %v919_v1 = vadd.f32 %v911_v27, %v851_v33  ;;  %v870_v63 = vmul.f32 %v5998_v37, %v6695_v9  ;;  %v1419_v35 = vadd.f32 %v1411_v40, %v1347_v14  ;;  %v8863_v0 = vld [vmem:[#allocation16_spill] sm:$0xff]  ;;  %v8865_v27 = vld [vmem:[#allocation14_spill] sm:$0xff] }
 0x1a8   : > { %v1006_v28 = vmul.f32 %v6035_v3, %v974_v34  ;;  %v8861_v13 = vrot.slane %v6579_v10, 7  ;;  %v1298_v30 = vmul.f32 %v6092_v54, %v6658_v41  ;;  %v6843_v48 = vadd.f32 %v986_v60, %v899_v46 }
 0x1a9   : > { %v1235_v12 = vadd.f32 %v1227_v51, %v1163_v16  ;;  %v1464_v9 = vadd.f32 %v6182_v61, %v1419_v35  ;;  %v1358_v25 = vmul.f32 %v6061_v26, %v6484_v58  ;;  %v8866_v14 = vrot.slane %v8865_v27, 1 }
 0x1aa   : > { %v1037_v42 = vsel %vm787_vm2, %v8861_v13, %v8751_v57  ;;  %8862 = vst [vmem:[#allocation13_spill] sm:$0xff] %v6843_v48  ;;  %v1014_v40 = vadd.f32 %v1006_v28, %v919_v1  ;;  %v1077_v13 = vmul.f32 %v6072_v22, %v6829_v49  ;;  %v8867_v16 = vrot.slane %v6687_v29, 1 }
 0x1ab   : > { %v6847_v50 = vsel %vm6786_vm6, %v1037_v42, 0.0  ;;  %v1306_v51 = vadd.f32 %v1298_v30, %v1235_v12  ;;  %v6866_v1 = vsel %vm6739_vm5, %v6748_v52, 0.0  ;;  %1497 = vrot.lane.b32.xlu0 %v1464_v9, %s5770_s26  ;;  %v1137_v12 = vmul.f32 %v6103_v21, %v6579_v10  ;;  %v8869_v9 = vld [vmem:[#allocation30_spill] sm:$0xff] }
 0x1ac   : > { %v6852_v33 = vmul.f32 %v8863_v0, %v6847_v50  ;;  %v1169_v46 = vsel %vm942_vm4, %v8867_v16, %v8866_v14  ;;  %v1085_v60 = vadd.f32 %v1077_v13, %v1014_v40  ;;  %v6877_v28 = vsel %vm6703_vm3, %v1037_v42, 0.0  ;;  %v8868_v16 = vld [vmem:[#allocation17_spill] sm:$0xff] }
 0x1ad   : > { %v6873_v35 = vsel %vm6798_vm7, %v1169_v46, 0.0  ;;  %v1366_v30 = vadd.f32 %v1358_v25, %v1306_v51  ;;  %v1430_v14 = vmul.f32 %v6111_v45, %v6666_v15  ;;  %v8870_v40 = vrot.slane %v8869_v9, 1 }
 0x1ae   : > { %8864 = vst [vmem:[#allocation16_spill] sm:$0xff] %v6852_v33  ;;  %v6883_v57 = vmul.f32 %v8868_v16, %v6873_v35  ;;  %v8871_v13 = vrot.slane %v8865_v27, 1  ;;  %v1025_v48 = vmul.f32 %v6039_v7, %v6718_v20  ;;  %v1145_v39 = vadd.f32 %v1137_v12, %v1085_v60 }
 0x1af   : > { %v1209_v42 = vmul.f32 %v6140_v59, %v6866_v1  ;;  %v930_v51 = vmul.f32 %v6009_v44, %v6373_v2  ;;  %v580_v25 = vadd.f32 1e-05, %v6778_v17  ;;  %v1438_v15 = vadd.f32 %v1430_v14, %v1366_v30 }
 0x1b0   : > { %v1372_v33 = vsel %vm942_vm4, %v8871_v13, %v8870_v40  ;;  %v6900_v9 = vsel %vm6786_vm6, %v6730_v55, 0.0  ;;  %v1280_v40 = vmul.f32 %v6144_v11, %v6877_v28  ;;  %v6906_v20 = vsel %vm6739_vm5, %v1169_v46, 0.0 }
 0x1b1   : > { %v1217_v13 = vadd.f32 %v1209_v42, %v1145_v39  ;;  %v6911_v60 = vsel %vm6798_vm7, %v6748_v52, 0.0  ;;  %v938_v17 = vadd.f32 %v930_v51, %v870_v63  ;;  %v1475_v12 = vadd.f32 %v6166_v23, %v1438_v15 }
 0x1b2   : > { %v871_v30 = vmul.f32 %v5998_v37, %v819_v47  ;;  %v1340_v55 = vmul.f32 %v6107_v32, %v6687_v29  ;;  %v6919_v14 = vsel %vm6798_vm7, %v1372_v33, 0.0  ;;  %v1096_v39 = vmul.f32 %v6048_v18, %v6735_v38 }
 0x1b3   : > { %v1288_v6 = vadd.f32 %v1280_v40, %v1217_v13  ;;  %v1033_v46 = vadd.f32 %v1025_v48, %v938_v17  ;;  %v852_v52 = vmul.f32 %v6005_v43, %v6900_v9  ;;  %5541 = vrsqrt.f32 %v580_v25  ;;  %1527 = vrot.lane.b32.xlu1 %v1475_v12, %s5769_s25 }
 0x1b4   : > { %v1412_v15 = vmul.f32 %v6161_v36, %v6906_v20  ;;  %v1007_v32 = vmul.f32 %v6035_v3, %v6911_v60  ;;  %v912_v8 = vmul.f32 %v6052_v19, %v6579_v10  ;;  %v1156_v48 = vmul.f32 %v6023_v56, %v6484_v58 }
 0x1b5   : > { %v1348_v47 = vadd.f32 %v1340_v55, %v1288_v6  ;;  %v1104_v63 = vadd.f32 %v1096_v39, %v1033_v46  ;;  %v931_v43 = vmul.f32 %v6009_v44, %v6484_v58  ;;  %v1026_v33 = vmul.f32 %v6039_v7, %v974_v34 }
 0x1b6   : > { %v1027_v42 = vmul.f32 %v6039_v7, %v6911_v60  ;;  %v1228_v51 = vmul.f32 %v6089_v53, %v6759_v5  ;;  %v920_v3 = vadd.f32 %v912_v8, %v852_v52  ;;  %v1299_v19 = vmul.f32 %v6092_v54, %v6768_v31 }
 0x1b7   : > { %v1420_v25 = vadd.f32 %v1412_v15, %v1348_v47  ;;  %v1164_v40 = vadd.f32 %v1156_v48, %v1104_v63  ;;  %v939_v13 = vadd.f32 %v931_v43, %v871_v30  ;;  %v1359_v17 = vmul.f32 %v6061_v26, %v6579_v10 }
 0x1b8   : > { %v1015_v12 = vadd.f32 %v1007_v32, %v920_v3  ;;  %v1078_v34 = vmul.f32 %v6072_v22, %v6847_v50  ;;  %v8872_v55 = vrot.slane %v8865_v27, 7  ;;  %v8873_v7 = vrot.slane %v6687_v29, 7 }
 0x1b9   : > { %v1465_v46 = vadd.f32 %v6182_v61, %v1420_v25  ;;  %v1236_v39 = vadd.f32 %v1228_v51, %v1164_v40  ;;  %v1034_v52 = vadd.f32 %v1026_v33, %v939_v13  ;;  %v1097_v30 = vmul.f32 %v6048_v18, %v6829_v49  ;;  %v8874_v33 = vld [vmem:[#allocation42_spill] sm:$0xff] }
 0x1ba   : > { %v1240_v6 = vsel %vm787_vm2, %v8873_v7, %v8872_v55  ;;  %v1086_v15 = vadd.f32 %v1078_v34, %v1015_v12  ;;  %v1138_v32 = vmul.f32 %v6103_v21, %v6687_v29  ;;  %v872_v22 = vmul.f32 %v5998_v37, %v6900_v9 }
 0x1bb   : > { %v932_v8 = vmul.f32 %v6009_v44, %v6579_v10  ;;  %1499 = vrot.lane.b32.xlu0 %v1465_v46, %s5770_s26  ;;  %v1307_v47 = vadd.f32 %v1299_v19, %v1236_v39  ;;  %v6964_v63 = vsel %vm6786_vm6, %v1240_v6, 0.0  ;;  %v1105_v48 = vadd.f32 %v1097_v30, %v1034_v52  ;;  %v8876_v46 = vld [vmem:[#allocation19_spill] sm:$0xff] }
 0x1bc   : > { %v1157_v43 = vmul.f32 %v6023_v56, %v6579_v10  ;;  %v1431_v21 = vmul.f32 %v6111_v45, %v8874_v33  ;;  %v1146_v51 = vadd.f32 %v1138_v32, %v1086_v15  ;;  %v1210_v37 = vmul.f32 %v6140_v59, %v6873_v35 }
 0x1bd   : > { %v940_v3 = vadd.f32 %v932_v8, %v872_v22  ;;  %v1367_v44 = vadd.f32 %v1359_v17, %v1307_v47  ;;  %v1229_v40 = vmul.f32 %v6089_v53, %v6866_v1  ;;  %v1051_v19 = vmul.f32 %v8863_v0, %v8875_v24  ;;  %v5542_v13 = vpop.eup %5541  ;;  %v8877_v8 = vld [vmem:[#allocation33_spill] sm:$0xff]  ;;  %v8878_v47 = vld [vmem:[#allocation4_spill] sm:$0xff] }
 0x1be   : > { %v1165_v25 = vadd.f32 %v1157_v43, %v1105_v48  ;;  %v1218_v12 = vadd.f32 %v1210_v37, %v1146_v51  ;;  %v1281_v34 = vmul.f32 %v6144_v11, %v6964_v63  ;;  %v1098_v7 = vmul.f32 %v6048_v18, %v6847_v50  ;;  %v1597_v11 = vld [vmem:[%s8690_s5 + $0x40] sm:$0xff]  ;;  %v1598_v18 = vld [vmem:[%s8690_s5 + $0x48] sm:$0xff] }
 0x1bf   : > { %v1035_v55 = vadd.f32 %v1027_v42, %v940_v3  ;;  %v1439_v6 = vadd.f32 %v1431_v21, %v1367_v44  ;;  %v1300_v17 = vmul.f32 %v6092_v54, %v6877_v28  ;;  %v1059_v39 = vadd.f32 %v1051_v19, %v8876_v46  ;;  %v8879_v3 = vld [vmem:[#allocation24_spill] sm:$0xff] }
 0x1c0   : > { %v1237_v59 = vadd.f32 %v1229_v40, %v1165_v25  ;;  %v1289_v52 = vadd.f32 %v1281_v34, %v1218_v12  ;;  %v1413_v30 = vmul.f32 %v6161_v36, %v6919_v14  ;;  %v1158_v32 = vmul.f32 %v6023_v56, %v6687_v29  ;;  %v5741_v34 = vld [vmem:[%s8686_s1] ss:$0 sm:$0xff] }
 0x1c1   : > { %v1106_v15 = vadd.f32 %v1098_v7, %v1035_v55  ;;  %v1476_v50 = vadd.f32 %v6166_v23, %v1439_v6  ;;  %v1360_v22 = vmul.f32 %v6061_v26, %v6687_v29  ;;  %v598_v48 = vmul.f32 %v5542_v13, %v8878_v47 }
 0x1c2   : > { %v1308_v42 = vadd.f32 %v1300_v17, %v1237_v59  ;;  %v1349_v36 = vadd.f32 %v8877_v8, %v1289_v52  ;;  %v1230_v56 = vmul.f32 %v6089_v53, %v6873_v35  ;;  %v1432_v51 = vmul.f32 %v6111_v45, %v6906_v20  ;;  %v8880_v53 = vld [vmem:[#allocation23_spill] sm:$0xff]  ;;  %v1600_v17 = vld [vmem:[%s8690_s5 + $0x58] sm:$0xff]  ;;  %v8883_v52 = vld [vmem:[#allocation9_spill] sm:$0xff] }
 0x1c3   : > { %v1166_v43 = vadd.f32 %v1158_v32, %v1106_v15  ;;  %1529 = vrot.lane.b32.xlu1 %v1476_v50, %s5769_s25  ;;  %v5296_v37 = vpack.c.bf16 %v1598_v18, %v1597_v11  ;;  %v1052_v44 = vmul.f32 %v8863_v0, %v8879_v3  ;;  %v1301_v24 = vmul.f32 %v6092_v54, %v6964_v63  ;;  %v8884_v15 = vld [vmem:[#allocation29_spill] sm:$0xff]  ;;  %v5743_v11 = vld [vmem:[%s8687_s2] ss:$0 sm:$0xff]  ;;  %v8889_v3 = vld [vmem:[#allocation8_spill] sm:$0xff] }
 0x1c4   : > { %v1368_v21 = vadd.f32 %v1360_v22, %v1308_v42  ;;  %v1421_v25 = vadd.f32 %v1413_v30, %v1349_v36  ;;  %v1361_v19 = vmul.f32 %v6061_v26, %v8865_v27  ;;  %v613_v55 = vmul.f32 %v5741_v34, %v598_v48  ;;  %v8882_v27 = vld [vmem:[#allocation28_spill] sm:$0xff]  ;;  %v8886_v8 = vld [vmem:[#allocation35_spill] sm:$0xff]  ;;  %v8894_v34 = vld [vmem:[#allocation5_spill] sm:$0xff] }
 0x1c5   : > { %v1238_v40 = vadd.f32 %v1230_v56, %v1166_v43  ;;  %5297 = vmatpush3.bf16.msra.mxu0 %v5296_v37  ;;  %v7010_v35 = vadd.f32 %v1052_v44, %v8880_v53  ;;  %v1433_v6 = vmul.f32 %v6111_v45, %v6919_v14  ;;  %v8881_v54 = vmov 0.0|0.0   ;;  %v5742_v45 = vld [vmem:[%s8688_s3] sm:$0xff]  ;;  %v8888_v56 = vld [vmem:[#allocation36_spill] sm:$0xff]  ;;  %v8890_v44 = vld [vmem:[#allocation10_spill] sm:$0xff] }
 0x1c6   : > { %v1440_v13 = vadd.f32 %v1432_v51, %v1368_v21  ;;  %v1466_v12 = vadd.f32 %v6182_v61, %v1421_v25  ;;  %5298 = vmatprep.subr.bf16.mxu0 %v8881_v54  ;;  %v1053_v59 = vmul.f32 %v8863_v0, %v8882_v27  ;;  %v1599_v61 = vld [vmem:[%s8690_s5 + $0x50] sm:$0xff]  ;;  %v7034_v30 = vrot.slane %v5742_v45, %v8883_v52  ;;  %v8887_v48 = vld [vmem:[#allocation15_spill] sm:$0xff] }
 0x1c7   : > { %v1309_v7 = vadd.f32 %v1301_v24, %v1238_v40  ;;  %v7042_v18 = vadd.f32 %v5743_v11, %v613_v55  ;;  %v5299_v42 = vpack.c.bf16 %v1600_v17, %v1599_v61  ;;  %vm5771_vm4 = vmmov 0   ;;  %v8891_v40 = vld [vmem:[#allocation11_spill] sm:$0xff] }
 0x1c8   : > { %v1477_v26 = vadd.f32 %v6166_v23, %v1440_v13  ;;  %1501 = vrot.lane.b32.xlu0 %v1466_v12, %s5770_s26  ;;  %v7037_v32 = vadd.f32 %v1053_v59, %v8884_v15  ;;  %v8885_v22 = vmov 0.0   ;;  %v1054_v36 = vmul.f32 %v8863_v0, %v8886_v8  ;;  %v8892_v13 = vld [vmem:[#allocation6_spill] sm:$0xff]  ;;  %v8893_v12 = vld [vmem:[#allocation20_spill] sm:$0xff]  ;;  %v8897_v8 = vld [vmem:[#allocation13_spill] sm:$0xff] }
 0x1c9   : > { %v1369_v46 = vadd.f32 %v1361_v19, %v1309_v7  ;;  %4767 = vmatprep.mubr.msk.f32.mxu0 %vm5771_vm4, %v8885_v22  ;;  %5300 = vmatpush3.bf16.msra.mxu0 %v5299_v42  ;;  %v1111_v43 = vmul.f32 %v7034_v30, %v8887_v48  ;;  %v1055_v51 = vmul.f32 %v8863_v0, %v6623_v4  ;;  %v8899_v48 = vld [vmem:[#allocation7_spill] sm:$0xff]  ;;  %vm1551_vm8 = vcmask 523264  }
 0x1ca   : > { %1531 = vrot.lane.b32.xlu1 %v1477_v26, %s5769_s25  ;;  %v7054_v21 = vadd.f32 %v1054_v36, %v8888_v56  ;;  %5317 = vmatprep.subr.bf16.mxu0 %v8881_v54  ;;  %v7066_v25 = vrot.slane %v5742_v45, %v8890_v44  ;;  %v1115_v19 = vmul.f32 %v7034_v30, %v6373_v2  ;;  %v8895_v26 = vld [vmem:[#allocation40_spill] sm:$0xff]  ;;  %vm1560_vm9 = vcmask 785408  }
 0x1cb   : > { %v1441_v50 = vadd.f32 %v1433_v6, %v1369_v46  ;;  %v1119_v37 = vadd.f32 %v1111_v43, %v1059_v39  ;;  %4812 = vmatprep.mubr.msk.f32.mxu1 %vm5771_vm4, %v8885_v22  ;;  %v1063_v24 = vadd.f32 %v1055_v51, %v8891_v40  ;;  %v832_v53 = vmul.f32 %v8892_v13, %v6900_v9  ;;  %v5744_v39 = vld [vmem:[%s8688_s3 + $0x8] sm:$0xff]  ;;  %v8900_v40 = vld [vmem:[#allocation21_spill] sm:$0xff] }
 0x1cc   : > { %1570 = vrot.lane.b32.xlu0 %v7042_v18, %s5770_s26  ;;  %v1183_v4 = vmul.f32 %v8868_v16, %v8893_v12  ;;  %v7079_v55 = vrot.slane %v5744_v39, %v8894_v34  ;;  %v1056_v7 = vmul.f32 %v8863_v0, %v6735_v38  ;;  %v1187_v9 = vmul.f32 %v8868_v16, %v8895_v26  ;;  %v8896_v46 = vld [vmem:[#allocation12_spill] sm:$0xff] }
 0x1cd   : > { %v1478_v47 = vadd.f32 %v6166_v23, %v1441_v50  ;;  %v7063_v23 = vrot.slane %v5742_v45, %v8889_v3  ;;  %v1123_v6 = vadd.f32 %v1115_v19, %v1063_v24  ;;  %v1188_v27 = vmul.f32 %v8868_v16, %v6759_v5 }
 0x1ce   : > { %v987_v61 = vmul.f32 %v6031_v62, %v6911_v60  ;;  %v1191_v17 = vadd.f32 %v1183_v4, %v1119_v37  ;;  %v1064_v45 = vadd.f32 %v1056_v7, %v8896_v46  ;;  %v1116_v38 = vmul.f32 %v7034_v30, %v6484_v58 }
 0x1cf   : > { %1533 = vrot.lane.b32.xlu1 %v1478_v47, %s5769_s25  ;;  %v1259_v59 = vmul.f32 %v7063_v23, %v6768_v31  ;;  %v1195_v52 = vadd.f32 %v1187_v9, %v1123_v6  ;;  %v1258_v15 = vmul.f32 %v7063_v23, %v6658_v41  ;;  %v1391_v11 = vmul.f32 %v7079_v55, %v8874_v33  ;;  %v5746_v6 = vld [vmem:[#allocation2 + $0x18] sm:$0xff] }
 0x1d0   : > { %v1057_v5 = vmul.f32 %v8863_v0, %v6829_v49  ;;  %v1318_v31 = vmul.f32 %v7066_v25, %v6484_v58  ;;  %v1124_v62 = vadd.f32 %v1116_v38, %v1064_v45  ;;  %v1117_v60 = vmul.f32 %v7034_v30, %v6579_v10  ;;  %v8898_v49 = vld [vmem:[#allocation41_spill] sm:$0xff] }
 0x1d1   : > { %v1189_v50 = vmul.f32 %v8868_v16, %v6866_v1  ;;  %v1266_v42 = vadd.f32 %v1258_v15, %v1195_v52  ;;  %v1260_v41 = vmul.f32 %v7063_v23, %v6877_v28  ;;  %v1320_v33 = vmul.f32 %v7066_v25, %v6687_v29  ;;  %v5747_v45 = vld [vmem:[#allocation2 + $0x50] sm:$0xff] }
 0x1d2   : > { %v1065_v36 = vadd.f32 %v1057_v5, %v8897_v8  ;;  %v1390_v0 = vmul.f32 %v7079_v55, %v8898_v49  ;;  %v1196_v58 = vadd.f32 %v1188_v27, %v1124_v62  ;;  %v1392_v47 = vmul.f32 %v7079_v55, %v6906_v20  ;;  %v8903_v49 = vld [vmem:[#allocation25_spill] sm:$0xff] }
 0x1d3   : > { %1573 = vrot.lane.b32.xlu1 %v7042_v18, %s5769_s25  ;;  %v892_v43 = vmul.f32 %v8899_v48, %v6579_v10  ;;  %v1326_v1 = vadd.f32 %v1318_v31, %v1266_v42  ;;  %v1118_v51 = vmul.f32 %v7034_v30, %v6687_v29  ;;  %v1261_v28 = vmul.f32 %v7063_v23, %v6964_v63  ;;  %v5745_v29 = vld [vmem:[%s8689_s4] sm:$0x7] }
 0x1d4   : > { %v1125_v56 = vadd.f32 %v1117_v60, %v1065_v36  ;;  %v1267_v37 = vadd.f32 %v1259_v59, %v1196_v58  ;;  %v1319_v3 = vmul.f32 %v7066_v25, %v6579_v10  ;;  %v1254_v24 = vmul.f32 %v7063_v23, %v8900_v40  ;;  %v8901_v10 = vld [vmem:[#allocation16_spill] sm:$0xff] }
 0x1d5   : > { %v900_v44 = vadd.f32 %v892_v43, %v832_v53  ;;  %v7127_v20 = vadd.f32 %v1390_v0, %v1326_v1  ;;  %v7133_v63 = vrot.slane %v5745_v29, %v8894_v34  ;;  %v1314_v26 = vmul.f32 %v5746_v6, %v7066_v25  ;;  %v8902_v34 = vld [vmem:[#allocation22_spill] sm:$0xff]  ;;  %v5748_v1 = vld [vmem:[#allocation2 + $0x20] sm:$0xff] }
 0x1d6   : > { %v1197_v19 = vadd.f32 %v1189_v50, %v1125_v56  ;;  %v1327_v13 = vadd.f32 %v1319_v3, %v1267_v37  ;;  %v1262_v4 = vadd.f32 %v1254_v24, %v1191_v17  ;;  %v1321_v38 = vmul.f32 %v5747_v45, %v7066_v25  ;;  %v8905_v37 = vld [vmem:[#allocation27_spill] sm:$0xff]  ;;  %v8909_v45 = vld [vmem:[#allocation37_spill] sm:$0xff] }
 0x1d7   : > { %v995_v12 = vadd.f32 %v987_v61, %v900_v44  ;;  %v1386_v52 = vmul.f32 %v7079_v55, %v8902_v34  ;;  %v1393_v5 = vmul.f32 %v7079_v55, %v6919_v14  ;;  %v1112_v60 = vmul.f32 %v5746_v6, %v7034_v30 }
 0x1d8   : > { %v1268_v39 = vadd.f32 %v1260_v41, %v1197_v19  ;;  %v1399_v7 = vadd.f32 %v1391_v11, %v1327_v13  ;;  %v1322_v61 = vadd.f32 %v1314_v26, %v1262_v4  ;;  %v1184_v0 = vmul.f32 %v8868_v16, %v8903_v49  ;;  %v8906_v19 = vld [vmem:[#allocation31_spill] sm:$0xff]  ;;  %v5749_v26 = vld [vmem:[#allocation2 + $0x28] sm:$0xff] }
 0x1d9   : > { %v1066_v53 = vadd.f32 %v8901_v10, %v995_v12  ;;  %v1120_v36 = vadd.f32 %v1112_v60, %v7010_v35  ;;  %v1315_v35 = vmul.f32 %v5748_v1, %v7066_v25  ;;  %v1387_v3 = vmul.f32 %v7079_v55, %v8905_v37 }
 0x1da   : > { %v1328_v9 = vadd.f32 %v1320_v33, %v1268_v39  ;;  %v7138_v27 = vadd.f32 %v7133_v63, %v1399_v7  ;;  %v1394_v31 = vadd.f32 %v1386_v52, %v1322_v61  ;;  %v1185_v13 = vmul.f32 %v8868_v16, %v8906_v19  ;;  %v8907_v39 = vld [vmem:[#allocation32_spill] sm:$0xff] }
 0x1db   : > { %v1126_v59 = vadd.f32 %v1118_v51, %v1066_v53  ;;  %v1192_v58 = vadd.f32 %v1184_v0, %v1120_v36  ;;  %v1256_v29 = vmul.f32 %v7063_v23, %v8907_v39  ;;  %vm1578_vm10 = vcmask 778240  }
 0x1dc   : > { %v1400_v17 = vadd.f32 %v1392_v47, %v1328_v9  ;;  %v8904_v47 = vld [vmem:[#allocation26_spill] sm:$0xff]  ;;  %v1114_v9 = vmul.f32 %v5749_v26, %v7034_v30 }
 0x1dd   : > { %v1198_v46 = vadd.f32 %v6883_v57, %v1126_v59  ;;  %v1447_v57 = vadd.f32 %v7133_v63, %v1394_v31  ;;  %v1255_v48 = vmul.f32 %v7063_v23, %v8904_v47  ;;  %v8910_v31 = vld [vmem:[#allocation38_spill] sm:$0xff] }
 0x1de   : > { %v7145_v15 = vadd.f32 %v7133_v63, %v1400_v17  ;;  %v1520_v42 = vpop.permute.xlu1 %1519  ;;  %v1122_v61 = vadd.f32 %v1114_v9, %v7054_v21  ;;  %v8908_v17 = vld [vmem:[#allocation34_spill] sm:$0xff] }
 0x1df   : > { %v1269_v11 = vadd.f32 %v1261_v28, %v1198_v46  ;;  %v1263_v43 = vadd.f32 %v1255_v48, %v1192_v58  ;;  %v1113_v28 = vmul.f32 %v5748_v1, %v7034_v30  ;;  %v1388_v46 = vmul.f32 %v7079_v55, %v8908_v17 }
 0x1e1   : > { %v1329_v62 = vadd.f32 %v1321_v38, %v1269_v11  ;;  %v1488_v8 = vpop.permute.xlu0 %1487  ;;  %v1323_v51 = vadd.f32 %v1315_v35, %v1263_v43  ;;  %v1121_v44 = vadd.f32 %v1113_v28, %v7037_v32  ;;  %v1316_v32 = vmul.f32 %v5749_v26, %v7066_v25 }
 0x1e2   : > { %v1543_v33 = vsel %vm479_vm0, %v1447_v57, %v1488_v8  ;;  %v1186_v38 = vmul.f32 %v8868_v16, %v8909_v45  ;;  %v1317_v16 = vmul.f32 %v7066_v25, %v6373_v2  ;;  %v8911_v8 = vld [vmem:[#allocation39_spill] sm:$0xff] }
 0x1e3   : > { %v1401_v50 = vadd.f32 %v1393_v5, %v1329_v62  ;;  %v1552_v14 = vsel %vm1551_vm8, %v1543_v33, %v1520_v42  ;;  %v1395_v24 = vadd.f32 %v1387_v3, %v1323_v51  ;;  %v1193_v12 = vadd.f32 %v1185_v13, %v1121_v44 }
 0x1e4   : > { %1561 = vst.msk [vmem:[#allocation3] sm:$0xff] %vm1560_vm9, %v1552_v14  ;;  %v1194_v52 = vadd.f32 %v1186_v38, %v1122_v61  ;;  %v1257_v62 = vmul.f32 %v7063_v23, %v8910_v31  ;;  %v1389_v23 = vmul.f32 %v7079_v55, %v8911_v8  ;;  %v1451_v55 = vadd.f32 %v7133_v63, %v7127_v20 }
 0x1e5   : > { %v7153_v41 = vadd.f32 %v7133_v63, %v1401_v50  ;;  %v1448_v4 = vadd.f32 %v7133_v63, %v1395_v24  ;;  %v1264_v10 = vadd.f32 %v1256_v29, %v1193_v12 }
 0x1e6   : > { %v1265_v21 = vadd.f32 %v1257_v62, %v1194_v52 }
 0x1e7   : > { %v1324_v59 = vadd.f32 %v1316_v32, %v1264_v10 }
 0x1e8   : > { %v1325_v57 = vadd.f32 %v1317_v16, %v1265_v21 }
 0x1e9   : > { %v1396_v34 = vadd.f32 %v1388_v46, %v1324_v59 }
 0x1ea   : > { %v1490_v40 = vpop.permute.xlu1 %1489  ;;  %v1397_v36 = vadd.f32 %v1389_v23, %v1325_v57 }
 0x1eb   : > { %v1580_v56 = vld [vmem:[#allocation3] sm:$0xff]  ;;  %v1544_v7 = vsel %vm479_vm0, %v1448_v4, %v1490_v40  ;;  %v1449_v30 = vadd.f32 %v7133_v63, %v1396_v34 }
 0x1ec   : > { %4768 = vmatmul.mubr.msk.f32.vlgmr.msra.gmra.mrb[0].mxu0 %vm1560_vm9, %v1580_v56  ;;  %v1450_v49 = vadd.f32 %v7133_v63, %v1397_v36 }
 0x1ed   : > { %4770 = vmatprep.mubr.msk.f32.mxu0 %vm5771_vm4, %v8885_v22 }
 0x1f4   : > { %v1492_v5 = vpop.permute.xlu0 %1491 }
 0x1f5   : > { %v1545_v60 = vsel %vm479_vm0, %v1449_v30, %v1492_v5 }
 0x1f9   : > { %v1522_v53 = vpop.permute.xlu1 %1521 }
 0x1fa   : > { %v1553_v6 = vsel %vm1551_vm8, %v1544_v7, %v1522_v53 }
 0x1fb   : > { %1562 = vst.msk [vmem:[#allocation3 + $0x8] sm:$0xff] %vm1560_vm9, %v1553_v6 }
 0x202   : > { %v1581_v11 = vld [vmem:[#allocation3 + $0x8] sm:$0xff] }
 0x203   : > { %4771 = vmatmul.mubr.msk.f32.gmra.mrb[2].mxu0 %vm1560_vm9, %v1581_v11  ;;  %v1494_v14 = vpop.permute.xlu0 %1493 }
 0x204   : > { %4773 = vmatprep.mubr.msk.f32.mxu0 %vm5771_vm4, %v8885_v22  ;;  %v1546_v2 = vsel %vm479_vm0, %v1450_v49, %v1494_v14 }
 0x209   : > { %v1524_v50 = vpop.permute.xlu1 %1523 }
 0x20a   : > { %v1554_v42 = vsel %vm1551_vm8, %v1545_v60, %v1524_v50 }
 0x20b   : > { %1563 = vst.msk [vmem:[#allocation3 + $0x10] sm:$0xff] %vm1560_vm9, %v1554_v42 }
 0x211   : > { %v1496_v58 = vpop.permute.xlu0 %1495 }
 0x212   : > { %v1582_v33 = vld [vmem:[#allocation3 + $0x10] sm:$0xff]  ;;  %v1547_v48 = vsel %vm479_vm0, %v1451_v55, %v1496_v58 }
 0x213   : > { %4774 = vmatmul.mubr.msk.f32.gmra.mrb[4].mxu0 %vm1560_vm9, %v1582_v33 }
 0x214   : > { %4776 = vmatprep.mubr.msk.f32.mxu0 %vm5771_vm4, %v8885_v22 }
 0x218   : > { %v1526_v25 = vpop.permute.xlu1 %1525 }
 0x219   : > { %v1555_v0 = vsel %vm1551_vm8, %v1546_v2, %v1526_v25 }
 0x21a   : > { %1564 = vst.msk [vmem:[#allocation3 + $0x18] sm:$0xff] %vm1560_vm9, %v1555_v0 }
 0x21d   : > { %v1498_v35 = vpop.permute.xlu0 %1497 }
 0x21e   : > { %v1548_v20 = vsel %vm479_vm0, %v7138_v27, %v1498_v35 }
 0x221   : > { %v1583_v47 = vld [vmem:[#allocation3 + $0x18] sm:$0xff] }
 0x222   : > { %4777 = vmatmul.mubr.msk.f32.gmra.mrb[6].mxu0 %vm1560_vm9, %v1583_v47 }
 0x223   : > { %4779 = vmatprep.mubr.msk.f32.mxu0 %vm5771_vm4, %v8885_v22 }
 0x225   : > { %v1528_v43 = vpop.permute.xlu1 %1527 }
 0x226   : > { %v1556_v1 = vsel %vm1551_vm8, %v1547_v48, %v1528_v43 }
 0x227   : > { %1565 = vst.msk [vmem:[#allocation3 + $0x20] sm:$0xff] %vm1560_vm9, %v1556_v1  ;;  %v8914_v1 = vlaneseq }
 0x229   : > { %v7305_v35 = vand.u32 127, %v8914_v1 }
 0x22b   : > { %vm1741_vm12 = vcmp.lt.s32.totalorder %v7305_v35, 8  ;;  %vm2222_vm14 = vcmp.ge.s32.totalorder %v7305_v35, 8  ;;  %vm2223_vm15 = vcmp.lt.s32.totalorder %v7305_v35, 16  ;;  %vm2630_vm5 = vcmp.ge.s32.totalorder %v7305_v35, 16 }
 0x22c   : > { %vm7315_vm13 = vmpackc.low %vm1741_vm12, %vm1741_vm12  ;;  %vm2631_vm6 = vcmp.lt.s32.totalorder %v7305_v35, 24 }
 0x22d   : > { %v1500_v63 = vpop.permute.xlu0 %1499  ;;  %vm7410_vm3 = vmand %vm2222_vm14, %vm2223_vm15  ;;  %vm1961_vm14 = vcmask 524288  }
 0x22e   : > { %v1584_v56 = vld [vmem:[#allocation3 + $0x20] sm:$0xff]  ;;  %v1549_v37 = vsel %vm479_vm0, %v7145_v15, %v1500_v63  ;;  %vm7489_vm7 = vmand %vm2630_vm5, %vm2631_vm6 }
 0x22f   : > { %4780 = vmatmul.mubr.msk.f32.gmra.mrb[8].mxu0 %vm1560_vm9, %v1584_v56  ;;  %vm7804_vm15 = vmpackc.low %vm7410_vm3, %vm7410_vm3 }
 0x230   : > { %4782 = vmatprep.mubr.msk.f32.mxu0 %vm5771_vm4, %v8885_v22 }
 0x235   : > { %v1530_v51 = vpop.permute.xlu1 %1529 }
 0x236   : > { %v1557_v28 = vsel %vm1551_vm8, %v1548_v20, %v1530_v51 }
 0x237   : > { %1566 = vst.msk [vmem:[#allocation3 + $0x28] sm:$0xff] %vm1560_vm9, %v1557_v28 }
 0x23a   : > { %v1502_v3 = vpop.permute.xlu0 %1501 }
 0x23b   : > { %v1550_v27 = vsel %vm479_vm0, %v7153_v41, %v1502_v3 }
 0x23c   : > { %v1532_v44 = vpop.permute.xlu1 %1531 }
 0x23d   : > { %v1558_v40 = vsel %vm1551_vm8, %v1549_v37, %v1532_v44 }
 0x23e   : > { %1567 = vst.msk [vmem:[#allocation3 + $0x30] sm:$0xff] %vm1560_vm9, %v1558_v40  ;;  %v1585_v24 = vld [vmem:[#allocation3 + $0x28] sm:$0xff]  ;;  %v1571_v13 = vpop.permute.xlu0 %1570 }
 0x23f   : > { %4783 = vmatmul.mubr.msk.f32.gmra.mrb[10].mxu0 %vm1560_vm9, %v1585_v24  ;;  %v1576_v15 = vsel %vm479_vm0, %v7042_v18, %v1571_v13 }
 0x240   : > { %4785 = vmatprep.mubr.msk.f32.mxu0 %vm5771_vm4, %v8885_v22 }
 0x241   : > { %v1534_v19 = vpop.permute.xlu1 %1533 }
 0x242   : > { %v1559_v12 = vsel %vm1551_vm8, %v1550_v27, %v1534_v19 }
 0x243   : > { %1568 = vst.msk [vmem:[#allocation3 + $0x38] sm:$0xff] %vm1560_vm9, %v1559_v12 }
 0x245   : > { %v1574_v4 = vpop.permute.xlu1 %1573  ;;  %v1586_v39 = vld [vmem:[#allocation3 + $0x30] sm:$0xff] }
 0x246   : > { %v1577_v29 = vsel %vm1551_vm8, %v1576_v15, %v1574_v4  ;;  %4786 = vmatmul.mubr.msk.f32.gmra.mrb[12].mxu0 %vm1560_vm9, %v1586_v39  ;;  %vm3038_vm8 = vcmp.ge.s32.totalorder %v7305_v35, 24 }
 0x247   : > { %1579 = vst.msk [vmem:[#allocation3 + $0x40] sm:$0x1] %vm1578_vm10, %v1577_v29  ;;  %4788 = vmatprep.mubr.msk.f32.mxu0 %vm5771_vm4, %v8885_v22 }
 0x24a   : > { %v1587_v41 = vld [vmem:[#allocation3 + $0x38] sm:$0xff] }
 0x24b   : > { %4789 = vmatmul.mubr.msk.f32.gmra.mrb[14].mxu0 %vm1560_vm9, %v1587_v41 }
 0x24c   : > { %4791 = vmatprep.mubr.msk.f32.mxu0 %vm5771_vm4, %v8885_v22 }
 0x24e   : > { %v1588_v7 = vld [vmem:[#allocation3 + $0x40] sm:$0x1] }
 0x24f   : > { %4792 = vmatmul.mubr.msk.f32.gmra.mrb[16].mxu0 %vm1560_vm9, %v1588_v7  ;;  %vm3039_vm9 = vcmp.lt.s32.totalorder %v7305_v35, 32 }
 0x250   : > { %4857 = vmatprep.mubr.msk.f32.mxu0 %vm5771_vm4, %v8885_v22  ;;  %vm7568_vm10 = vmand %vm3038_vm8, %vm3039_vm9 }
 0x2bf   : > { %v7243_v18 = vpop.f32.mrb[0].mxu0 }
 0x2c0   : > { %v4769_v10 = vpop.f32.mrb[1].mxu0  ;;  %v1745_v13 = vsel %vm1741_vm12, %v7243_v18, 0.0 }
 0x2d6   : > { %v7245_v53 = vpop.f32.mrb[2].mxu0 }
 0x2d7   : > { %v4772_v6 = vpop.f32.mrb[3].mxu0  ;;  %v5485_v26 = vpack.i.bf16 %v7245_v53, %v7243_v18  ;;  %v1746_v15 = vsel %vm1741_vm12, %v7245_v53, 0.0 }
 0x2d9   : > { %5486 = vrot.lane.b32.xlu0 %v5485_v26, %s5772_s22 }
 0x2e6   : > { %v7249_v32 = vpop.f32.mrb[4].mxu0 }
 0x2e7   : > { %v4775_v9 = vpop.f32.mrb[5].mxu0  ;;  %v1747_v4 = vsel %vm1741_vm12, %v7249_v32, 0.0 }
 0x2e8   : > { %v2227_v9 = vsel %vm7410_vm3, %v7243_v18, 0.0 }
 0x2f5   : > { %v7251_v59 = vpop.f32.mrb[6].mxu0 }
 0x2f6   : > { %v4778_v61 = vpop.f32.mrb[7].mxu0  ;;  %v5490_v17 = vpack.i.bf16 %v7251_v59, %v7249_v32  ;;  %v1748_v39 = vsel %vm1741_vm12, %v7251_v59, 0.0 }
 0x2f7   : > { %v2228_v61 = vsel %vm7410_vm3, %v7245_v53, 0.0 }
 0x2f8   : > { %5491 = vrot.lane.b32.xlu1 %v5490_v17, %s5772_s22 }
 0x302   : > { %v7255_v46 = vpop.f32.mrb[8].mxu0 }
 0x303   : > { %v4781_v45 = vpop.f32.mrb[9].mxu0  ;;  %v1749_v29 = vsel %vm1741_vm12, %v7255_v46, 0.0 }
 0x304   : > { %v2230_v45 = vsel %vm7410_vm3, %v7251_v59, 0.0 }
 0x312   : > { %v7257_v38 = vpop.f32.mrb[10].mxu0 }
 0x313   : > { %v4784_v34 = vpop.f32.mrb[11].mxu0  ;;  %v5495_v52 = vpack.i.bf16 %v7257_v38, %v7255_v46  ;;  %v1750_v41 = vsel %vm1741_vm12, %v7257_v38, 0.0 }
 0x314   : > { %v2231_v34 = vsel %vm7410_vm3, %v7255_v46, 0.0 }
 0x315   : > { %5496 = vrot.lane.b32.xlu0 %v5495_v52, %s5772_s22 }
 0x319   : > { %v7261_v11 = vpop.f32.mrb[12].mxu0 }
 0x31a   : > { %v4787_v5 = vpop.f32.mrb[13].mxu0  ;;  %v1751_v7 = vsel %vm1741_vm12, %v7261_v11, 0.0 }
 0x31b   : > { %v2233_v5 = vsel %vm7410_vm3, %v7261_v11, 0.0 }
 0x31e   : > { %v7263_v31 = vpop.f32.mrb[14].mxu0 }
 0x31f   : > { %v4790_v62 = vpop.f32.mrb[15].mxu0  ;;  %v7267_v30 = vpack.i.bf16 %v7263_v31, %v7261_v11  ;;  %v1752_v10 = vsel %vm1741_vm12, %v7263_v31, 0.0 }
 0x320   : > { %v2234_v62 = vsel %vm7410_vm3, %v7263_v31, 0.0 }
 0x321   : > { %5501 = vrot.lane.b32.xlu1 %v7267_v30, %s5772_s22 }
 0x322   : > { %v7270_v21 = vpop.f32.mrb[16].mxu0 }
 0x323   : > { %1779 = vrot.lane.b32.xlu0 %v7270_v21, %s5772_s22  ;;  %v4793_v60 = vpop.f32.mrb[17].mxu0  ;;  %v1753_v6 = vsel %vm1741_vm12, %v7270_v21, 0.0  ;;  %v2643_v57 = vsel %vm7489_vm7, %v7270_v21, 0.0 }
 0x324   : > { %v2235_v60 = vsel %vm7410_vm3, %v7270_v21, 0.0 }
 0x325   : > { %5511 = vrot.lane.b32.xlu1 %v5490_v17, %s5769_s25  ;;  %v2229_v17 = vsel %vm7410_vm3, %v7249_v32, 0.0 }
 0x327   : > { %5506 = vrot.lane.b32.xlu0 %v5485_v26, %s5769_s25 }
 0x32b   : > { %5516 = vrot.lane.b32.xlu0 %v5495_v52, %s5769_s25  ;;  %v2232_v52 = vsel %vm7410_vm3, %v7257_v38, 0.0 }
 0x34b   : > { %v5487_v50 = vpop.permute.xlu0 %5486 }
 0x34c   : > { %v5489_v16 = vunpack.i.h.bf16 %v5487_v50  ;;  %v5488_v42 = vunpack.i.l.bf16 %v5487_v50 }
 0x34e   : > { %v7282_v8 = vpack.c.bf16 %v5489_v16, %v5488_v42  ;;  %v2635_v16 = vsel %vm7489_vm7, %v7243_v18, 0.0  ;;  %v2636_v42 = vsel %vm7489_vm7, %v7245_v53, 0.0 }
 0x350   : > { %5304 = vmatpush3.bf16.xpose.msk.msra.mxu1 %vm7278_vm11, %v7282_v8 }
 0x351   : > { %5305 = vmatprep.subr.bf16.mxu1 %v8881_v54 }
 0x36a   : > { %v5492_v23 = vpop.permute.xlu1 %5491 }
 0x36b   : > { %v5494_v36 = vunpack.i.h.bf16 %v5492_v23  ;;  %v5493_v33 = vunpack.i.l.bf16 %v5492_v23  ;;  %v2637_v23 = vsel %vm7489_vm7, %v7249_v32, 0.0 }
 0x36d   : > { %v7288_v14 = vpack.c.bf16 %v5494_v36, %v5493_v33  ;;  %v2639_v36 = vsel %vm7489_vm7, %v7255_v46, 0.0  ;;  %v2640_v33 = vsel %vm7489_vm7, %v7257_v38, 0.0 }
 0x36f   : > { %5308 = vmatpush3.bf16.xpose.msk.msra.mxu1 %vm7278_vm11, %v7288_v14 }
 0x370   : > { %5309 = vmatprep.subr.bf16.mxu1 %v8881_v54 }
 0x387   : > { %v5497_v49 = vpop.permute.xlu0 %5496 }
 0x388   : > { %v5499_v2 = vunpack.i.h.bf16 %v5497_v49  ;;  %v5498_v25 = vunpack.i.l.bf16 %v5497_v49  ;;  %v2642_v49 = vsel %vm7489_vm7, %v7263_v31, 0.0 }
 0x38a   : > { %v7294_v0 = vpack.c.bf16 %v5499_v2, %v5498_v25  ;;  %v3043_v25 = vsel %vm7568_vm10, %v7243_v18, 0.0  ;;  %v3046_v18 = vsel %vm7568_vm10, %v7251_v59, 0.0 }
 0x38c   : > { %5312 = vmatpush3.bf16.xpose.msk.msra.mxu1 %vm7278_vm11, %v7294_v0 }
 0x38d   : > { %5313 = vmatprep.subr.bf16.mxu1 %v8881_v54 }
 0x393   : > { %v5502_v58 = vpop.permute.xlu1 %5501 }
 0x394   : > { %v5504_v47 = vunpack.i.h.bf16 %v5502_v58  ;;  %v5503_v55 = vunpack.i.l.bf16 %v5502_v58  ;;  %v3045_v58 = vsel %vm7568_vm10, %v7249_v32, 0.0  ;;  %v3048_v32 = vsel %vm7568_vm10, %v7257_v38, 0.0 }
 0x395   : > { %v7300_v48 = vpop.permute.xlu0 %1779  ;;  %v3051_v38 = vsel %vm7568_vm10, %v7270_v21, 0.0 }
 0x396   : > { %v7302_v43 = vpack.c.bf16 %v5504_v47, %v5503_v55 }
 0x397   : > { %v5512_v56 = vpop.permute.xlu1 %5511 }
 0x398   : > { %5316 = vmatpush3.bf16.xpose.msk.msra.mxu1 %vm7278_vm11, %v7302_v43  ;;  %v5514_v37 = vunpack.i.h.bf16 %v5512_v56  ;;  %v5513_v3 = vunpack.i.l.bf16 %v5512_v56 }
 0x399   : > { %v5507_v20 = vpop.permute.xlu0 %5506  ;;  %4810 = vmatprep.subr.mxu1 %v8885_v22 }
 0x39a   : > { %v5509_v63 = vunpack.i.h.bf16 %v5507_v20  ;;  %v5508_v51 = vunpack.i.l.bf16 %v5507_v20  ;;  %v7325_v24 = vpack.c.bf16 %v5514_v37, %v5513_v3 }
 0x39c   : > { %v7319_v44 = vpack.c.bf16 %v5509_v63, %v5508_v51 }
 0x39d   : > { %v5517_v40 = vpop.permute.xlu0 %5516 }
 0x39e   : > { %5320 = vmatpush3.bf16.msk.msra.mxu0 %vm7315_vm13, %v7319_v44  ;;  %v5519_v27 = vunpack.i.h.bf16 %v5517_v40  ;;  %v5518_v19 = vunpack.i.l.bf16 %v5517_v40 }
 0x39f   : > { %5321 = vmatprep.subr.bf16.mxu0 %v8881_v54 }
 0x3a0   : > { %4811 = vmatpush3.xpose.msk.msra.mxu1 %vm479_vm0, %v7300_v48  ;;  %v7338_v12 = vpack.c.bf16 %v5519_v27, %v5518_v19 }
 0x3a1   : > { %5333 = vmatprep.subr.bf16.mxu1 %v8881_v54 }
 0x3a2   : > { %5324 = vmatpush3.bf16.msk.msra.mxu0 %vm7315_vm13, %v7325_v24 }
 0x3a3   : > { %4813 = vmatmul.mubr.msk.f32.vlgmr.msra.gmra.mrb[0].mxu1 %vm479_vm0, %v1745_v13  ;;  %5325 = vmatprep.subr.bf16.mxu0 %v8881_v54 }
 0x3a4   : > { %5336 = vmatpush3.bf16.xpose.msk.msra.mxu1 %vm7278_vm11, %v7282_v8  ;;  %4815 = vmatprep.mubr.msk.f32.mxu1 %vm5771_vm4, %v8885_v22 }
 0x3a5   : > { %5337 = vmatprep.subr.bf16.mxu1 %v8881_v54 }
 0x3a6   : > { %5328 = vmatpush3.bf16.msk.msra.mxu0 %vm7315_vm13, %v7338_v12 }
 0x3a7   : > { %4816 = vmatmul.mubr.msk.f32.gmra.mrb[2].mxu1 %vm479_vm0, %v1746_v15  ;;  %5329 = vmatprep.subr.bf16.mxu0 %v8881_v54 }
 0x3a8   : > { %4818 = vmatprep.mubr.msk.f32.mxu1 %vm5771_vm4, %v8885_v22 }
 0x3ab   : > { %4819 = vmatmul.mubr.msk.f32.gmra.mrb[4].mxu1 %vm479_vm0, %v1747_v4 }
 0x3ac   : > { %5340 = vmatpush3.bf16.xpose.msk.msra.mxu1 %vm7278_vm11, %v7288_v14  ;;  %4821 = vmatprep.mubr.msk.f32.mxu1 %vm5771_vm4, %v8885_v22 }
 0x3ad   : > { %5341 = vmatprep.subr.bf16.mxu1 %v8881_v54 }
 0x3af   : > { %4822 = vmatmul.mubr.msk.f32.gmra.mrb[6].mxu1 %vm479_vm0, %v1748_v39 }
 0x3b0   : > { %4824 = vmatprep.mubr.msk.f32.mxu1 %vm5771_vm4, %v8885_v22 }
 0x3b3   : > { %4825 = vmatmul.mubr.msk.f32.gmra.mrb[8].mxu1 %vm479_vm0, %v1749_v29 }
 0x3b4   : > { %5344 = vmatpush3.bf16.xpose.msk.msra.mxu1 %vm7278_vm11, %v7294_v0  ;;  %4827 = vmatprep.mubr.msk.f32.mxu1 %vm5771_vm4, %v8885_v22 }
 0x3b5   : > { %5345 = vmatprep.subr.bf16.mxu1 %v8881_v54 }
 0x3b7   : > { %4828 = vmatmul.mubr.msk.f32.gmra.mrb[10].mxu1 %vm479_vm0, %v1750_v41 }
 0x3b8   : > { %4830 = vmatprep.mubr.msk.f32.mxu1 %vm5771_vm4, %v8885_v22 }
 0x3bb   : > { %4831 = vmatmul.mubr.msk.f32.gmra.mrb[12].mxu1 %vm479_vm0, %v1751_v7 }
 0x3bc   : > { %5348 = vmatpush3.bf16.xpose.msk.msra.mxu1 %vm7278_vm11, %v7302_v43  ;;  %4833 = vmatprep.mubr.msk.f32.mxu1 %vm5771_vm4, %v8885_v22 }
 0x3bd   : > { %4900 = vmatprep.subr.mxu1 %v8885_v22 }
 0x3bf   : > { %4834 = vmatmul.mubr.msk.f32.gmra.mrb[14].mxu1 %vm479_vm0, %v1752_v10 }
 0x3c0   : > { %4836 = vmatprep.mubr.msk.f32.mxu1 %vm5771_vm4, %v8885_v22 }
 0x3c3   : > { %4837 = vmatmul.mubr.msk.f32.gmra.mrb[16].mxu1 %vm479_vm0, %v1753_v6 }
 0x3c4   : > { %4901 = vmatpush3.xpose.msk.msra.mxu1 %vm479_vm0, %v7300_v48  ;;  %4902 = vmatprep.mubr.msk.f32.mxu1 %vm5771_vm4, %v8885_v22 }
 0x3c5   : > { %5365 = vmatprep.subr.bf16.mxu1 %v8881_v54 }
 0x3c7   : > { %4903 = vmatmul.mubr.msk.f32.vlgmr.msra.gmra.mrb[18].mxu1 %vm479_vm0, %v2227_v9 }
 0x3c8   : > { %5368 = vmatpush3.bf16.xpose.msk.msra.mxu1 %vm7278_vm11, %v7282_v8  ;;  %4905 = vmatprep.mubr.msk.f32.mxu1 %vm5771_vm4, %v8885_v22 }
 0x3c9   : > { %5369 = vmatprep.subr.bf16.mxu1 %v8881_v54 }
 0x3cb   : > { %4906 = vmatmul.mubr.msk.f32.gmra.mrb[20].mxu1 %vm479_vm0, %v2228_v61 }
 0x3cc   : > { %4908 = vmatprep.mubr.msk.f32.mxu1 %vm5771_vm4, %v8885_v22 }
 0x3cf   : > { %4909 = vmatmul.mubr.msk.f32.gmra.mrb[22].mxu1 %vm479_vm0, %v2229_v17 }
 0x3d0   : > { %5372 = vmatpush3.bf16.xpose.msk.msra.mxu1 %vm7278_vm11, %v7288_v14  ;;  %4911 = vmatprep.mubr.msk.f32.mxu1 %vm5771_vm4, %v8885_v22 }
 0x3d1   : > { %5373 = vmatprep.subr.bf16.mxu1 %v8881_v54 }
 0x3d3   : > { %4912 = vmatmul.mubr.msk.f32.gmra.mrb[24].mxu1 %vm479_vm0, %v2230_v45 }
 0x3d4   : > { %4914 = vmatprep.mubr.msk.f32.mxu1 %vm5771_vm4, %v8885_v22 }
 0x3d7   : > { %4915 = vmatmul.mubr.msk.f32.gmra.mrb[26].mxu1 %vm479_vm0, %v2231_v34 }
 0x3d8   : > { %5376 = vmatpush3.bf16.xpose.msk.msra.mxu1 %vm7278_vm11, %v7294_v0  ;;  %4917 = vmatprep.mubr.msk.f32.mxu1 %vm5771_vm4, %v8885_v22 }
 0x3d9   : > { %5377 = vmatprep.subr.bf16.mxu1 %v8881_v54 }
 0x3db   : > { %4918 = vmatmul.mubr.msk.f32.gmra.mrb[28].mxu1 %vm479_vm0, %v2232_v52 }
 0x3dc   : > { %4920 = vmatprep.mubr.msk.f32.mxu1 %vm5771_vm4, %v8885_v22 }
 0x3df   : > { %4921 = vmatmul.mubr.msk.f32.gmra.mrb[30].mxu1 %vm479_vm0, %v2233_v5 }
 0x3e0   : > { %5380 = vmatpush3.bf16.xpose.msk.msra.mxu1 %vm7278_vm11, %v7302_v43  ;;  %4923 = vmatprep.mubr.msk.f32.mxu1 %vm5771_vm4, %v8885_v22 }
 0x3e1   : > { %4990 = vmatprep.subr.mxu1 %v8885_v22 }
 0x3e3   : > { %4924 = vmatmul.mubr.msk.f32.gmra.mrb[32].mxu1 %vm479_vm0, %v2234_v62 }
 0x3e4   : > { %4926 = vmatprep.mubr.msk.f32.mxu1 %vm5771_vm4, %v8885_v22 }
 0x3e7   : > { %4927 = vmatmul.mubr.msk.f32.gmra.mrb[34].mxu1 %vm479_vm0, %v2235_v60 }
 0x3e8   : > { %4991 = vmatpush3.xpose.msk.msra.mxu1 %vm479_vm0, %v7300_v48  ;;  %4992 = vmatprep.mubr.msk.f32.mxu1 %vm5771_vm4, %v8885_v22 }
 0x3e9   : > { %5397 = vmatprep.subr.bf16.mxu1 %v8881_v54 }
 0x3eb   : > { %4993 = vmatmul.mubr.msk.f32.vlgmr.msra.gmra.mrb[36].mxu1 %vm479_vm0, %v2635_v16 }
 0x3ec   : > { %5400 = vmatpush3.bf16.xpose.msk.msra.mxu1 %vm7278_vm11, %v7282_v8  ;;  %4995 = vmatprep.mubr.msk.f32.mxu1 %vm5771_vm4, %v8885_v22  ;;  %v2638_v8 = vsel %vm7489_vm7, %v7251_v59, 0.0  ;;  %v3049_v59 = vsel %vm7568_vm10, %v7261_v11, 0.0 }
 0x3ed   : > { %5401 = vmatprep.subr.bf16.mxu1 %v8881_v54 }
 0x3ef   : > { %4996 = vmatmul.mubr.msk.f32.gmra.mrb[38].mxu1 %vm479_vm0, %v2636_v42 }
 0x3f0   : > { %4998 = vmatprep.mubr.msk.f32.mxu1 %vm5771_vm4, %v8885_v22 }
 0x3f3   : > { %4999 = vmatmul.mubr.msk.f32.gmra.mrb[40].mxu1 %vm479_vm0, %v2637_v23 }
 0x3f4   : > { %5404 = vmatpush3.bf16.xpose.msk.msra.mxu1 %vm7278_vm11, %v7288_v14  ;;  %5001 = vmatprep.mubr.msk.f32.mxu1 %vm5771_vm4, %v8885_v22  ;;  %v2641_v14 = vsel %vm7489_vm7, %v7261_v11, 0.0 }
 0x3f5   : > { %5405 = vmatprep.subr.bf16.mxu1 %v8881_v54 }
 0x3f7   : > { %5002 = vmatmul.mubr.msk.f32.gmra.mrb[42].mxu1 %vm479_vm0, %v2638_v8 }
 0x3f8   : > { %5004 = vmatprep.mubr.msk.f32.mxu1 %vm5771_vm4, %v8885_v22 }
 0x3fb   : > { %5005 = vmatmul.mubr.msk.f32.gmra.mrb[44].mxu1 %vm479_vm0, %v2639_v36 }
 0x3fc   : > { %5408 = vmatpush3.bf16.xpose.msk.msra.mxu1 %vm7278_vm11, %v7294_v0  ;;  %5007 = vmatprep.mubr.msk.f32.mxu1 %vm5771_vm4, %v8885_v22  ;;  %v3044_v0 = vsel %vm7568_vm10, %v7245_v53, 0.0  ;;  %v3047_v53 = vsel %vm7568_vm10, %v7255_v46, 0.0  ;;  %v3050_v46 = vsel %vm7568_vm10, %v7263_v31, 0.0 }
 0x3fd   : > { %5409 = vmatprep.subr.bf16.mxu1 %v8881_v54 }
 0x3ff   : > { %5008 = vmatmul.mubr.msk.f32.gmra.mrb[46].mxu1 %vm479_vm0, %v2640_v33 }
 0x400   : > { %5010 = vmatprep.mubr.msk.f32.mxu1 %vm5771_vm4, %v8885_v22 }
 0x403   : > { %5011 = vmatmul.mubr.msk.f32.gmra.mrb[48].mxu1 %vm479_vm0, %v2641_v14 }
 0x404   : > { %5412 = vmatpush3.bf16.xpose.msk.msra.mxu1 %vm7278_vm11, %v7302_v43  ;;  %5013 = vmatprep.mubr.msk.f32.mxu1 %vm5771_vm4, %v8885_v22  ;;  %vm1936_vm11 = vcmask 531456  }
 0x405   : > { %5080 = vmatprep.subr.mxu1 %v8885_v22 }
 0x407   : > { %5014 = vmatmul.mubr.msk.f32.gmra.mrb[50].mxu1 %vm479_vm0, %v2642_v49 }
 0x408   : > { %5016 = vmatprep.mubr.msk.f32.mxu1 %vm5771_vm4, %v8885_v22 }
 0x40b   : > { %5017 = vmatmul.mubr.msk.f32.gmra.mrb[52].mxu1 %vm479_vm0, %v2643_v57 }
 0x40c   : > { %5081 = vmatpush3.xpose.msk.msra.mxu1 %vm479_vm0, %v7300_v48  ;;  %5082 = vmatprep.mubr.msk.f32.mxu1 %vm5771_vm4, %v8885_v22 }
 0x40d   : > { %5465 = vmatprep.subr.bf16.mxu1 %v8881_v54 }
 0x40f   : > { %5083 = vmatmul.mubr.msk.f32.vlgmr.msra.gmra.mrb[54].mxu1 %vm479_vm0, %v3043_v25 }
 0x410   : > { %5085 = vmatprep.mubr.msk.f32.mxu1 %vm5771_vm4, %v8885_v22 }
 0x413   : > { %5086 = vmatmul.mubr.msk.f32.gmra.mrb[56].mxu1 %vm479_vm0, %v3044_v0 }
 0x414   : > { %5088 = vmatprep.mubr.msk.f32.mxu1 %vm5771_vm4, %v8885_v22 }
 0x417   : > { %5089 = vmatmul.mubr.msk.f32.gmra.mrb[58].mxu1 %vm479_vm0, %v3045_v58 }
 0x418   : > { %5091 = vmatprep.mubr.msk.f32.mxu1 %vm5771_vm4, %v8885_v22 }
 0x41b   : > { %5092 = vmatmul.mubr.msk.f32.gmra.mrb[60].mxu1 %vm479_vm0, %v3046_v18 }
 0x41c   : > { %5094 = vmatprep.mubr.msk.f32.mxu1 %vm5771_vm4, %v8885_v22 }
 0x41f   : > { %5095 = vmatmul.mubr.msk.f32.gmra.mrb[62].mxu1 %vm479_vm0, %v3047_v53 }
 0x420   : > { %5097 = vmatprep.mubr.msk.f32.mxu1 %vm5771_vm4, %v8885_v22 }
 0x423   : > { %5098 = vmatmul.mubr.msk.f32.gmra.mrb[64].mxu1 %vm479_vm0, %v3048_v32 }
 0x424   : > { %5100 = vmatprep.mubr.msk.f32.mxu1 %vm5771_vm4, %v8885_v22 }
 0x427   : > { %5101 = vmatmul.mubr.msk.f32.gmra.mrb[66].mxu1 %vm479_vm0, %v3049_v59 }
 0x428   : > { %5103 = vmatprep.mubr.msk.f32.mxu1 %vm5771_vm4, %v8885_v22 }
 0x42b   : > { %5104 = vmatmul.mubr.msk.f32.gmra.mrb[68].mxu1 %vm479_vm0, %v3050_v46 }
 0x42c   : > { %5106 = vmatprep.mubr.msk.f32.mxu1 %vm5771_vm4, %v8885_v22 }
 0x42f   : > { %5107 = vmatmul.mubr.msk.f32.gmra.mrb[70].mxu1 %vm479_vm0, %v3051_v38 }
 0x430   : > { %5165 = vmatprep.mubr.msk.f32.mxu1 %vm5771_vm4, %v8885_v22 }
 0x476   : > { %v7631_v11 = vpop.f32.mrb[0].mxu1 }
 0x477   : > { %v4814_v47 = vpop.f32.mrb[1].mxu1  ;;  %v1937_v31 = vsel %vm1936_vm11, %v7631_v11, -inf }
 0x478   : > { %1938 = vmax.xlane.f32.xlu1 %v1937_v31 }
 0x47a   : > { %v7635_v55 = vpop.f32.mrb[2].mxu1 }
 0x47b   : > { %v4817_v48 = vpop.f32.mrb[3].mxu1  ;;  %v1940_v43 = vsel %vm1936_vm11, %v7635_v55, -inf }
 0x47c   : > { %1941 = vmax.xlane.f32.xlu0 %v1940_v43 }
 0x47e   : > { %v7639_v1 = vpop.f32.mrb[4].mxu1 }
 0x47f   : > { %v4820_v56 = vpop.f32.mrb[5].mxu1  ;;  %v1943_v20 = vsel %vm1936_vm11, %v7639_v1, -inf }
 0x480   : > { %1944 = vmax.xlane.f32.xlu0 %v1943_v20 }
 0x482   : > { %v7643_v63 = vpop.f32.mrb[6].mxu1 }
 0x483   : > { %v4823_v51 = vpop.f32.mrb[7].mxu1  ;;  %v1946_v37 = vsel %vm1936_vm11, %v7643_v63, -inf }
 0x484   : > { %1947 = vmax.xlane.f32.xlu1 %v1946_v37 }
 0x486   : > { %v7647_v3 = vpop.f32.mrb[8].mxu1 }
 0x487   : > { %v4826_v40 = vpop.f32.mrb[9].mxu1  ;;  %v1949_v27 = vsel %vm1936_vm11, %v7647_v3, -inf }
 0x488   : > { %1950 = vmax.xlane.f32.xlu1 %v1949_v27 }
 0x48a   : > { %v7651_v19 = vpop.f32.mrb[10].mxu1 }
 0x48b   : > { %v4829_v13 = vpop.f32.mrb[11].mxu1  ;;  %v1952_v15 = vsel %vm1936_vm11, %v7651_v19, -inf }
 0x48c   : > { %1953 = vmax.xlane.f32.xlu0 %v1952_v15 }
 0x48e   : > { %v7655_v4 = vpop.f32.mrb[12].mxu1 }
 0x48f   : > { %v4832_v39 = vpop.f32.mrb[13].mxu1  ;;  %v1955_v14 = vsel %vm1936_vm11, %v7655_v4, -inf }
 0x492   : > { %v7657_v29 = vpop.f32.mrb[14].mxu1 }
 0x493   : > { %v4835_v41 = vpop.f32.mrb[15].mxu1  ;;  %v1958_v25 = vsel %vm1936_vm11, %v7657_v29, -inf }
 0x496   : > { %v7659_v7 = vpop.f32.mrb[16].mxu1 }
 0x497   : > { %v4838_v10 = vpop.f32.mrb[17].mxu1  ;;  %v1962_v0 = vsel %vm1961_vm14, %v7659_v7, -inf }
 0x499   : > { %2044 = vrot.lane.b32.xlu1 %v7270_v21, %s5769_s25 }
 0x49a   : > { %v7663_v6 = vpop.f32.mrb[18].mxu1 }
 0x49b   : > { %v4904_v9 = vpop.f32.mrb[19].mxu1  ;;  %v2373_v53 = vsel %vm1936_vm11, %v7663_v6, -inf }
 0x49e   : > { %v7665_v61 = vpop.f32.mrb[20].mxu1 }
 0x49f   : > { %v4907_v17 = vpop.f32.mrb[21].mxu1  ;;  %v2376_v38 = vsel %vm1936_vm11, %v7665_v61, -inf }
 0x4a2   : > { %5521 = vrot.lane.b32.xlu0 %v7267_v30, %s5769_s25  ;;  %v7669_v45 = vpop.f32.mrb[22].mxu1 }
 0x4a3   : > { %v4910_v34 = vpop.f32.mrb[23].mxu1  ;;  %v2379_v32 = vsel %vm1936_vm11, %v7669_v45, -inf }
 0x4a6   : > { %v7671_v52 = vpop.f32.mrb[24].mxu1 }
 0x4a7   : > { %v4913_v5 = vpop.f32.mrb[25].mxu1  ;;  %v2382_v43 = vsel %vm1936_vm11, %v7671_v52, -inf }
 0x4aa   : > { %v7673_v62 = vpop.f32.mrb[26].mxu1 }
 0x4ab   : > { %v4916_v60 = vpop.f32.mrb[27].mxu1  ;;  %v2385_v47 = vsel %vm1936_vm11, %v7673_v62, -inf }
 0x4ae   : > { %v7675_v16 = vpop.f32.mrb[28].mxu1 }
 0x4af   : > { %v4919_v21 = vpop.f32.mrb[29].mxu1  ;;  %v2388_v37 = vsel %vm1936_vm11, %v7675_v16, -inf }
 0x4b2   : > { %v7677_v42 = vpop.f32.mrb[30].mxu1 }
 0x4b3   : > { %v4922_v23 = vpop.f32.mrb[31].mxu1  ;;  %v2391_v56 = vsel %vm1936_vm11, %v7677_v42, -inf }
 0x4b6   : > { %v7679_v8 = vpop.f32.mrb[32].mxu1 }
 0x4b7   : > { %v4925_v36 = vpop.f32.mrb[33].mxu1  ;;  %v2394_v15 = vsel %vm1936_vm11, %v7679_v8, -inf }
 0x4ba   : > { %v7681_v33 = vpop.f32.mrb[34].mxu1 }
 0x4bb   : > { %v4928_v30 = vpop.f32.mrb[35].mxu1  ;;  %v2397_v40 = vsel %vm1961_vm14, %v7681_v33, -inf }
 0x4bd   : > { %1956 = vmax.xlane.f32.xlu1 %v1955_v14 }
 0x4be   : > { %v7685_v49 = vpop.f32.mrb[36].mxu1 }
 0x4bf   : > { %v4994_v57 = vpop.f32.mrb[37].mxu1  ;;  %v2781_v9 = vsel %vm1936_vm11, %v7685_v49, -inf }
 0x4c1   : > { %1959 = vmax.xlane.f32.xlu1 %v1958_v25  ;;  %1963 = vmax.xlane.f32.xlu0 %v1962_v0 }
 0x4c2   : > { %v7691_v58 = vpop.f32.mrb[38].mxu1 }
 0x4c3   : > { %v4997_v18 = vpop.f32.mrb[39].mxu1  ;;  %v2784_v39 = vsel %vm1936_vm11, %v7691_v58, -inf }
 0x4c5   : > { %2374 = vmax.xlane.f32.xlu0 %v2373_v53  ;;  %2380 = vmax.xlane.f32.xlu1 %v2379_v32 }
 0x4c6   : > { %v7697_v59 = vpop.f32.mrb[40].mxu1 }
 0x4c7   : > { %v5000_v46 = vpop.f32.mrb[41].mxu1  ;;  %v2787_v60 = vsel %vm1936_vm11, %v7697_v59, -inf }
 0x4c9   : > { %2377 = vmax.xlane.f32.xlu0 %v2376_v38  ;;  %2386 = vmax.xlane.f32.xlu1 %v2385_v47 }
 0x4ca   : > { %v7703_v31 = vpop.f32.mrb[42].mxu1 }
 0x4cb   : > { %v5003_v48 = vpop.f32.mrb[43].mxu1  ;;  %v2790_v17 = vsel %vm1936_vm11, %v7703_v31, -inf }
 0x4cd   : > { %2383 = vmax.xlane.f32.xlu0 %v2382_v43  ;;  %2392 = vmax.xlane.f32.xlu1 %v2391_v56 }
 0x4ce   : > { %v7709_v20 = vpop.f32.mrb[44].mxu1 }
 0x4cf   : > { %v5006_v51 = vpop.f32.mrb[45].mxu1  ;;  %v2793_v30 = vsel %vm1936_vm11, %v7709_v20, -inf }
 0x4d1   : > { %2389 = vmax.xlane.f32.xlu0 %v2388_v37  ;;  %2398 = vmax.xlane.f32.xlu1 %v2397_v40 }
 0x4d2   : > { %v7715_v27 = vpop.f32.mrb[46].mxu1 }
 0x4d3   : > { %v5009_v13 = vpop.f32.mrb[47].mxu1  ;;  %v2796_v21 = vsel %vm1936_vm11, %v7715_v27, -inf }
 0x4d5   : > { %2395 = vmax.xlane.f32.xlu0 %v2394_v15  ;;  %2785 = vmax.xlane.f32.xlu1 %v2784_v39 }
 0x4d6   : > { %v7721_v41 = vpop.f32.mrb[48].mxu1 }
 0x4d7   : > { %v5012_v10 = vpop.f32.mrb[49].mxu1  ;;  %v2799_v18 = vsel %vm1936_vm11, %v7721_v41, -inf }
 0x4d9   : > { %2782 = vmax.xlane.f32.xlu0 %v2781_v9  ;;  %2791 = vmax.xlane.f32.xlu1 %v2790_v17 }
 0x4da   : > { %v7727_v34 = vpop.f32.mrb[50].mxu1 }
 0x4db   : > { %v5015_v5 = vpop.f32.mrb[51].mxu1  ;;  %v2802_v14 = vsel %vm1936_vm11, %v7727_v34, -inf }
 0x4dd   : > { %2788 = vmax.xlane.f32.xlu0 %v2787_v60  ;;  %2797 = vmax.xlane.f32.xlu1 %v2796_v21 }
 0x4de   : > { %v7733_v23 = vpop.f32.mrb[52].mxu1 }
 0x4df   : > { %v5018_v36 = vpop.f32.mrb[53].mxu1  ;;  %v2805_v46 = vsel %vm1961_vm14, %v7733_v23, -inf }
 0x4e1   : > { %2794 = vmax.xlane.f32.xlu0 %v2793_v30  ;;  %2803 = vmax.xlane.f32.xlu1 %v2802_v14 }
 0x4e2   : > { %v7739_v57 = vpop.f32.mrb[54].mxu1 }
 0x4e3   : > { %v5084_v25 = vpop.f32.mrb[55].mxu1  ;;  %v3189_v0 = vsel %vm1936_vm11, %v7739_v57, -inf }
 0x4e5   : > { %2800 = vmax.xlane.f32.xlu0 %v2799_v18  ;;  %3190 = vmax.xlane.f32.xlu1 %v3189_v0 }
 0x4e6   : > { %v7745_v53 = vpop.f32.mrb[56].mxu1 }
 0x4e7   : > { %v5087_v32 = vpop.f32.mrb[57].mxu1  ;;  %v3192_v43 = vsel %vm1936_vm11, %v7745_v53, -inf }
 0x4e9   : > { %2806 = vmax.xlane.f32.xlu0 %v2805_v46 }
 0x4ea   : > { %v7749_v38 = vpop.f32.mrb[58].mxu1 }
 0x4eb   : > { %v5090_v47 = vpop.f32.mrb[59].mxu1  ;;  %v3195_v48 = vsel %vm1936_vm11, %v7749_v38, -inf }
 0x4ec   : > { %3196 = vmax.xlane.f32.xlu1 %v3195_v48 }
 0x4ed   : > { %3193 = vmax.xlane.f32.xlu0 %v3192_v43 }
 0x4ee   : > { %v7755_v56 = vpop.f32.mrb[60].mxu1 }
 0x4ef   : > { %v5093_v51 = vpop.f32.mrb[61].mxu1  ;;  %v3198_v37 = vsel %vm1936_vm11, %v7755_v56, -inf }
 0x4f1   : > { %3199 = vmax.xlane.f32.xlu0 %v3198_v37 }
 0x4f2   : > { %v7759_v40 = vpop.f32.mrb[62].mxu1 }
 0x4f3   : > { %v5096_v13 = vpop.f32.mrb[63].mxu1  ;;  %v3201_v15 = vsel %vm1936_vm11, %v7759_v40, -inf }
 0x4f4   : > { %3202 = vmax.xlane.f32.xlu1 %v3201_v15 }
 0x4f6   : > { %v7763_v39 = vpop.f32.mrb[64].mxu1 }
 0x4f7   : > { %v5099_v10 = vpop.f32.mrb[65].mxu1  ;;  %v3204_v9 = vsel %vm1936_vm11, %v7763_v39, -inf }
 0x4f8   : > { %3205 = vmax.xlane.f32.xlu0 %v3204_v9 }
 0x4fa   : > { %v7767_v17 = vpop.f32.mrb[66].mxu1 }
 0x4fb   : > { %v5102_v5 = vpop.f32.mrb[67].mxu1  ;;  %v3207_v60 = vsel %vm1936_vm11, %v7767_v17, -inf }
 0x4fc   : > { %3208 = vmax.xlane.f32.xlu1 %v3207_v60 }
 0x4fe   : > { %v7771_v21 = vpop.f32.mrb[68].mxu1 }
 0x4ff   : > { %v5105_v36 = vpop.f32.mrb[69].mxu1  ;;  %v3210_v30 = vsel %vm1936_vm11, %v7771_v21, -inf }
 0x500   : > { %3211 = vmax.xlane.f32.xlu0 %v3210_v30 }
 0x502   : > { %v7775_v14 = vpop.f32.mrb[70].mxu1 }
 0x503   : > { %v5108_v25 = vpop.f32.mrb[71].mxu1  ;;  %v3213_v0 = vsel %vm1961_vm14, %v7775_v14, -inf }
 0x504   : > { %3214 = vmax.xlane.f32.xlu1 %v3213_v0 }
 0x505   : > { %v1939_v18 = vpop.xlane.xlu1 %1938 }
 0x506   : > { %v1965_v32 = vsub.f32 %v7631_v11, %v1939_v18 }
 0x508   : > { %v1974_v46 = vmul.f32 1.442695, %v1965_v32 }
 0x509   : > { %v1942_v47 = vpop.xlane.xlu0 %1941 }
 0x50a   : > { %5543 = vpow2.f32 %v1974_v46  ;;  %v1966_v48 = vsub.f32 %v7635_v55, %v1942_v47 }
 0x50c   : > { %v1976_v43 = vmul.f32 1.442695, %v1966_v48 }
 0x50d   : > { %v1945_v51 = vpop.xlane.xlu0 %1944 }
 0x50e   : > { %5545 = vpow2.f32 %v1976_v43  ;;  %v1967_v37 = vsub.f32 %v7639_v1, %v1945_v51 }
 0x510   : > { %v1978_v13 = vmul.f32 1.442695, %v1967_v37 }
 0x511   : > { %v1948_v15 = vpop.xlane.xlu1 %1947 }
 0x512   : > { %5547 = vpow2.f32 %v1978_v13  ;;  %v1968_v10 = vsub.f32 %v7643_v63, %v1948_v15 }
 0x514   : > { %v5544_v9 = vpop.eup %5543  ;;  %v1980_v5 = vmul.f32 1.442695, %v1968_v10 }
 0x515   : > { %v1951_v60 = vpop.xlane.xlu1 %1950  ;;  %v1992_v11 = vsel %vm1936_vm11, %v5544_v9, 0.0 }
 0x516   : > { %5549 = vpow2.f32 %v1980_v5  ;;  %v1969_v36 = vsub.f32 %v7647_v3, %v1951_v60  ;;  %1993 = vadd.xlane.f32.xlu0 %v1992_v11 }
 0x518   : > { %v5546_v55 = vpop.eup %5545  ;;  %v1982_v30 = vmul.f32 1.442695, %v1969_v36 }
 0x519   : > { %v1954_v25 = vpop.xlane.xlu0 %1953  ;;  %v1995_v0 = vsel %vm1936_vm11, %v5546_v55, 0.0  ;;  %v7791_v37 = vpop.permute.xlu1 %2044 }
 0x51a   : > { %5551 = vpow2.f32 %v1982_v30  ;;  %v1970_v1 = vsub.f32 %v7651_v19, %v1954_v25  ;;  %1996 = vadd.xlane.f32.xlu1 %v1995_v0  ;;  %v2063_v13 = vsel %vm1741_vm12, %v7791_v37, 0.0  ;;  %vm7876_vm12 = vmpackc.low %vm7489_vm7, %vm7489_vm7 }
 0x51c   : > { %v5548_v18 = vpop.eup %5547  ;;  %v1984_v63 = vmul.f32 1.442695, %v1970_v1 }
 0x51d   : > { %v5522_v32 = vpop.permute.xlu0 %5521  ;;  %v1998_v46 = vsel %vm1936_vm11, %v5548_v18, 0.0 }
 0x51e   : > { %5553 = vpow2.f32 %v1984_v63  ;;  %v5524_v47 = vunpack.i.h.bf16 %v5522_v32  ;;  %v5523_v48 = vunpack.i.l.bf16 %v5522_v32  ;;  %1999 = vadd.xlane.f32.xlu1 %v1998_v46 }
 0x520   : > { %v5550_v3 = vpop.eup %5549  ;;  %v7788_v43 = vpack.c.bf16 %v5524_v47, %v5523_v48 }
 0x521   : > { %v2001_v51 = vsel %vm1936_vm11, %v5550_v3, 0.0 }
 0x522   : > { %5332 = vmatpush3.bf16.msk.msra.mxu0 %vm7315_vm13, %v7788_v43  ;;  %2002 = vadd.xlane.f32.xlu1 %v2001_v51  ;;  %vm7976_vm13 = vmpackc.low %vm7568_vm10, %vm7568_vm10 }
 0x523   : > { %4855 = vmatprep.subr.mxu0 %v8885_v22 }
 0x524   : > { %v5552_v19 = vpop.eup %5551 }
 0x525   : > { %v2004_v15 = vsel %vm1936_vm11, %v5552_v19, 0.0 }
 0x526   : > { %4856 = vmatpush3.msk.msra.mxu0 %vm787_vm2, %v2063_v13  ;;  %2005 = vadd.xlane.f32.xlu1 %v2004_v15 }
 0x527   : > { %4858 = vmatmul.mubr.msk.f32.vlgmr.msra.gmra.mrb[18].mxu0 %vm1936_vm11, %v5544_v9  ;;  %5349 = vmatprep.subr.bf16.mxu0 %v8881_v54  ;;  %v2471_v9 = vsel %vm7410_vm3, %v7791_v37, 0.0 }
 0x528   : > { %v5554_v28 = vpop.eup %5553  ;;  %5352 = vmatpush3.bf16.msk.msra.mxu0 %vm7804_vm15, %v7319_v44  ;;  %4860 = vmatprep.mubr.msk.f32.mxu0 %vm5771_vm4, %v8885_v22 }
 0x529   : > { %v2007_v35 = vsel %vm1936_vm11, %v5554_v28, 0.0  ;;  %5353 = vmatprep.subr.bf16.mxu0 %v8881_v54 }
 0x52a   : > { %2008 = vadd.xlane.f32.xlu1 %v2007_v35 }
 0x52b   : > { %4861 = vmatmul.mubr.msk.f32.gmra.mrb[20].mxu0 %vm1936_vm11, %v5546_v55 }
 0x52c   : > { %5356 = vmatpush3.bf16.msk.msra.mxu0 %vm7804_vm15, %v7325_v24  ;;  %4863 = vmatprep.mubr.msk.f32.mxu0 %vm5771_vm4, %v8885_v22 }
 0x52d   : > { %5357 = vmatprep.subr.bf16.mxu0 %v8881_v54 }
 0x52f   : > { %4864 = vmatmul.mubr.msk.f32.gmra.mrb[22].mxu0 %vm1936_vm11, %v5548_v18 }
 0x530   : > { %5360 = vmatpush3.bf16.msk.msra.mxu0 %vm7804_vm15, %v7338_v12  ;;  %4866 = vmatprep.mubr.msk.f32.mxu0 %vm5771_vm4, %v8885_v22 }
 0x531   : > { %5361 = vmatprep.subr.bf16.mxu0 %v8881_v54 }
 0x533   : > { %4867 = vmatmul.mubr.msk.f32.gmra.mrb[24].mxu0 %vm1936_vm11, %v5550_v3 }
 0x534   : > { %5364 = vmatpush3.bf16.msk.msra.mxu0 %vm7804_vm15, %v7788_v43  ;;  %4869 = vmatprep.mubr.msk.f32.mxu0 %vm5771_vm4, %v8885_v22 }
 0x535   : > { %4945 = vmatprep.subr.mxu0 %v8885_v22 }
 0x537   : > { %4870 = vmatmul.mubr.msk.f32.gmra.mrb[26].mxu0 %vm1936_vm11, %v5552_v19 }
 0x538   : > { %4946 = vmatpush3.msk.msra.mxu0 %vm787_vm2, %v2471_v9  ;;  %4872 = vmatprep.mubr.msk.f32.mxu0 %vm5771_vm4, %v8885_v22 }
 0x539   : > { %5381 = vmatprep.subr.bf16.mxu0 %v8881_v54 }
 0x53b   : > { %4873 = vmatmul.mubr.msk.f32.gmra.mrb[28].mxu0 %vm1936_vm11, %v5554_v28 }
 0x53c   : > { %4875 = vmatprep.mubr.msk.f32.mxu0 %vm5771_vm4, %v8885_v22 }
 0x54a   : > { %v1957_v5 = vpop.xlane.xlu1 %1956 }
 0x54b   : > { %v1971_v60 = vsub.f32 %v7655_v4, %v1957_v5 }
 0x54d   : > { %v1986_v11 = vmul.f32 1.442695, %v1971_v60 }
 0x54e   : > { %v1960_v36 = vpop.xlane.xlu1 %1959  ;;  %v1964_v55 = vpop.xlane.xlu0 %1963 }
 0x54f   : > { %5555 = vpow2.f32 %v1986_v11  ;;  %v1972_v26 = vsub.f32 %v7657_v29, %v1960_v36  ;;  %v1973_v30 = vsub.f32 %v7659_v7, %v1964_v55 }
 0x551   : > { %v1988_v25 = vmul.f32 1.442695, %v1972_v26  ;;  %v1990_v0 = vmul.f32 1.442695, %v1973_v30 }
 0x552   : > { %v2375_v1 = vpop.xlane.xlu0 %2374  ;;  %v2381_v18 = vpop.xlane.xlu1 %2380 }
 0x553   : > { %5557 = vpow2.f32 %v1988_v25  ;;  %v2400_v63 = vsub.f32 %v7663_v6, %v2375_v1  ;;  %v2402_v32 = vsub.f32 %v7669_v45, %v2381_v18 }
 0x554   : > { %5559 = vpow2.f32 %v1990_v0 }
 0x555   : > { %v2409_v46 = vmul.f32 1.442695, %v2400_v63  ;;  %v2413_v51 = vmul.f32 1.442695, %v2402_v32 }
 0x556   : > { %v2378_v4 = vpop.xlane.xlu0 %2377  ;;  %v2387_v47 = vpop.xlane.xlu1 %2386 }
 0x557   : > { %v2401_v48 = vsub.f32 %v7665_v61, %v2378_v4  ;;  %5561 = vpow2.f32 %v2409_v46  ;;  %v2404_v61 = vsub.f32 %v7673_v62, %v2387_v47 }
 0x559   : > { %v5556_v3 = vpop.eup %5555  ;;  %v2411_v29 = vmul.f32 1.442695, %v2401_v48 }
 0x55a   : > { %4876 = vmatmul.mubr.msk.f32.gmra.mrb[30].mxu0 %vm1936_vm11, %v5556_v3  ;;  %v2384_v7 = vpop.xlane.xlu0 %2383  ;;  %v2393_v19 = vpop.xlane.xlu1 %2392  ;;  %v2010_v13 = vsel %vm1936_vm11, %v5556_v3, 0.0 }
 0x55b   : > { %5563 = vpow2.f32 %v2411_v29  ;;  %v2403_v6 = vsub.f32 %v7671_v52, %v2384_v7  ;;  %2011 = vadd.xlane.f32.xlu1 %v2010_v13  ;;  %4878 = vmatprep.mubr.msk.f32.mxu0 %vm5771_vm4, %v8885_v22  ;;  %v2417_v52 = vmul.f32 1.442695, %v2404_v61  ;;  %v2406_v26 = vsub.f32 %v7677_v42, %v2393_v19 }
 0x55c   : > { %5565 = vpow2.f32 %v2413_v51 }
 0x55d   : > { %v5558_v45 = vpop.eup %5557  ;;  %v2415_v15 = vmul.f32 1.442695, %v2403_v6  ;;  %v2421_v42 = vmul.f32 1.442695, %v2406_v26 }
 0x55e   : > { %4879 = vmatmul.mubr.msk.f32.gmra.mrb[32].mxu0 %vm1936_vm11, %v5558_v45  ;;  %v2390_v10 = vpop.xlane.xlu0 %2389  ;;  %v2399_v28 = vpop.xlane.xlu1 %2398  ;;  %v2013_v35 = vsel %vm1936_vm11, %v5558_v45, 0.0 }
 0x55f   : > { %v5560_v9 = vpop.eup %5559  ;;  %2014 = vadd.xlane.f32.xlu1 %v2013_v35  ;;  %4881 = vmatprep.mubr.msk.f32.mxu0 %vm5771_vm4, %v8885_v22  ;;  %5567 = vpow2.f32 %v2415_v15  ;;  %v2405_v5 = vsub.f32 %v7675_v16, %v2390_v10 }
 0x560   : > { %v2016_v11 = vsel %vm1961_vm14, %v5560_v9, 0.0  ;;  %5569 = vpow2.f32 %v2417_v52 }
 0x561   : > { %v5562_v36 = vpop.eup %5561  ;;  %v2419_v30 = vmul.f32 1.442695, %v2405_v5 }
 0x562   : > { %4882 = vmatmul.mubr.msk.f32.gmra.mrb[34].mxu0 %vm1936_vm11, %v5560_v9  ;;  %v2396_v60 = vpop.xlane.xlu0 %2395  ;;  %v7868_v62 = vpop.xlane.xlu1 %2785  ;;  %v2427_v63 = vsel %vm1936_vm11, %v5562_v36, 0.0  ;;  %v2879_v9 = vsel %vm7489_vm7, %v7791_v37, 0.0 }
 0x563   : > { %2017 = vadd.xlane.f32.xlu1 %v2016_v11  ;;  %4947 = vmatprep.mubr.msk.f32.mxu0 %vm5771_vm4, %v8885_v22  ;;  %5571 = vpow2.f32 %v2419_v30  ;;  %v2407_v32 = vsub.f32 %v7679_v8, %v2396_v60  ;;  %v2408_v8 = vsub.f32 %v7681_v33, %v2399_v28  ;;  %v2809_v28 = vsub.f32 %v7691_v58, %v7868_v62 }
 0x564   : > { %5573 = vpow2.f32 %v2421_v42 }
 0x565   : > { %v5564_v16 = vpop.eup %5563  ;;  %v2423_v3 = vmul.f32 1.442695, %v2407_v32  ;;  %v2425_v33 = vmul.f32 1.442695, %v2408_v8  ;;  %v2819_v58 = vmul.f32 1.442695, %v2809_v28 }
 0x566   : > { %4948 = vmatmul.mubr.msk.f32.vlgmr.msra.gmra.mrb[36].mxu0 %vm1936_vm11, %v5562_v36  ;;  %v2783_v25 = vpop.xlane.xlu0 %2782  ;;  %v7882_v0 = vpop.xlane.xlu1 %2791  ;;  %v2430_v1 = vsel %vm1936_vm11, %v5564_v16, 0.0 }
 0x567   : > { %v5566_v18 = vpop.eup %5565  ;;  %5384 = vmatpush3.bf16.msk.msra.mxu0 %vm7876_vm12, %v7319_v44  ;;  %2431 = vadd.xlane.f32.xlu0 %v2430_v1  ;;  %5575 = vpow2.f32 %v2423_v3  ;;  %v2808_v13 = vsub.f32 %v7685_v49, %v2783_v25  ;;  %v2811_v26 = vsub.f32 %v7703_v31, %v7882_v0 }
 0x568   : > { %2428 = vadd.xlane.f32.xlu1 %v2427_v63  ;;  %4950 = vmatprep.mubr.msk.f32.mxu0 %vm5771_vm4, %v8885_v22  ;;  %v2433_v47 = vsel %vm1936_vm11, %v5566_v18, 0.0  ;;  %5577 = vpow2.f32 %v2425_v33 }
 0x569   : > { %5385 = vmatprep.subr.bf16.mxu0 %v8881_v54  ;;  %v5568_v48 = vpop.eup %5567  ;;  %v2817_v49 = vmul.f32 1.442695, %v2808_v13  ;;  %v2823_v63 = vmul.f32 1.442695, %v2811_v26  ;;  %v3287_v26 = vsel %vm7568_vm10, %v7791_v37, 0.0 }
 0x56a   : > { %4951 = vmatmul.mubr.msk.f32.gmra.mrb[38].mxu0 %vm1936_vm11, %v5564_v16  ;;  %v2789_v46 = vpop.xlane.xlu0 %2788  ;;  %v7894_v4 = vpop.xlane.xlu1 %2797  ;;  %v2436_v7 = vsel %vm1936_vm11, %v5568_v48, 0.0 }
 0x56b   : > { %5388 = vmatpush3.bf16.msk.msra.mxu0 %vm7876_vm12, %v7325_v24  ;;  %2434 = vadd.xlane.f32.xlu0 %v2433_v47  ;;  %v5570_v19 = vpop.eup %5569  ;;  %v2810_v60 = vsub.f32 %v7697_v59, %v2789_v46 }
 0x56c   : > { %4953 = vmatprep.mubr.msk.f32.mxu0 %vm5771_vm4, %v8885_v22  ;;  %5389 = vmatprep.subr.bf16.mxu0 %v8881_v54  ;;  %v2439_v61 = vsel %vm1936_vm11, %v5570_v19, 0.0 }
 0x56d   : > { %v5572_v15 = vpop.eup %5571  ;;  %v2821_v59 = vmul.f32 1.442695, %v2810_v60 }
 0x56e   : > { %4954 = vmatmul.mubr.msk.f32.gmra.mrb[40].mxu0 %vm1936_vm11, %v5566_v18  ;;  %v7905_v51 = vpop.xlane.xlu0 %2794  ;;  %v7907_v29 = vpop.xlane.xlu1 %2803 }
 0x56f   : > { %5392 = vmatpush3.bf16.msk.msra.mxu0 %vm7876_vm12, %v7338_v12  ;;  %2437 = vadd.xlane.f32.xlu0 %v2436_v7  ;;  %v5574_v5 = vpop.eup %5573  ;;  %v2812_v31 = vsub.f32 %v7709_v20, %v7905_v51  ;;  %v2813_v20 = vsub.f32 %v7715_v27, %v7894_v4 }
 0x570   : > { %4956 = vmatprep.mubr.msk.f32.mxu0 %vm5771_vm4, %v8885_v22  ;;  %5393 = vmatprep.subr.bf16.mxu0 %v8881_v54  ;;  %v2445_v36 = vsel %vm1936_vm11, %v5574_v5, 0.0 }
 0x571   : > { %v5576_v55 = vpop.eup %5575  ;;  %v2825_v8 = vmul.f32 1.442695, %v2812_v31  ;;  %v2827_v33 = vmul.f32 1.442695, %v2813_v20 }
 0x572   : > { %4957 = vmatmul.mubr.msk.f32.gmra.mrb[42].mxu0 %vm1936_vm11, %v5568_v48  ;;  %v7918_v6 = vpop.xlane.xlu0 %2800  ;;  %v3191_v45 = vpop.xlane.xlu1 %3190  ;;  %v2448_v1 = vsel %vm1936_vm11, %v5576_v55, 0.0 }
 0x573   : > { %5396 = vmatpush3.bf16.msk.msra.mxu0 %vm7876_vm12, %v7788_v43  ;;  %v3216_v10 = vsub.f32 %v7739_v57, %v3191_v45  ;;  %2440 = vadd.xlane.f32.xlu0 %v2439_v61  ;;  %v2442_v57 = vsel %vm1936_vm11, %v5572_v15, 0.0  ;;  %v5578_v18 = vpop.eup %5577 }
 0x574   : > { %4959 = vmatprep.mubr.msk.f32.mxu0 %vm5771_vm4, %v8885_v22  ;;  %5035 = vmatprep.subr.mxu0 %v8885_v22 }
 0x575   : > { %v3225_v35 = vmul.f32 1.442695, %v3216_v10 }
 0x576   : > { %4960 = vmatmul.mubr.msk.f32.gmra.mrb[44].mxu0 %vm1936_vm11, %v5570_v19  ;;  %v7934_v52 = vpop.xlane.xlu0 %2806 }
 0x577   : > { %5036 = vmatpush3.msk.msra.mxu0 %vm787_vm2, %v2879_v9  ;;  %2443 = vadd.xlane.f32.xlu0 %v2442_v57  ;;  %5579 = vpow2.f32 %v3225_v35 }
 0x578   : > { %4962 = vmatprep.mubr.msk.f32.mxu0 %vm5771_vm4, %v8885_v22  ;;  %5413 = vmatprep.subr.bf16.mxu0 %v8881_v54  ;;  %5581 = vpow2.f32 %v2817_v49 }
 0x579   : > { %v3197_v50 = vpop.xlane.xlu1 %3196  ;;  %5583 = vpow2.f32 %v2819_v58 }
 0x57a   : > { %v3218_v62 = vsub.f32 %v7749_v38, %v3197_v50  ;;  %4963 = vmatmul.mubr.msk.f32.gmra.mrb[46].mxu0 %vm1936_vm11, %v5572_v15  ;;  %v3194_v11 = vpop.xlane.xlu0 %3193 }
 0x57b   : > { %v3217_v16 = vsub.f32 %v7745_v53, %v3194_v11  ;;  %2446 = vadd.xlane.f32.xlu0 %v2445_v36  ;;  %4965 = vmatprep.mubr.msk.f32.mxu0 %vm5771_vm4, %v8885_v22 }
 0x57c   : > { %v3229_v25 = vmul.f32 1.442695, %v3218_v62 }
 0x57d   : > { %v3227_v30 = vmul.f32 1.442695, %v3217_v16 }
 0x57e   : > { %4966 = vmatmul.mubr.msk.f32.gmra.mrb[48].mxu0 %vm1936_vm11, %v5574_v5  ;;  %v3200_v38 = vpop.xlane.xlu0 %3199  ;;  %v2816_v5 = vsub.f32 %v7733_v23, %v7934_v52 }
 0x57f   : > { %5585 = vpow2.f32 %v3227_v30  ;;  %v3219_v53 = vsub.f32 %v7755_v56, %v3200_v38  ;;  %2449 = vadd.xlane.f32.xlu0 %v2448_v1  ;;  %4968 = vmatprep.mubr.msk.f32.mxu0 %vm5771_vm4, %v8885_v22  ;;  %v2451_v56 = vsel %vm1961_vm14, %v5578_v18, 0.0 }
 0x580   : > { %5587 = vpow2.f32 %v2821_v59 }
 0x581   : > { %v3203_v0 = vpop.xlane.xlu1 %3202  ;;  %v7957_v42 = vpop.eup %5579  ;;  %5589 = vpow2.f32 %v3229_v25  ;;  %v3231_v32 = vmul.f32 1.442695, %v3219_v53 }
 0x582   : > { %v3220_v46 = vsub.f32 %v7759_v40, %v3203_v0  ;;  %4969 = vmatmul.mubr.msk.f32.gmra.mrb[50].mxu0 %vm1936_vm11, %v5576_v55  ;;  %v5582_v47 = vpop.eup %5581  ;;  %v3243_v48 = vsel %vm1936_vm11, %v7957_v42, 0.0  ;;  %5591 = vpow2.f32 %v2823_v63 }
 0x583   : > { %2452 = vadd.xlane.f32.xlu0 %v2451_v56  ;;  %4971 = vmatprep.mubr.msk.f32.mxu0 %vm5771_vm4, %v8885_v22  ;;  %v5584_v40 = vpop.eup %5583  ;;  %5593 = vpow2.f32 %v3231_v32  ;;  %v2835_v19 = vsel %vm1936_vm11, %v5582_v47, 0.0 }
 0x584   : > { %3244 = vadd.xlane.f32.xlu1 %v3243_v48  ;;  %v3233_v51 = vmul.f32 1.442695, %v3220_v46  ;;  %5595 = vpow2.f32 %v2825_v8  ;;  %v2838_v45 = vsel %vm1936_vm11, %v5584_v40, 0.0  ;;  %v3447_v46 = vld [vmem:[%s8691_s6 + $0x8] sm:$0xff]  ;;  %v3449_v48 = vld [vmem:[%s8691_s6 + $0x18] sm:$0xff] }
 0x585   : > { %v3206_v3 = vpop.xlane.xlu0 %3205 }
 0x586   : > { %v3221_v7 = vsub.f32 %v7763_v39, %v3206_v3  ;;  %4972 = vmatmul.mubr.msk.f32.gmra.mrb[52].mxu0 %vm1936_vm11, %v5578_v18  ;;  %v2814_v39 = vsub.f32 %v7721_v41, %v7918_v6  ;;  %5597 = vpow2.f32 %v3233_v51  ;;  %v2815_v41 = vsub.f32 %v7727_v34, %v7907_v29 }
 0x587   : > { %2836 = vadd.xlane.f32.xlu0 %v2835_v19  ;;  %5037 = vmatprep.mubr.msk.f32.mxu0 %vm5771_vm4, %v8885_v22  ;;  %5599 = vpow2.f32 %v2827_v33 }
 0x588   : > { %v3235_v61 = vmul.f32 1.442695, %v3221_v7 }
 0x589   : > { %v7980_v4 = vpop.eup %5585  ;;  %v3209_v13 = vpop.xlane.xlu1 %3208 }
 0x58a   : > { %v3222_v15 = vsub.f32 %v7767_v17, %v3209_v13  ;;  %5038 = vmatmul.mubr.msk.f32.vlgmr.msra.gmra.mrb[54].mxu0 %vm1936_vm11, %v5582_v47  ;;  %v3246_v10 = vsel %vm1936_vm11, %v7980_v4, 0.0  ;;  %v5588_v28 = vpop.eup %5587  ;;  %v2829_v17 = vmul.f32 1.442695, %v2814_v39  ;;  %5601 = vpow2.f32 %v3235_v61  ;;  %v3448_v47 = vld [vmem:[%s8691_s6 + $0x10] sm:$0xff] }
 0x58b   : > { %5416 = vmatpush3.bf16.msk.msra.mxu0 %vm7976_vm13, %v7319_v44  ;;  %2839 = vadd.xlane.f32.xlu0 %v2838_v45  ;;  %v7992_v49 = vpop.eup %5589  ;;  %v2841_v44 = vsel %vm1936_vm11, %v5588_v28, 0.0  ;;  %v5433_v20 = vpack.c.bf16 %v3449_v48, %v3448_v47 }
 0x58c   : > { %3247 = vadd.xlane.f32.xlu1 %v3246_v10  ;;  %5040 = vmatprep.mubr.msk.f32.mxu0 %vm5771_vm4, %v8885_v22  ;;  %v3237_v35 = vmul.f32 1.442695, %v3222_v15  ;;  %v5592_v57 = vpop.eup %5591  ;;  %v3249_v34 = vsel %vm1936_vm11, %v7992_v49, 0.0  ;;  %5603 = vpow2.f32 %v2829_v17 }
 0x58d   : > { %5417 = vmatprep.subr.bf16.mxu0 %v8881_v54  ;;  %v3212_v6 = vpop.xlane.xlu0 %3211  ;;  %v8007_v29 = vpop.eup %5593  ;;  %v2844_v50 = vsel %vm1936_vm11, %v5592_v57, 0.0 }
 0x58e   : > { %v3223_v9 = vsub.f32 %v7771_v21, %v3212_v6  ;;  %5041 = vmatmul.mubr.msk.f32.gmra.mrb[56].mxu0 %vm1936_vm11, %v5584_v40  ;;  %v2831_v21 = vmul.f32 1.442695, %v2815_v41  ;;  %5605 = vpow2.f32 %v3237_v35  ;;  %v5596_v62 = vpop.eup %5595  ;;  %v3252_v23 = vsel %vm1936_vm11, %v8007_v29, 0.0 }
 0x58f   : > { %5420 = vmatpush3.bf16.msk.msra.mxu0 %vm7976_vm13, %v7325_v24  ;;  %2842 = vadd.xlane.f32.xlu0 %v2841_v44 }
 0x590   : > { %3250 = vadd.xlane.f32.xlu1 %v3249_v34  ;;  %5043 = vmatprep.mubr.msk.f32.mxu0 %vm5771_vm4, %v8885_v22  ;;  %v3239_v24 = vmul.f32 1.442695, %v3223_v9  ;;  %v8022_v52 = vpop.eup %5597  ;;  %5607 = vpow2.f32 %v2831_v21 }
 0x591   : > { %5421 = vmatprep.subr.bf16.mxu0 %v8881_v54  ;;  %v3215_v58 = vpop.xlane.xlu1 %3214  ;;  %v5600_v36 = vpop.eup %5599  ;;  %v3255_v55 = vsel %vm1936_vm11, %v8022_v52, 0.0 }
 0x592   : > { %v3224_v60 = vsub.f32 %v7775_v14, %v3215_v58  ;;  %5044 = vmatmul.mubr.msk.f32.gmra.mrb[58].mxu0 %vm1936_vm11, %v5588_v28  ;;  %v2833_v14 = vmul.f32 1.442695, %v2816_v5  ;;  %5609 = vpow2.f32 %v3239_v24 }
 0x593   : > { %5424 = vmatpush3.bf16.msk.msra.mxu0 %vm7976_vm13, %v7338_v12  ;;  %2845 = vadd.xlane.f32.xlu0 %v2844_v50  ;;  %v2847_v12 = vsel %vm1936_vm11, %v5596_v62, 0.0 }
 0x594   : > { %3253 = vadd.xlane.f32.xlu1 %v3252_v23  ;;  %5046 = vmatprep.mubr.msk.f32.mxu0 %vm5771_vm4, %v8885_v22  ;;  %v3241_v11 = vmul.f32 1.442695, %v3224_v60  ;;  %v5602_v16 = vpop.eup %5601  ;;  %5611 = vpow2.f32 %v2833_v14 }
 0x595   : > { %5425 = vmatprep.subr.bf16.mxu0 %v8881_v54  ;;  %v3258_v30 = vsel %vm1936_vm11, %v5602_v16, 0.0 }
 0x596   : > { %5047 = vmatmul.mubr.msk.f32.gmra.mrb[60].mxu0 %vm1936_vm11, %v5592_v57  ;;  %5613 = vpow2.f32 %v3241_v11  ;;  %v5604_v59 = vpop.eup %5603 }
 0x597   : > { %5428 = vmatpush3.bf16.msk.msra.mxu0 %vm7976_vm13, %v7788_v43  ;;  %2848 = vadd.xlane.f32.xlu0 %v2847_v12  ;;  %v2850_v43 = vsel %vm1936_vm11, %v5600_v36, 0.0  ;;  %v2853_v2 = vsel %vm1936_vm11, %v5604_v59, 0.0 }
 0x598   : > { %3256 = vadd.xlane.f32.xlu1 %v3255_v55  ;;  %5049 = vmatprep.mubr.msk.f32.mxu0 %vm5771_vm4, %v8885_v22  ;;  %v5606_v25 = vpop.eup %5605 }
 0x599   : > { %5125 = vmatprep.subr.mxu0 %v8885_v22  ;;  %v3261_v38 = vsel %vm1936_vm11, %v5606_v25, 0.0 }
 0x59a   : > { %5050 = vmatmul.mubr.msk.f32.gmra.mrb[62].mxu0 %vm1936_vm11, %v5596_v62  ;;  %v5608_v37 = vpop.eup %5607 }
 0x59b   : > { %5126 = vmatpush3.msk.msra.mxu0 %vm787_vm2, %v3287_v26  ;;  %2851 = vadd.xlane.f32.xlu0 %v2850_v43  ;;  %v2856_v18 = vsel %vm1936_vm11, %v5608_v37, 0.0 }
 0x59c   : > { %3259 = vadd.xlane.f32.xlu1 %v3258_v30  ;;  %5052 = vmatprep.mubr.msk.f32.mxu0 %vm5771_vm4, %v8885_v22  ;;  %v5610_v1 = vpop.eup %5609 }
 0x59d   : > { %5429 = vmatprep.subr.bf16.mxu0 %v8881_v54  ;;  %v3264_v63 = vsel %vm1936_vm11, %v5610_v1, 0.0 }
 0x59e   : > { %5053 = vmatmul.mubr.msk.f32.gmra.mrb[64].mxu0 %vm1936_vm11, %v5600_v36  ;;  %v5612_v53 = vpop.eup %5611 }
 0x59f   : > { %2854 = vadd.xlane.f32.xlu0 %v2853_v2  ;;  %5055 = vmatprep.mubr.msk.f32.mxu0 %vm5771_vm4, %v8885_v22  ;;  %v2859_v0 = vsel %vm1961_vm14, %v5612_v53, 0.0 }
 0x5a0   : > { %3262 = vadd.xlane.f32.xlu1 %v3261_v38  ;;  %v5614_v31 = vpop.eup %5613 }
 0x5a1   : > { %v3267_v32 = vsel %vm1961_vm14, %v5614_v31, 0.0 }
 0x5a2   : > { %5056 = vmatmul.mubr.msk.f32.gmra.mrb[66].mxu0 %vm1936_vm11, %v5604_v59 }
 0x5a3   : > { %2857 = vadd.xlane.f32.xlu0 %v2856_v18  ;;  %5058 = vmatprep.mubr.msk.f32.mxu0 %vm5771_vm4, %v8885_v22  ;;  %v1994_v15 = vpop.xlane.xlu0 %1993 }
 0x5a4   : > { %3265 = vadd.xlane.f32.xlu1 %v3264_v63  ;;  %5615 = vrcp.f32 %v1994_v15 }
 0x5a6   : > { %5059 = vmatmul.mubr.msk.f32.gmra.mrb[68].mxu0 %vm1936_vm11, %v5608_v37 }
 0x5a7   : > { %2860 = vadd.xlane.f32.xlu0 %v2859_v0  ;;  %5061 = vmatprep.mubr.msk.f32.mxu0 %vm5771_vm4, %v8885_v22  ;;  %v1997_v40 = vpop.xlane.xlu1 %1996 }
 0x5a8   : > { %3268 = vadd.xlane.f32.xlu1 %v3267_v32 }
 0x5aa   : > { %5062 = vmatmul.mubr.msk.f32.gmra.mrb[70].mxu0 %vm1936_vm11, %v5612_v53 }
 0x5ab   : > { %5127 = vmatprep.mubr.msk.f32.mxu0 %vm5771_vm4, %v8885_v22 }
 0x5ae   : > { %5128 = vmatmul.mubr.msk.f32.vlgmr.msra.gmra.mrb[72].mxu0 %vm1936_vm11, %v7957_v42  ;;  %v3446_v42 = vld [vmem:[%s8691_s6] sm:$0xff]  ;;  %v5616_v14 = vpop.eup %5615 }
 0x5af   : > { %5130 = vmatprep.mubr.msk.f32.mxu0 %vm5771_vm4, %v8885_v22  ;;  %v5430_v56 = vpack.c.bf16 %v3447_v46, %v3446_v42 }
 0x5b1   : > { %5431 = vmatpush3.bf16.msra.mxu0 %v5430_v56  ;;  %5467 = vmatpush3.bf16.msra.mxu1 %v5430_v56 }
 0x5b2   : > { %5131 = vmatmul.mubr.msk.f32.gmra.mrb[74].mxu0 %vm1936_vm11, %v7980_v4  ;;  %5432 = vmatprep.subr.bf16.mxu0 %v8881_v54  ;;  %v2000_v4 = vpop.xlane.xlu1 %1999 }
 0x5b3   : > { %5133 = vmatprep.mubr.msk.f32.mxu0 %vm5771_vm4, %v8885_v22  ;;  %5466 = vmatprep.subr.bf16.mxu1 %v8881_v54 }
 0x5b5   : > { %5434 = vmatpush3.bf16.msra.mxu0 %v5433_v20  ;;  %5468 = vmatpush3.bf16.msra.mxu1 %v5433_v20 }
 0x5b6   : > { %5134 = vmatmul.mubr.msk.f32.gmra.mrb[76].mxu0 %vm1936_vm11, %v7992_v49  ;;  %5435 = vmatprep.subr.bf16.mxu0 %v8881_v54  ;;  %v2003_v13 = vpop.xlane.xlu1 %2002 }
 0x5b7   : > { %5136 = vmatprep.mubr.msk.f32.mxu0 %vm5771_vm4, %v8885_v22  ;;  %5441 = vmatprep.subr.bf16.mxu1 %v8881_v54 }
 0x5ba   : > { %5137 = vmatmul.mubr.msk.f32.gmra.mrb[78].mxu0 %vm1936_vm11, %v8007_v29  ;;  %v2006_v49 = vpop.xlane.xlu1 %2005 }
 0x5bb   : > { %5139 = vmatprep.mubr.msk.f32.mxu0 %vm5771_vm4, %v8885_v22 }
 0x5be   : > { %5140 = vmatmul.mubr.msk.f32.gmra.mrb[80].mxu0 %vm1936_vm11, %v8022_v52  ;;  %v2009_v17 = vpop.xlane.xlu1 %2008 }
 0x5bf   : > { %5142 = vmatprep.mubr.msk.f32.mxu0 %vm5771_vm4, %v8885_v22 }
 0x5c2   : > { %5143 = vmatmul.mubr.msk.f32.gmra.mrb[82].mxu0 %vm1936_vm11, %v5602_v16 }
 0x5c3   : > { %5145 = vmatprep.mubr.msk.f32.mxu0 %vm5771_vm4, %v8885_v22 }
 0x5c6   : > { %5146 = vmatmul.mubr.msk.f32.gmra.mrb[84].mxu0 %vm1936_vm11, %v5606_v25 }
 0x5c7   : > { %5148 = vmatprep.mubr.msk.f32.mxu0 %vm5771_vm4, %v8885_v22 }
 0x5ca   : > { %5149 = vmatmul.mubr.msk.f32.gmra.mrb[86].mxu0 %vm1936_vm11, %v5610_v1 }
 0x5cb   : > { %5151 = vmatprep.mubr.msk.f32.mxu0 %vm5771_vm4, %v8885_v22 }
 0x5ce   : > { %5152 = vmatmul.mubr.msk.f32.gmra.mrb[88].mxu0 %vm1936_vm11, %v5614_v31 }
 0x5cf   : > { %5162 = vmatprep.mubr.msk.f32.mxu0 %vm5771_vm4, %v8885_v22 }
 0x5e8   : > { %v2012_v35 = vpop.xlane.xlu1 %2011 }
 0x5ec   : > { %v2015_v44 = vpop.xlane.xlu1 %2014 }
 0x5f0   : > { %v8119_v34 = vpop.xlane.xlu1 %2017 }
 0x5f4   : > { %v2432_v41 = vpop.xlane.xlu0 %2431 }
 0x5f5   : > { %v2429_v21 = vpop.xlane.xlu1 %2428 }
 0x5f6   : > { %5617 = vrcp.f32 %v2429_v21 }
 0x5f7   : > { %5619 = vrcp.f32 %v1997_v40 }
 0x5f8   : > { %v2435_v6 = vpop.xlane.xlu0 %2434  ;;  %5621 = vrcp.f32 %v2432_v41 }
 0x5f9   : > { %5623 = vrcp.f32 %v2000_v4 }
 0x5fa   : > { %v2160_v8 = vpop.f32.mrb[18].mxu0  ;;  %5625 = vrcp.f32 %v2435_v6 }
 0x5fb   : > { %v4859_v3 = vpop.f32.mrb[19].mxu0  ;;  %5627 = vrcp.f32 %v2003_v13  ;;  %v2204_v36 = vmul.f32 %v5616_v14, %v2160_v8 }
 0x5fc   : > { %v2438_v9 = vpop.xlane.xlu0 %2437 }
 0x5fd   : > { %5629 = vrcp.f32 %v2438_v9 }
 0x5fe   : > { %v2165_v51 = vpop.f32.mrb[20].mxu0  ;;  %5631 = vrcp.f32 %v2006_v49 }
 0x5ff   : > { %v4862_v7 = vpop.f32.mrb[21].mxu0 }
 0x600   : > { %v2441_v57 = vpop.xlane.xlu0 %2440  ;;  %v5618_v11 = vpop.eup %5617 }
 0x601   : > { %v5620_v43 = vpop.eup %5619  ;;  %5633 = vrcp.f32 %v2441_v57 }
 0x602   : > { %v2170_v19 = vpop.f32.mrb[22].mxu0  ;;  %v5622_v30 = vpop.eup %5621  ;;  %v2205_v2 = vmul.f32 %v5620_v43, %v2165_v51  ;;  %5635 = vrcp.f32 %v2009_v17 }
 0x603   : > { %v4865_v27 = vpop.f32.mrb[23].mxu0  ;;  %v5624_v1 = vpop.eup %5623 }
 0x604   : > { %v2444_v29 = vpop.xlane.xlu0 %2443  ;;  %v5626_v63 = vpop.eup %5625  ;;  %v2206_v0 = vmul.f32 %v5624_v1, %v2170_v19 }
 0x605   : > { %5637 = vrcp.f32 %v2444_v29  ;;  %v5628_v46 = vpop.eup %5627 }
 0x606   : > { %v8113_v33 = vpop.f32.mrb[24].mxu0  ;;  %5639 = vrcp.f32 %v2012_v35 }
 0x607   : > { %v4868_v39 = vpop.f32.mrb[25].mxu0  ;;  %v5630_v47 = vpop.eup %5629  ;;  %v2207_v20 = vmul.f32 %v5628_v46, %v8113_v33 }
 0x608   : > { %v2447_v58 = vpop.xlane.xlu0 %2446  ;;  %v5632_v51 = vpop.eup %5631 }
 0x609   : > { %5641 = vrcp.f32 %v2447_v58 }
 0x60a   : > { %v8115_v45 = vpop.f32.mrb[26].mxu0  ;;  %5643 = vrcp.f32 %v2015_v44 }
 0x60b   : > { %v4871_v61 = vpop.f32.mrb[27].mxu0  ;;  %v5634_v27 = vpop.eup %5633  ;;  %v2208_v4 = vmul.f32 %v5632_v51, %v8115_v45 }
 0x60c   : > { %v2450_v62 = vpop.xlane.xlu0 %2449  ;;  %v5636_v61 = vpop.eup %5635 }
 0x60d   : > { %5645 = vrcp.f32 %v2450_v62 }
 0x60e   : > { %v8117_v10 = vpop.f32.mrb[28].mxu0  ;;  %5647 = vrcp.f32 %v8119_v34 }
 0x60f   : > { %v4874_v28 = vpop.f32.mrb[29].mxu0  ;;  %v5638_v33 = vpop.eup %5637  ;;  %v2209_v41 = vmul.f32 %v5636_v61, %v8117_v10 }
 0x610   : > { %v2453_v55 = vpop.xlane.xlu0 %2452  ;;  %v5640_v35 = vpop.eup %5639 }
 0x611   : > { %5649 = vrcp.f32 %v2453_v55  ;;  %v3245_v46 = vpop.xlane.xlu1 %3244 }
 0x613   : > { %v5642_v45 = vpop.eup %5641 }
 0x614   : > { %v2837_v18 = vpop.xlane.xlu0 %2836 }
 0x615   : > { %5651 = vrcp.f32 %v2837_v18 }
 0x618   : > { %v2840_v8 = vpop.xlane.xlu0 %2839 }
 0x619   : > { %5653 = vrcp.f32 %v2840_v8 }
 0x61c   : > { %v2843_v15 = vpop.xlane.xlu0 %2842 }
 0x61d   : > { %5655 = vrcp.f32 %v2843_v15 }
 0x620   : > { %v2846_v57 = vpop.xlane.xlu0 %2845 }
 0x621   : > { %5657 = vrcp.f32 %v2846_v57 }
 0x62d   : > { %v8121_v5 = vpop.f32.mrb[30].mxu0 }
 0x62e   : > { %v4877_v24 = vpop.f32.mrb[31].mxu0  ;;  %v2210_v29 = vmul.f32 %v5640_v35, %v8121_v5 }
 0x62f   : > { %v5644_v24 = vpop.eup %5643 }
 0x630   : > { %v5646_v34 = vpop.eup %5645 }
 0x631   : > { %v8123_v60 = vpop.f32.mrb[32].mxu0 }
 0x632   : > { %v4880_v50 = vpop.f32.mrb[33].mxu0  ;;  %v2211_v10 = vmul.f32 %v5644_v24, %v8123_v60 }
 0x635   : > { %v8125_v23 = vpop.f32.mrb[34].mxu0 }
 0x636   : > { %v4883_v52 = vpop.f32.mrb[35].mxu0 }
 0x639   : > { %v2568_v12 = vpop.f32.mrb[36].mxu0 }
 0x63a   : > { %v2612_v16 = vmul.f32 %v5618_v11, %v2568_v12  ;;  %v4949_v26 = vpop.f32.mrb[37].mxu0  ;;  %v5648_v11 = vpop.eup %5647 }
 0x63b   : > { %v2849_v12 = vpop.xlane.xlu0 %2848  ;;  %v5650_v55 = vpop.eup %5649  ;;  %v2212_v5 = vmul.f32 %v5648_v11, %v8125_v23 }
 0x63c   : > { %v8127_v59 = vadd.f32 %v2612_v16, %v2204_v36  ;;  %5659 = vrcp.f32 %v2849_v12 }
 0x63d   : > { %v2573_v25 = vpop.f32.mrb[38].mxu0 }
 0x63e   : > { %v2613_v37 = vmul.f32 %v5622_v30, %v2573_v25  ;;  %v4952_v38 = vpop.f32.mrb[39].mxu0  ;;  %v5652_v25 = vpop.eup %5651 }
 0x63f   : > { %v5654_v18 = vpop.eup %5653 }
 0x640   : > { %v8129_v53 = vadd.f32 %v2613_v37, %v2205_v2  ;;  %v2852_v37 = vpop.xlane.xlu0 %2851 }
 0x641   : > { %v2578_v31 = vpop.f32.mrb[40].mxu0  ;;  %5661 = vrcp.f32 %v2852_v37 }
 0x642   : > { %v2614_v32 = vmul.f32 %v5626_v63, %v2578_v31  ;;  %v4955_v42 = vpop.f32.mrb[41].mxu0 }
 0x643   : > { %v5656_v42 = vpop.eup %5655 }
 0x644   : > { %v8131_v56 = vadd.f32 %v2614_v32, %v2206_v0  ;;  %v2855_v23 = vpop.xlane.xlu0 %2854 }
 0x645   : > { %v2583_v48 = vpop.f32.mrb[42].mxu0  ;;  %5663 = vrcp.f32 %v2855_v23 }
 0x646   : > { %v2615_v3 = vmul.f32 %v5630_v47, %v2583_v48  ;;  %v4958_v40 = vpop.f32.mrb[43].mxu0 }
 0x648   : > { %v8134_v7 = vadd.f32 %v2615_v3, %v2207_v20  ;;  %v3248_v3 = vpop.xlane.xlu1 %3247  ;;  %v2858_v51 = vpop.xlane.xlu0 %2857 }
 0x649   : > { %v2588_v19 = vpop.f32.mrb[44].mxu0  ;;  %5665 = vrcp.f32 %v2858_v51 }
 0x64a   : > { %v2616_v39 = vmul.f32 %v5634_v27, %v2588_v19  ;;  %v4961_v13 = vpop.f32.mrb[45].mxu0 }
 0x64c   : > { %v8137_v28 = vadd.f32 %v2616_v39, %v2208_v4  ;;  %v3251_v15 = vpop.xlane.xlu1 %3250 }
 0x64d   : > { %v2593_v49 = vpop.f32.mrb[46].mxu0 }
 0x64e   : > { %v2617_v17 = vmul.f32 %v5638_v33, %v2593_v49  ;;  %v4964_v6 = vpop.f32.mrb[47].mxu0  ;;  %v2861_v33 = vpop.xlane.xlu0 %2860 }
 0x64f   : > { %5667 = vrcp.f32 %v2861_v33 }
 0x650   : > { %v8141_v9 = vadd.f32 %v2617_v17, %v2209_v41  ;;  %5669 = vrcp.f32 %v3245_v46 }
 0x651   : > { %v2598_v44 = vpop.f32.mrb[48].mxu0  ;;  %5671 = vrcp.f32 %v3248_v3 }
 0x652   : > { %v2618_v21 = vmul.f32 %v5642_v45, %v2598_v44  ;;  %v4967_v58 = vpop.f32.mrb[49].mxu0  ;;  %v3254_v44 = vpop.xlane.xlu1 %3253  ;;  %5673 = vrcp.f32 %v3251_v15 }
 0x653   : > { %5675 = vrcp.f32 %v3254_v44 }
 0x654   : > { %v8144_v50 = vadd.f32 %v2618_v21, %v2210_v29 }
 0x655   : > { %v2603_v62 = vpop.f32.mrb[50].mxu0 }
 0x656   : > { %v2619_v52 = vmul.f32 %v5646_v34, %v2603_v62  ;;  %v4970_v14 = vpop.f32.mrb[51].mxu0  ;;  %v3257_v62 = vpop.xlane.xlu1 %3256 }
 0x657   : > { %5677 = vrcp.f32 %v3257_v62 }
 0x658   : > { %v8147_v36 = vadd.f32 %v2619_v52, %v2211_v10 }
 0x659   : > { %v2608_v16 = vpop.f32.mrb[52].mxu0 }
 0x65a   : > { %v2620_v26 = vmul.f32 %v5650_v55, %v2608_v16  ;;  %v4973_v43 = vpop.f32.mrb[53].mxu0  ;;  %v3260_v16 = vpop.xlane.xlu1 %3259 }
 0x65b   : > { %5679 = vrcp.f32 %v3260_v16 }
 0x65c   : > { %v8150_v30 = vadd.f32 %v2620_v26, %v2212_v5 }
 0x65d   : > { %v2976_v2 = vpop.f32.mrb[54].mxu0 }
 0x65e   : > { %v3020_v60 = vmul.f32 %v5652_v25, %v2976_v2  ;;  %v5039_v38 = vpop.f32.mrb[55].mxu0 }
 0x660   : > { %v8153_v1 = vadd.f32 %v3020_v60, %v8127_v59  ;;  %v5658_v59 = vpop.eup %5657 }
 0x661   : > { %v2981_v63 = vpop.f32.mrb[56].mxu0 }
 0x662   : > { %v3021_v31 = vmul.f32 %v5654_v18, %v2981_v63  ;;  %v5042_v0 = vpop.f32.mrb[57].mxu0 }
 0x664   : > { %v8156_v32 = vadd.f32 %v3021_v31, %v8129_v53  ;;  %v5660_v53 = vpop.eup %5659 }
 0x665   : > { %v2986_v47 = vpop.f32.mrb[58].mxu0  ;;  %v5662_v49 = vpop.eup %5661 }
 0x666   : > { %v3022_v48 = vmul.f32 %v5656_v42, %v2986_v47  ;;  %v5045_v20 = vpop.f32.mrb[59].mxu0 }
 0x668   : > { %v8159_v8 = vadd.f32 %v3022_v48, %v8131_v56 }
 0x669   : > { %v2991_v40 = vpop.f32.mrb[60].mxu0 }
 0x66a   : > { %v3023_v27 = vmul.f32 %v5658_v59, %v2991_v40  ;;  %v5048_v19 = vpop.f32.mrb[61].mxu0 }
 0x66c   : > { %v8162_v4 = vadd.f32 %v3023_v27, %v8134_v7  ;;  %v5664_v7 = vpop.eup %5663 }
 0x66d   : > { %v2996_v39 = vpop.f32.mrb[62].mxu0  ;;  %v5666_v58 = vpop.eup %5665 }
 0x66e   : > { %v3024_v13 = vmul.f32 %v5660_v53, %v2996_v39  ;;  %v5051_v61 = vpop.f32.mrb[63].mxu0 }
 0x670   : > { %v8165_v56 = vadd.f32 %v3024_v13, %v8137_v28 }
 0x671   : > { %v3001_v41 = vpop.f32.mrb[64].mxu0 }
 0x672   : > { %v3025_v17 = vmul.f32 %v5662_v49, %v3001_v41  ;;  %v5054_v6 = vpop.f32.mrb[65].mxu0 }
 0x674   : > { %v8168_v35 = vadd.f32 %v3025_v17, %v8141_v9  ;;  %v5668_v9 = vpop.eup %5667 }
 0x675   : > { %v3006_v45 = vpop.f32.mrb[66].mxu0  ;;  %v5670_v55 = vpop.eup %5669 }
 0x676   : > { %v3026_v57 = vmul.f32 %v5664_v7, %v3006_v45  ;;  %v5057_v29 = vpop.f32.mrb[67].mxu0  ;;  %v5672_v25 = vpop.eup %5671 }
 0x677   : > { %v5674_v38 = vpop.eup %5673  ;;  %v4502_v29 = vld [vmem:[%s8692_s7] ss:$0 sm:$0xff] }
 0x678   : > { %v8171_v21 = vadd.f32 %v3026_v57, %v8144_v50  ;;  %v5676_v0 = vpop.eup %5675 }
 0x679   : > { %v3011_v28 = vpop.f32.mrb[68].mxu0  ;;  %v5678_v48 = vpop.eup %5677 }
 0x67a   : > { %v3027_v24 = vmul.f32 %v5666_v58, %v3011_v28  ;;  %v5060_v34 = vpop.f32.mrb[69].mxu0  ;;  %v5680_v51 = vpop.eup %5679 }
 0x67c   : > { %v8174_v10 = vadd.f32 %v3027_v24, %v8147_v36  ;;  %v5750_v24 = vld [vmem:[%s5865_s18] sm:$0xff] }
 0x67d   : > { %v3016_v52 = vpop.f32.mrb[70].mxu0 }
 0x67e   : > { %v3028_v14 = vmul.f32 %v5668_v9, %v3016_v52  ;;  %v5063_v11 = vpop.f32.mrb[71].mxu0 }
 0x680   : > { %v8177_v12 = vadd.f32 %v3028_v14, %v8150_v30  ;;  %v3263_v30 = vpop.xlane.xlu1 %3262  ;;  %v5751_v14 = vld [vmem:[%s5865_s18 + $0x8] sm:$0xff] }
 0x681   : > { %v3384_v50 = vpop.f32.mrb[72].mxu0  ;;  %5681 = vrcp.f32 %v3263_v30 }
 0x682   : > { %v3428_v5 = vmul.f32 %v5670_v55, %v3384_v50  ;;  %v5129_v26 = vpop.f32.mrb[73].mxu0 }
 0x684   : > { %v3437_v43 = vadd.f32 %v3428_v5, %v8153_v1  ;;  %v3266_v42 = vpop.xlane.xlu1 %3265  ;;  %v5752_v5 = vld [vmem:[%s5865_s18 + $0x10] sm:$0xff] }
 0x685   : > { %v3389_v2 = vpop.f32.mrb[74].mxu0  ;;  %5683 = vrcp.f32 %v3266_v42 }
 0x686   : > { %v3429_v36 = vmul.f32 %v5672_v25, %v3389_v2  ;;  %v5132_v37 = vpop.f32.mrb[75].mxu0  ;;  %5163 = vmatmul.mubr.msk.f32.vlgmr.msra.gmra.mrb[90].mxu0 %vm479_vm0, %v3437_v43 }
 0x687   : > { %5197 = vmatprep.mubr.msk.f32.mxu0 %vm5771_vm4, %v8885_v22  ;;  %v5753_v37 = vld [vmem:[%s5865_s18 + $0x18] sm:$0xff] }
 0x688   : > { %v3438_v60 = vadd.f32 %v3429_v36, %v8156_v32 }
 0x689   : > { %v3394_v18 = vpop.f32.mrb[76].mxu0 }
 0x68a   : > { %v3430_v63 = vmul.f32 %v5674_v38, %v3394_v18  ;;  %v5135_v31 = vpop.f32.mrb[77].mxu0  ;;  %5166 = vmatmul.mubr.msk.f32.vlgmr.msra.gmra.mrb[72].mxu1 %vm479_vm0, %v3438_v60 }
 0x68b   : > { %5168 = vmatprep.mubr.msk.f32.mxu1 %vm5771_vm4, %v8885_v22  ;;  %v5682_v39 = vpop.eup %5681  ;;  %v5754_v31 = vld [vmem:[%s5865_s18 + $0x20] sm:$0xff] }
 0x68c   : > { %v3439_v1 = vadd.f32 %v3430_v63, %v8159_v8  ;;  %v3269_v8 = vpop.xlane.xlu1 %3268 }
 0x68d   : > { %v3399_v23 = vpop.f32.mrb[78].mxu0  ;;  %5685 = vrcp.f32 %v3269_v8  ;;  %v5756_v8 = vld [vmem:[%s5865_s18 + $0x30] sm:$0xff] }
 0x68e   : > { %v3431_v46 = vmul.f32 %v5676_v0, %v3399_v23  ;;  %v5138_v47 = vpop.f32.mrb[79].mxu0  ;;  %5169 = vmatmul.mubr.msk.f32.gmra.mrb[74].mxu1 %vm479_vm0, %v3439_v1 }
 0x68f   : > { %5171 = vmatprep.mubr.msk.f32.mxu1 %vm5771_vm4, %v8885_v22  ;;  %v5755_v47 = vld [vmem:[%s5865_s18 + $0x28] sm:$0xff] }
 0x690   : > { %v3440_v32 = vadd.f32 %v3431_v46, %v8162_v4 }
 0x691   : > { %v3404_v20 = vpop.f32.mrb[80].mxu0 }
 0x692   : > { %v3432_v59 = vmul.f32 %v5678_v48, %v3404_v20  ;;  %v5141_v3 = vpop.f32.mrb[81].mxu0  ;;  %5172 = vmatmul.mubr.msk.f32.gmra.mrb[76].mxu1 %vm479_vm0, %v3440_v32 }
 0x693   : > { %5174 = vmatprep.mubr.msk.f32.mxu1 %vm5771_vm4, %v8885_v22 }
 0x694   : > { %v3441_v40 = vadd.f32 %v3432_v59, %v8165_v56  ;;  %v5684_v56 = vpop.eup %5683 }
 0x695   : > { %v3409_v27 = vpop.f32.mrb[82].mxu0 }
 0x696   : > { %v3433_v19 = vmul.f32 %v5680_v51, %v3409_v27  ;;  %v5144_v53 = vpop.f32.mrb[83].mxu0  ;;  %5175 = vmatmul.mubr.msk.f32.gmra.mrb[78].mxu1 %vm479_vm0, %v3441_v40 }
 0x697   : > { %5177 = vmatprep.mubr.msk.f32.mxu1 %vm5771_vm4, %v8885_v22 }
 0x698   : > { %v3442_v4 = vadd.f32 %v3433_v19, %v8168_v35  ;;  %v5686_v35 = vpop.eup %5685 }
 0x699   : > { %v3414_v13 = vpop.f32.mrb[84].mxu0 }
 0x69a   : > { %v3434_v61 = vmul.f32 %v5682_v39, %v3414_v13  ;;  %v5147_v15 = vpop.f32.mrb[85].mxu0  ;;  %5178 = vmatmul.mubr.msk.f32.gmra.mrb[80].mxu1 %vm479_vm0, %v3442_v4  ;;  %v5757_v4 = vld [vmem:[%s5865_s18 + $0x38] sm:$0xff] }
 0x69b   : > { %5180 = vmatprep.mubr.msk.f32.mxu1 %vm5771_vm4, %v8885_v22 }
 0x69c   : > { %v3443_v33 = vadd.f32 %v3434_v61, %v8171_v21 }
 0x69d   : > { %v3419_v49 = vpop.f32.mrb[86].mxu0 }
 0x69e   : > { %v3435_v41 = vmul.f32 %v5684_v56, %v3419_v49  ;;  %v5150_v17 = vpop.f32.mrb[87].mxu0  ;;  %5181 = vmatmul.mubr.msk.f32.gmra.mrb[82].mxu1 %vm479_vm0, %v3443_v33  ;;  %v5758_v56 = vld [vmem:[%s5865_s18 + $0x40] sm:$0x1] }
 0x69f   : > { %5183 = vmatprep.mubr.msk.f32.mxu1 %vm5771_vm4, %v8885_v22 }
 0x6a0   : > { %v3444_v6 = vadd.f32 %v3435_v41, %v8174_v10 }
 0x6a1   : > { %v3424_v7 = vpop.f32.mrb[88].mxu0 }
 0x6a2   : > { %v3436_v45 = vmul.f32 %v5686_v35, %v3424_v7  ;;  %v5153_v44 = vpop.f32.mrb[89].mxu0  ;;  %5184 = vmatmul.mubr.msk.f32.gmra.mrb[84].mxu1 %vm479_vm0, %v3444_v6 }
 0x6a3   : > { %5186 = vmatprep.mubr.msk.f32.mxu1 %vm5771_vm4, %v8885_v22 }
 0x6a4   : > { %v3445_v57 = vadd.f32 %v3436_v45, %v8177_v12 }
 0x6a6   : > { %5187 = vmatmul.mubr.msk.f32.gmra.mrb[86].mxu1 %vm479_vm0, %v3445_v57 }
 0x6a7   : > { %5256 = vmatprep.mubr.msk.f32.mxu1 %vm5771_vm4, %v8885_v22 }
 0x759   : > { %v3550_v21 = vpop.f32.mrb[90].mxu0 }
 0x75a   : > { %v3551_v58 = vadd.f32 %v4502_v29, %v3550_v21  ;;  %v5164_v28 = vpop.f32.mrb[91].mxu0 }
 0x75c   : > { %v8219_v34 = vadd.f32 %v5750_v24, %v3551_v58 }
 0x75d   : > { %v3555_v62 = vpop.f32.mrb[72].mxu1 }
 0x75e   : > { %v3556_v10 = vadd.f32 %v4502_v29, %v3555_v62  ;;  %v5167_v9 = vpop.f32.mrb[73].mxu1  ;;  %v3605_v52 = vsel %vm479_vm0, %v8219_v34, 0.0 }
 0x75f   : > { %3606 = vadd.xlane.f32.xlu0 %v3605_v52 }
 0x760   : > { %v8224_v11 = vadd.f32 %v5751_v14, %v3556_v10 }
 0x761   : > { %v3560_v12 = vpop.f32.mrb[74].mxu1 }
 0x762   : > { %v3561_v55 = vadd.f32 %v4502_v29, %v3560_v12  ;;  %v5170_v50 = vpop.f32.mrb[75].mxu1  ;;  %v3608_v16 = vsel %vm479_vm0, %v8224_v11, 0.0 }
 0x763   : > { %3609 = vadd.xlane.f32.xlu1 %v3608_v16 }
 0x764   : > { %v8229_v26 = vadd.f32 %v5752_v5, %v3561_v55 }
 0x765   : > { %v3565_v43 = vpop.f32.mrb[76].mxu1 }
 0x766   : > { %v3566_v25 = vadd.f32 %v4502_v29, %v3565_v43  ;;  %v5173_v2 = vpop.f32.mrb[77].mxu1  ;;  %v3611_v36 = vsel %vm479_vm0, %v8229_v26, 0.0 }
 0x767   : > { %3612 = vadd.xlane.f32.xlu0 %v3611_v36 }
 0x768   : > { %v8234_v30 = vadd.f32 %v5753_v37, %v3566_v25 }
 0x769   : > { %v3570_v60 = vpop.f32.mrb[78].mxu1 }
 0x76a   : > { %v3571_v38 = vadd.f32 %v4502_v29, %v3570_v60  ;;  %v5176_v18 = vpop.f32.mrb[79].mxu1  ;;  %v3614_v63 = vsel %vm479_vm0, %v8234_v30, 0.0 }
 0x76b   : > { %3615 = vadd.xlane.f32.xlu1 %v3614_v63 }
 0x76c   : > { %v8239_v1 = vadd.f32 %v5754_v31, %v3571_v38 }
 0x76d   : > { %v3575_v0 = vpop.f32.mrb[80].mxu1 }
 0x76e   : > { %v3576_v23 = vadd.f32 %v4502_v29, %v3575_v0  ;;  %v5179_v42 = vpop.f32.mrb[81].mxu1  ;;  %v3617_v46 = vsel %vm479_vm0, %v8239_v1, 0.0 }
 0x76f   : > { %3618 = vadd.xlane.f32.xlu0 %v3617_v46 }
 0x770   : > { %v8244_v32 = vadd.f32 %v5755_v47, %v3576_v23 }
 0x771   : > { %v3580_v48 = vpop.f32.mrb[82].mxu1 }
 0x772   : > { %v3581_v20 = vadd.f32 %v4502_v29, %v3580_v48  ;;  %v5182_v59 = vpop.f32.mrb[83].mxu1  ;;  %v3620_v3 = vsel %vm479_vm0, %v8244_v32, 0.0 }
 0x773   : > { %3621 = vadd.xlane.f32.xlu1 %v3620_v3 }
 0x774   : > { %v8249_v40 = vadd.f32 %v5756_v8, %v3581_v20 }
 0x775   : > { %v3585_v51 = vpop.f32.mrb[84].mxu1 }
 0x776   : > { %v3586_v27 = vadd.f32 %v4502_v29, %v3585_v51  ;;  %v5185_v19 = vpop.f32.mrb[85].mxu1  ;;  %v3623_v53 = vsel %vm479_vm0, %v8249_v40, 0.0 }
 0x777   : > { %3624 = vadd.xlane.f32.xlu0 %v3623_v53  ;;  %v3752_v19 = vld [vmem:[%s8695_s10] sm:$0xff]  ;;  %v3753_v53 = vld [vmem:[%s8695_s10 + $0x8] sm:$0xff] }
 0x778   : > { %v8254_v39 = vadd.f32 %v5757_v4, %v3586_v27 }
 0x779   : > { %v3590_v13 = vpop.f32.mrb[86].mxu1 }
 0x77a   : > { %v3591_v61 = vadd.f32 %v4502_v29, %v3590_v13  ;;  %v5188_v15 = vpop.f32.mrb[87].mxu1  ;;  %v3626_v33 = vsel %vm479_vm0, %v8254_v39, 0.0  ;;  %v5436_v13 = vpack.c.bf16 %v3753_v53, %v3752_v19 }
 0x77b   : > { %3627 = vadd.xlane.f32.xlu1 %v3626_v33  ;;  %v3755_v15 = vld [vmem:[%s8695_s10 + $0x18] sm:$0xff] }
 0x77c   : > { %v8259_v49 = vadd.f32 %v5758_v56, %v3591_v61  ;;  %5437 = vmatpush3.bf16.msra.mxu0 %v5436_v13  ;;  %v3754_v61 = vld [vmem:[%s8695_s10 + $0x10] sm:$0xff] }
 0x77d   : > { %5438 = vmatprep.subr.bf16.mxu0 %v8881_v54  ;;  %v5439_v33 = vpack.c.bf16 %v3755_v15, %v3754_v61 }
 0x77e   : > { %v3629_v41 = vsel %vm504_vm1, %v8259_v49, 0.0 }
 0x77f   : > { %3630 = vadd.xlane.f32.xlu0 %v3629_v41 }
 0x780   : > { %5440 = vmatpush3.bf16.msra.mxu0 %v5439_v33 }
 0x7ec   : > { %v3607_v17 = vpop.xlane.xlu0 %3606 }
 0x7ed   : > { %v3632_v6 = vmul.f32 0.03125, %v3607_v17 }
 0x7ef   : > { %v8264_v35 = vsub.f32 %v8219_v34, %v3632_v6 }
 0x7f0   : > { %v3610_v7 = vpop.xlane.xlu1 %3609 }
 0x7f1   : > { %v3633_v45 = vmul.f32 0.03125, %v3610_v7  ;;  %v3650_v44 = vmul.f32 %v8264_v35, %v8264_v35 }
 0x7f3   : > { %v8269_v57 = vsub.f32 %v8224_v11, %v3633_v45  ;;  %v3659_v29 = vsel %vm479_vm0, %v3650_v44, 0.0 }
 0x7f4   : > { %v3613_v21 = vpop.xlane.xlu0 %3612  ;;  %3660 = vadd.xlane.f32.xlu1 %v3659_v29 }
 0x7f5   : > { %v3634_v58 = vmul.f32 0.03125, %v3613_v21  ;;  %v3651_v28 = vmul.f32 %v8269_v57, %v8269_v57 }
 0x7f7   : > { %v8275_v24 = vsub.f32 %v8229_v26, %v3634_v58  ;;  %v3662_v62 = vsel %vm479_vm0, %v3651_v28, 0.0 }
 0x7f8   : > { %v3616_v10 = vpop.xlane.xlu1 %3615  ;;  %3663 = vadd.xlane.f32.xlu0 %v3662_v62 }
 0x7f9   : > { %v3635_v9 = vmul.f32 0.03125, %v3616_v10  ;;  %v3652_v52 = vmul.f32 %v8275_v24, %v8275_v24 }
 0x7fb   : > { %v8281_v14 = vsub.f32 %v8234_v30, %v3635_v9  ;;  %v3665_v12 = vsel %vm479_vm0, %v3652_v52, 0.0  ;;  %v8333_v9 = vld [vmem:[%s8693_s8] ss:$0 sm:$0xff] }
 0x7fc   : > { %v3619_v55 = vpop.xlane.xlu0 %3618  ;;  %3666 = vadd.xlane.f32.xlu1 %v3665_v12 }
 0x7fd   : > { %v3636_v50 = vmul.f32 0.03125, %v3619_v55  ;;  %v3653_v16 = vmul.f32 %v8281_v14, %v8281_v14 }
 0x7ff   : > { %v8287_v5 = vsub.f32 %v8239_v1, %v3636_v50  ;;  %v3668_v43 = vsel %vm479_vm0, %v3653_v16, 0.0  ;;  %v8339_v50 = vld [vmem:[%s8694_s9] ss:$0 sm:$0xff] }
 0x800   : > { %v3622_v25 = vpop.xlane.xlu1 %3621  ;;  %3669 = vadd.xlane.f32.xlu0 %v3668_v43 }
 0x801   : > { %v3637_v2 = vmul.f32 0.03125, %v3622_v25  ;;  %v3654_v36 = vmul.f32 %v8287_v5, %v8287_v5 }
 0x803   : > { %v8293_v37 = vsub.f32 %v8244_v32, %v3637_v2  ;;  %v3671_v60 = vsel %vm479_vm0, %v3654_v36, 0.0 }
 0x804   : > { %v3625_v38 = vpop.xlane.xlu0 %3624  ;;  %3672 = vadd.xlane.f32.xlu1 %v3671_v60 }
 0x805   : > { %v3638_v18 = vmul.f32 0.03125, %v3625_v38  ;;  %v3655_v63 = vmul.f32 %v8293_v37, %v8293_v37 }
 0x807   : > { %v8299_v31 = vsub.f32 %v8249_v40, %v3638_v18  ;;  %v3674_v0 = vsel %vm479_vm0, %v3655_v63, 0.0 }
 0x808   : > { %v3628_v23 = vpop.xlane.xlu1 %3627  ;;  %3675 = vadd.xlane.f32.xlu0 %v3674_v0 }
 0x809   : > { %v3639_v42 = vmul.f32 0.03125, %v3628_v23  ;;  %v3656_v46 = vmul.f32 %v8299_v31, %v8299_v31 }
 0x80b   : > { %v8305_v47 = vsub.f32 %v8254_v39, %v3639_v42  ;;  %v3677_v48 = vsel %vm479_vm0, %v3656_v46, 0.0 }
 0x80c   : > { %3678 = vadd.xlane.f32.xlu1 %v3677_v48  ;;  %v3631_v20 = vpop.xlane.xlu0 %3630 }
 0x80d   : > { %v3640_v59 = vmul.f32 0.03125, %v3631_v20  ;;  %v3657_v3 = vmul.f32 %v8305_v47, %v8305_v47 }
 0x80f   : > { %v8311_v8 = vsub.f32 %v8259_v49, %v3640_v59  ;;  %v3680_v51 = vsel %vm479_vm0, %v3657_v3, 0.0 }
 0x810   : > { %3681 = vadd.xlane.f32.xlu0 %v3680_v51 }
 0x811   : > { %v3658_v27 = vmul.f32 %v8311_v8, %v8311_v8 }
 0x813   : > { %v3683_v4 = vsel %vm504_vm1, %v3658_v27, 0.0 }
 0x814   : > { %3684 = vadd.xlane.f32.xlu1 %v3683_v4 }
 0x881   : > { %v3661_v56 = vpop.xlane.xlu1 %3660 }
 0x882   : > { %v3686_v41 = vmul.f32 0.03125, %v3661_v56 }
 0x884   : > { %v3695_v17 = vadd.f32 1e-05, %v3686_v41 }
 0x885   : > { %v3664_v6 = vpop.xlane.xlu0 %3663 }
 0x886   : > { %5687 = vrsqrt.f32 %v3695_v17  ;;  %v3687_v7 = vmul.f32 0.03125, %v3664_v6 }
 0x888   : > { %v3696_v45 = vadd.f32 1e-05, %v3687_v7 }
 0x889   : > { %v3667_v44 = vpop.xlane.xlu1 %3666 }
 0x88a   : > { %5689 = vrsqrt.f32 %v3696_v45  ;;  %v3688_v29 = vmul.f32 0.03125, %v3667_v44 }
 0x88c   : > { %v3697_v21 = vadd.f32 1e-05, %v3688_v29 }
 0x88d   : > { %v3670_v58 = vpop.xlane.xlu0 %3669 }
 0x88e   : > { %5691 = vrsqrt.f32 %v3697_v21  ;;  %v3689_v28 = vmul.f32 0.03125, %v3670_v58 }
 0x890   : > { %v5688_v62 = vpop.eup %5687  ;;  %v3698_v10 = vadd.f32 1e-05, %v3689_v28 }
 0x891   : > { %v3713_v52 = vmul.f32 %v5688_v62, %v8264_v35  ;;  %v3673_v12 = vpop.xlane.xlu1 %3672 }
 0x892   : > { %5693 = vrsqrt.f32 %v3698_v10  ;;  %v3690_v55 = vmul.f32 0.03125, %v3673_v12  ;;  %v4135_v12 = vld [vmem:[%s8697_s12 + $0x8] sm:$0xff] }
 0x893   : > { %v3728_v16 = vmul.f32 %v8333_v9, %v3713_v52  ;;  %v4134_v52 = vld [vmem:[%s8697_s12] sm:$0xff] }
 0x894   : > { %v5690_v43 = vpop.eup %5689  ;;  %v3699_v25 = vadd.f32 1e-05, %v3690_v55  ;;  %v4137_v55 = vld [vmem:[%s8697_s12 + $0x18] sm:$0xff] }
 0x895   : > { %v3676_v2 = vpop.xlane.xlu0 %3675  ;;  %v3743_v36 = vadd.f32 %v8339_v50, %v3728_v16  ;;  %v3714_v60 = vmul.f32 %v5690_v43, %v8269_v57  ;;  %v4138_v16 = vld [vmem:[%s8697_s12 + $0x20] sm:$0xff]  ;;  %v4139_v43 = vld [vmem:[%s8697_s12 + $0x28] sm:$0xff] }
 0x896   : > { %5695 = vrsqrt.f32 %v3699_v25  ;;  %v3691_v38 = vmul.f32 0.03125, %v3676_v2  ;;  %v5448_v25 = vpack.c.bf16 %v4139_v43, %v4138_v16  ;;  %v4140_v2 = vld [vmem:[%s8697_s12 + $0x30] sm:$0xff] }
 0x897   : > { %5198 = vmatmul.mubr.msk.f32.vlgmr.msra.gmra.mrb[92].mxu0 %vm479_vm0, %v3743_v36  ;;  %v3729_v35 = vmul.f32 %v8333_v9, %v3714_v60  ;;  %v4141_v36 = vld [vmem:[%s8697_s12 + $0x38] sm:$0xff] }
 0x898   : > { %v5692_v18 = vpop.eup %5691  ;;  %v3700_v63 = vadd.f32 1e-05, %v3691_v38  ;;  %5200 = vmatprep.mubr.msk.f32.mxu0 %vm5771_vm4, %v8885_v22  ;;  %v5451_v60 = vpack.c.bf16 %v4141_v36, %v4140_v2  ;;  %v4142_v38 = vld [vmem:[%s8697_s12 + $0x40] sm:$0xff] }
 0x899   : > { %v3679_v0 = vpop.xlane.xlu1 %3678  ;;  %v3744_v23 = vadd.f32 %v8339_v50, %v3729_v35  ;;  %v3715_v42 = vmul.f32 %v5692_v18, %v8275_v24  ;;  %v4143_v35 = vld [vmem:[%s8697_s12 + $0x48] sm:$0xff] }
 0x89a   : > { %5697 = vrsqrt.f32 %v3700_v63  ;;  %v3692_v46 = vmul.f32 0.03125, %v3679_v0  ;;  %v5454_v18 = vpack.c.bf16 %v4143_v35, %v4142_v38  ;;  %v4144_v63 = vld [vmem:[%s8697_s12 + $0x50] sm:$0xff]  ;;  %v4145_v0 = vld [vmem:[%s8697_s12 + $0x58] sm:$0xff] }
 0x89b   : > { %5201 = vmatmul.mubr.msk.f32.gmra.mrb[94].mxu0 %vm479_vm0, %v3744_v23  ;;  %v3730_v57 = vmul.f32 %v8333_v9, %v3715_v42  ;;  %v5457_v23 = vpack.c.bf16 %v4145_v0, %v4144_v63  ;;  %v4146_v42 = vld [vmem:[%s8697_s12 + $0x60] sm:$0xff] }
 0x89c   : > { %v5694_v48 = vpop.eup %5693  ;;  %v3701_v20 = vadd.f32 1e-05, %v3692_v46  ;;  %5203 = vmatprep.mubr.msk.f32.mxu0 %vm5771_vm4, %v8885_v22  ;;  %v4147_v46 = vld [vmem:[%s8697_s12 + $0x68] sm:$0xff] }
 0x89d   : > { %v3682_v59 = vpop.xlane.xlu0 %3681  ;;  %v3745_v3 = vadd.f32 %v8339_v50, %v3730_v57  ;;  %v3716_v51 = vmul.f32 %v5694_v48, %v8281_v14  ;;  %v5460_v57 = vpack.c.bf16 %v4147_v46, %v4146_v42  ;;  %v4148_v48 = vld [vmem:[%s8697_s12 + $0x70] sm:$0xff]  ;;  %v5773_v46 = vmov -1.0  }
 0x89e   : > { %5699 = vrsqrt.f32 %v3701_v20  ;;  %v3693_v27 = vmul.f32 0.03125, %v3682_v59  ;;  %v4149_v20 = vld [vmem:[%s8697_s12 + $0x78] sm:$0xff] }
 0x89f   : > { %5204 = vmatmul.mubr.msk.f32.gmra.mrb[96].mxu0 %vm479_vm0, %v3745_v3  ;;  %v3731_v24 = vmul.f32 %v8333_v9, %v3716_v51  ;;  %v5463_v59 = vpack.c.bf16 %v4149_v20, %v4148_v48  ;;  %v8450_v3 = vld [vmem:[%s8696_s11] ss:$0 sm:$0xff] }
 0x8a0   : > { %v5696_v19 = vpop.eup %5695  ;;  %v3702_v53 = vadd.f32 1e-05, %v3693_v27  ;;  %5206 = vmatprep.mubr.msk.f32.mxu0 %vm5771_vm4, %v8885_v22 }
 0x8a1   : > { %v3685_v4 = vpop.xlane.xlu1 %3684  ;;  %v3746_v13 = vadd.f32 %v8339_v50, %v3731_v24  ;;  %v3717_v61 = vmul.f32 %v5696_v19, %v8287_v5 }
 0x8a2   : > { %5701 = vrsqrt.f32 %v3702_v53  ;;  %v3694_v15 = vmul.f32 0.03125, %v3685_v4 }
 0x8a3   : > { %5207 = vmatmul.mubr.msk.f32.gmra.mrb[98].mxu0 %vm479_vm0, %v3746_v13  ;;  %v3732_v14 = vmul.f32 %v8333_v9, %v3717_v61 }
 0x8a4   : > { %v5698_v33 = vpop.eup %5697  ;;  %v3703_v56 = vadd.f32 1e-05, %v3694_v15  ;;  %5209 = vmatprep.mubr.msk.f32.mxu0 %vm5771_vm4, %v8885_v22 }
 0x8a5   : > { %v3747_v41 = vadd.f32 %v8339_v50, %v3732_v14  ;;  %v3718_v17 = vmul.f32 %v5698_v33, %v8293_v37 }
 0x8a6   : > { %5703 = vrsqrt.f32 %v3703_v56 }
 0x8a7   : > { %5210 = vmatmul.mubr.msk.f32.gmra.mrb[100].mxu0 %vm479_vm0, %v3747_v41  ;;  %v3733_v5 = vmul.f32 %v8333_v9, %v3718_v17 }
 0x8a8   : > { %v5700_v6 = vpop.eup %5699  ;;  %5212 = vmatprep.mubr.msk.f32.mxu0 %vm5771_vm4, %v8885_v22 }
 0x8a9   : > { %v3748_v7 = vadd.f32 %v8339_v50, %v3733_v5  ;;  %v3719_v45 = vmul.f32 %v5700_v6, %v8299_v31 }
 0x8ab   : > { %5213 = vmatmul.mubr.msk.f32.gmra.mrb[102].mxu0 %vm479_vm0, %v3748_v7  ;;  %v3734_v44 = vmul.f32 %v8333_v9, %v3719_v45 }
 0x8ac   : > { %v5702_v29 = vpop.eup %5701  ;;  %5215 = vmatprep.mubr.msk.f32.mxu0 %vm5771_vm4, %v8885_v22 }
 0x8ad   : > { %v3749_v37 = vadd.f32 %v8339_v50, %v3734_v44  ;;  %v3720_v21 = vmul.f32 %v5702_v29, %v8305_v47 }
 0x8af   : > { %5216 = vmatmul.mubr.msk.f32.gmra.mrb[104].mxu0 %vm479_vm0, %v3749_v37  ;;  %v3735_v58 = vmul.f32 %v8333_v9, %v3720_v21 }
 0x8b0   : > { %v5704_v28 = vpop.eup %5703  ;;  %5218 = vmatprep.mubr.msk.f32.mxu0 %vm5771_vm4, %v8885_v22 }
 0x8b1   : > { %v3750_v31 = vadd.f32 %v8339_v50, %v3735_v58  ;;  %v3721_v62 = vmul.f32 %v5704_v28, %v8311_v8  ;;  %v4136_v8 = vld [vmem:[%s8697_s12 + $0x10] sm:$0xff] }
 0x8b3   : > { %5219 = vmatmul.mubr.msk.f32.gmra.mrb[106].mxu0 %vm479_vm0, %v3750_v31  ;;  %v3736_v10 = vmul.f32 %v8333_v9, %v3721_v62  ;;  %v5442_v9 = vpack.c.bf16 %v4135_v12, %v4134_v52 }
 0x8b4   : > { %5221 = vmatprep.mubr.msk.f32.mxu0 %vm5771_vm4, %v8885_v22 }
 0x8b5   : > { %v3751_v47 = vadd.f32 %v8339_v50, %v3736_v10  ;;  %5443 = vmatpush3.bf16.msra.mxu1 %v5442_v9  ;;  %v5445_v50 = vpack.c.bf16 %v4137_v55, %v4136_v8 }
 0x8b6   : > { %5444 = vmatprep.subr.bf16.mxu1 %v8881_v54 }
 0x8b7   : > { %5222 = vmatmul.mubr.msk.f32.gmra.mrb[108].mxu0 %vm479_vm0, %v3751_v47 }
 0x8b9   : > { %5446 = vmatpush3.bf16.msra.mxu1 %v5445_v50 }
 0x8ba   : > { %5447 = vmatprep.subr.bf16.mxu1 %v8881_v54 }
 0x8bd   : > { %5449 = vmatpush3.bf16.msra.mxu1 %v5448_v25 }
 0x8be   : > { %5450 = vmatprep.subr.bf16.mxu1 %v8881_v54 }
 0x8c1   : > { %5452 = vmatpush3.bf16.msra.mxu1 %v5451_v60 }
 0x8c2   : > { %5453 = vmatprep.subr.bf16.mxu1 %v8881_v54 }
 0x8c5   : > { %5455 = vmatpush3.bf16.msra.mxu1 %v5454_v18 }
 0x8c6   : > { %5456 = vmatprep.subr.bf16.mxu1 %v8881_v54 }
 0x8c9   : > { %5458 = vmatpush3.bf16.msra.mxu1 %v5457_v23 }
 0x8ca   : > { %5459 = vmatprep.subr.bf16.mxu1 %v8881_v54 }
 0x8cd   : > { %5461 = vmatpush3.bf16.msra.mxu1 %v5460_v57 }
 0x8ce   : > { %5462 = vmatprep.subr.bf16.mxu1 %v8881_v54 }
 0x8d1   : > { %5464 = vmatpush3.bf16.msra.mxu1 %v5463_v59 }
 0x96a   : > { %v3856_v51 = vpop.f32.mrb[92].mxu0 }
 0x96b   : > { %v3857_v27 = vadd.f32 %v8450_v3, %v3856_v51  ;;  %v5199_v24 = vpop.f32.mrb[93].mxu0 }
 0x96d   : > { %v3909_v19 = vmul.f32 0.70710677, %v3857_v27  ;;  %v8490_v42 = vmul.f32 0.5, %v3857_v27 }
 0x96e   : > { %v3861_v53 = vpop.f32.mrb[94].mxu0 }
 0x96f   : > { %v3936_v4 = vand.u32 2147483647, %v3909_v19  ;;  %v8454_v13 = vadd.f32 %v8450_v3, %v3861_v53  ;;  %v5202_v61 = vpop.f32.mrb[95].mxu0  ;;  %vm3918_vm2 = vcmp.ge.f32.partialorder %v3909_v19, 0.0 }
 0x970   : > { %v8493_v57 = vsel %vm3918_vm2, 1.0, %v5773_v46 }
 0x971   : > { %v3945_v15 = vmul.f32 0.3275911, %v3936_v4  ;;  %v8457_v54 = vmul.f32 0.70710677, %v8454_v13  ;;  %v4053_v37 = vsub.f32 0.0, %v3936_v4 }
 0x972   : > { %v3866_v14 = vpop.f32.mrb[96].mxu0 }
 0x973   : > { %v3954_v33 = vadd.f32 1.0, %v3945_v15  ;;  %v3937_v56 = vand.u32 2147483647, %v8457_v54  ;;  %v5205_v41 = vpop.f32.mrb[97].mxu0  ;;  %v8461_v17 = vadd.f32 %v8450_v3, %v3866_v14  ;;  %v4062_v52 = vmul.f32 %v4053_v37, %v3936_v4 }
 0x974   : > { %vm3919_vm3 = vcmp.ge.f32.partialorder %v8457_v54, 0.0 }
 0x975   : > { %5705 = vrcp.f32 %v3954_v33  ;;  %v8464_v5 = vmul.f32 0.70710677, %v8461_v17  ;;  %v3946_v7 = vmul.f32 0.3275911, %v3937_v56  ;;  %v4054_v2 = vsub.f32 0.0, %v3937_v56 }
 0x976   : > { %v3871_v6 = vpop.f32.mrb[98].mxu0  ;;  %v4071_v60 = vmul.f32 1.442695, %v4062_v52 }
 0x977   : > { %v8467_v45 = vadd.f32 %v8450_v3, %v3871_v6  ;;  %v5208_v44 = vpop.f32.mrb[99].mxu0  ;;  %v3938_v29 = vand.u32 2147483647, %v8464_v5  ;;  %v3955_v28 = vadd.f32 1.0, %v3946_v7  ;;  %v4063_v51 = vmul.f32 %v4054_v2, %v3937_v56 }
 0x978   : > { %vm3920_vm5 = vcmp.ge.f32.partialorder %v8464_v5, 0.0 }
 0x979   : > { %v8471_v21 = vmul.f32 0.70710677, %v8467_v45  ;;  %v3947_v10 = vmul.f32 0.3275911, %v3938_v29  ;;  %5707 = vrcp.f32 %v3955_v28  ;;  %v4055_v38 = vsub.f32 0.0, %v3938_v29 }
 0x97a   : > { %v3876_v58 = vpop.f32.mrb[100].mxu0  ;;  %v4073_v37 = vmul.f32 1.442695, %v4063_v51 }
 0x97b   : > { %v8474_v31 = vadd.f32 %v8450_v3, %v3876_v58  ;;  %v5211_v62 = vpop.f32.mrb[101].mxu0  ;;  %v3939_v47 = vand.u32 2147483647, %v8471_v21  ;;  %v3956_v36 = vadd.f32 1.0, %v3947_v10  ;;  %v4064_v53 = vmul.f32 %v4055_v38, %v3938_v29 }
 0x97c   : > { %v8509_v29 = vmul.f32 0.5, %v8454_v13  ;;  %vm3921_vm6 = vcmp.ge.f32.partialorder %v8471_v21, 0.0 }
 0x97d   : > { %v8478_v12 = vmul.f32 0.70710677, %v8474_v31  ;;  %v3948_v8 = vmul.f32 0.3275911, %v3939_v47  ;;  %v4056_v0 = vsub.f32 0.0, %v3939_v47  ;;  %5709 = vrcp.f32 %v3956_v36 }
 0x97e   : > { %v3881_v9 = vpop.f32.mrb[102].mxu0  ;;  %5711 = vpow2.f32 %v4071_v60  ;;  %v4075_v62 = vmul.f32 1.442695, %v4064_v53 }
 0x97f   : > { %v8480_v55 = vpop.eup %5705  ;;  %v3940_v50 = vand.u32 2147483647, %v8478_v12  ;;  %v8484_v16 = vadd.f32 %v8450_v3, %v3881_v9  ;;  %v5214_v43 = vpop.f32.mrb[103].mxu0  ;;  %v3957_v63 = vadd.f32 1.0, %v3948_v8  ;;  %v4065_v15 = vmul.f32 %v4056_v0, %v3939_v47 }
 0x980   : > { %v3972_v25 = vmul.f32 1.0614054, %v8480_v55  ;;  %v8520_v9 = vsel %vm3919_vm3, 1.0, %v5773_v46  ;;  %vm3922_vm7 = vcmp.ge.f32.partialorder %v8478_v12, 0.0 }
 0x981   : > { %v3949_v35 = vmul.f32 0.3275911, %v3940_v50  ;;  %v8488_v23 = vmul.f32 0.70710677, %v8484_v16  ;;  %v4057_v4 = vsub.f32 0.0, %v3940_v50  ;;  %5713 = vrcp.f32 %v3957_v63 }
 0x982   : > { %v3981_v18 = vadd.f32 -1.4531521, %v3972_v25  ;;  %v3886_v20 = vpop.f32.mrb[104].mxu0  ;;  %v4077_v43 = vmul.f32 1.442695, %v4065_v15 }
 0x983   : > { %v3958_v48 = vadd.f32 1.0, %v3949_v35  ;;  %v3941_v24 = vand.u32 2147483647, %v8488_v23  ;;  %v5217_v19 = vpop.f32.mrb[105].mxu0  ;;  %v8499_v27 = vadd.f32 %v8450_v3, %v3886_v20  ;;  %v8511_v28 = vpop.eup %5707  ;;  %v4066_v10 = vmul.f32 %v4057_v4, %v3940_v50 }
 0x984   : > { %v3990_v59 = vmul.f32 %v8480_v55, %v3981_v18  ;;  %v3973_v54 = vmul.f32 1.0614054, %v8511_v28  ;;  %vm3923_vm8 = vcmp.ge.f32.partialorder %v8488_v23, 0.0 }
 0x985   : > { %v3950_v14 = vmul.f32 0.3275911, %v3941_v24  ;;  %5715 = vrcp.f32 %v3958_v48  ;;  %v4058_v41 = vsub.f32 0.0, %v3941_v24  ;;  %v8502_v6 = vmul.f32 0.70710677, %v8499_v27 }
 0x986   : > { %v3999_v61 = vadd.f32 1.4214138, %v3990_v59  ;;  %v3891_v33 = vpop.f32.mrb[106].mxu0  ;;  %v4079_v35 = vmul.f32 1.442695, %v4066_v10 }
 0x987   : > { %v8505_v56 = vadd.f32 %v8450_v3, %v3891_v33  ;;  %v5220_v7 = vpop.f32.mrb[107].mxu0  ;;  %v3959_v58 = vadd.f32 1.0, %v3950_v14  ;;  %v3942_v47 = vand.u32 2147483647, %v8502_v6  ;;  %v4067_v25 = vmul.f32 %v4058_v41, %v3941_v24  ;;  %v8529_v0 = vpop.eup %5709 }
 0x988   : > { %v4008_v44 = vmul.f32 %v8480_v55, %v3999_v61  ;;  %v5712_v59 = vpop.eup %5711  ;;  %v3982_v15 = vadd.f32 -1.4531521, %v3973_v54  ;;  %v8547_v14 = vsel %vm3920_vm5, 1.0, %v5773_v46  ;;  %v3974_v33 = vmul.f32 1.0614054, %v8529_v0 }
 0x989   : > { %v8515_v52 = vmul.f32 0.70710677, %v8505_v56  ;;  %5717 = vrcp.f32 %v3959_v58  ;;  %v3951_v2 = vmul.f32 0.3275911, %v3942_v47  ;;  %v4081_v51 = vmul.f32 1.442695, %v4067_v25 }
 0x98a   : > { %v4017_v8 = vadd.f32 -0.28449672, %v4008_v44  ;;  %v3896_v13 = vpop.f32.mrb[108].mxu0  ;;  %5719 = vpow2.f32 %v4073_v37  ;;  %v4059_v4 = vsub.f32 0.0, %v3942_v47  ;;  %v3991_v44 = vmul.f32 %v8511_v28, %v3982_v15 }
 0x98b   : > { %v3943_v50 = vand.u32 2147483647, %v8515_v52  ;;  %v8526_v60 = vadd.f32 %v8450_v3, %v3896_v13  ;;  %v5223_v38 = vpop.f32.mrb[109].mxu0  ;;  %5721 = vpow2.f32 %v4075_v62  ;;  %v3960_v18 = vadd.f32 1.0, %v3951_v2  ;;  %v8538_v19 = vpop.eup %5713 }
 0x98c   : > { %v4026_v36 = vmul.f32 %v8480_v55, %v4017_v8  ;;  %5723 = vpow2.f32 %v4077_v43  ;;  %v8536_v3 = vmul.f32 0.5, %v8461_v17  ;;  %v8550_v17 = vsel %vm3921_vm6, 1.0, %v5773_v46 }
 0x98d   : > { %v3952_v63 = vmul.f32 0.3275911, %v3943_v50  ;;  %v8533_v20 = vmul.f32 0.70710677, %v8526_v60  ;;  %5725 = vrcp.f32 %v3960_v18  ;;  %v3983_v37 = vadd.f32 -1.4531521, %v3974_v33 }
 0x98e   : > { %v4035_v48 = vadd.f32 0.2548296, %v4026_v36  ;;  %5727 = vpow2.f32 %v4079_v35  ;;  %v3975_v58 = vmul.f32 1.0614054, %v8538_v19  ;;  %v4068_v10 = vmul.f32 %v4059_v4, %v3942_v47 }
 0x98f   : > { %v3961_v24 = vadd.f32 1.0, %v3952_v63  ;;  %v3944_v61 = vand.u32 2147483647, %v8533_v20  ;;  %v8542_v21 = vpop.eup %5715  ;;  %v4000_v13 = vadd.f32 1.4214138, %v3991_v44  ;;  %v3992_v25 = vmul.f32 %v8529_v0, %v3983_v37 }
 0x990   : > { %v4044_v53 = vmul.f32 %v8480_v55, %v4035_v48  ;;  %v4060_v55 = vsub.f32 0.0, %v3943_v50  ;;  %v3976_v43 = vmul.f32 1.0614054, %v8542_v21  ;;  %v3984_v2 = vadd.f32 -1.4531521, %v3975_v58 }
 0x991   : > { %5729 = vrcp.f32 %v3961_v24  ;;  %v3953_v7 = vmul.f32 0.3275911, %v3944_v61  ;;  %v4009_v48 = vmul.f32 %v8511_v28, %v4000_v13  ;;  %v4083_v4 = vmul.f32 1.442695, %v4068_v10 }
 0x992   : > { %v4089_v41 = vmul.f32 %v5712_v59, %v4044_v53  ;;  %5731 = vpow2.f32 %v4081_v51  ;;  %v4069_v35 = vmul.f32 %v4060_v55, %v3943_v50  ;;  %v3985_v18 = vadd.f32 -1.4531521, %v3976_v43 }
 0x993   : > { %v8555_v62 = vpop.eup %5717  ;;  %v3962_v8 = vadd.f32 1.0, %v3953_v7  ;;  %v4001_v59 = vadd.f32 1.4214138, %v3992_v25  ;;  %v3993_v47 = vmul.f32 %v8538_v19, %v3984_v2  ;;  %v4061_v15 = vsub.f32 0.0, %v3944_v61 }
 0x994   : > { %v4098_v5 = vsub.f32 1.0, %v4089_v41  ;;  %v3977_v36 = vmul.f32 1.0614054, %v8555_v62  ;;  %v5720_v38 = vpop.eup %5719  ;;  %v3994_v33 = vmul.f32 %v8542_v21, %v3985_v18  ;;  %v4085_v37 = vmul.f32 1.442695, %v4069_v35 }
 0x995   : > { %5733 = vrcp.f32 %v3962_v8  ;;  %v5722_v63 = vpop.eup %5721  ;;  %v4010_v50 = vmul.f32 %v8529_v0, %v4001_v59  ;;  %v4002_v55 = vadd.f32 1.4214138, %v3993_v47  ;;  %vm3924_vm9 = vcmp.ge.f32.partialorder %v8502_v6, 0.0 }
 0x996   : > { %v4107_v54 = vmul.f32 %v4098_v5, %v8493_v57  ;;  %v3986_v51 = vadd.f32 -1.4531521, %v3977_v36  ;;  %v8563_v24 = vpop.eup %5723  ;;  %v4018_v57 = vadd.f32 -0.28449672, %v4009_v48  ;;  %v4003_v58 = vadd.f32 1.4214138, %v3994_v33 }
 0x997   : > { %v8566_v41 = vpop.eup %5725  ;;  %v4019_v43 = vadd.f32 -0.28449672, %v4010_v50  ;;  %v4011_v13 = vmul.f32 %v8538_v19, %v4002_v55  ;;  %5735 = vpow2.f32 %v4083_v4  ;;  %v4070_v36 = vmul.f32 %v4061_v15, %v3944_v61 }
 0x998   : > { %v4116_v53 = vadd.f32 1.0, %v4107_v54  ;;  %v3995_v7 = vmul.f32 %v8555_v62, %v3986_v51  ;;  %v3978_v5 = vmul.f32 1.0614054, %v8566_v41  ;;  %v5728_v8 = vpop.eup %5727  ;;  %v4027_v10 = vmul.f32 %v8511_v28, %v4018_v57 }
 0x999   : > { %v4012_v54 = vmul.f32 %v8542_v21, %v4003_v58  ;;  %v4028_v48 = vmul.f32 %v8529_v0, %v4019_v43  ;;  %v4020_v59 = vadd.f32 -0.28449672, %v4011_v13  ;;  %5737 = vpow2.f32 %v4085_v37 }
 0x99a   : > { %v4125_v44 = vmul.f32 %v4116_v53, %v8490_v42  ;;  %v4004_v25 = vadd.f32 1.4214138, %v3995_v7  ;;  %v3987_v18 = vadd.f32 -1.4531521, %v3978_v5  ;;  %v4036_v35 = vadd.f32 0.2548296, %v4027_v10 }
 0x99b   : > { %v8574_v2 = vpop.eup %5729  ;;  %v4021_v51 = vadd.f32 -0.28449672, %v4012_v54  ;;  %v4037_v15 = vadd.f32 0.2548296, %v4028_v48  ;;  %v4029_v33 = vmul.f32 %v8538_v19, %v4020_v59  ;;  %v4087_v55 = vmul.f32 1.442695, %v4070_v36 }
 0x99c   : > { %5257 = vmatmul.mubr.f32.vlgmr.msra.gmra.mrb[88].mxu1 %v4125_v44  ;;  %v5732_v42 = vpop.eup %5731  ;;  %v4013_v47 = vmul.f32 %v8555_v62, %v4004_v25  ;;  %v3996_v61 = vmul.f32 %v8566_v41, %v3987_v18  ;;  %v3979_v53 = vmul.f32 1.0614054, %v8574_v2  ;;  %v4045_v4 = vmul.f32 %v8511_v28, %v4036_v35 }
 0x99d   : > { %5259 = vmatprep.mubr.msk.f32.mxu1 %vm5771_vm4, %v8885_v22  ;;  %v4030_v7 = vmul.f32 %v8542_v21, %v4021_v51  ;;  %v4046_v37 = vmul.f32 %v8529_v0, %v4037_v15  ;;  %v4038_v10 = vadd.f32 0.2548296, %v4029_v33  ;;  %5739 = vpow2.f32 %v4087_v55 }
 0x99e   : > { %v4022_v57 = vadd.f32 -0.28449672, %v4013_v47  ;;  %v4005_v44 = vadd.f32 1.4214138, %v3996_v61  ;;  %v3988_v58 = vadd.f32 -1.4531521, %v3979_v53  ;;  %v4090_v5 = vmul.f32 %v5720_v38, %v4045_v4 }
 0x99f   : > { %v8586_v50 = vpop.eup %5733  ;;  %v4039_v13 = vadd.f32 0.2548296, %v4030_v7  ;;  %v4091_v35 = vmul.f32 %v5722_v63, %v4046_v37  ;;  %v4047_v36 = vmul.f32 %v8538_v19, %v4038_v10  ;;  %v3933_v23 = vsel %vm3924_vm9, 1.0, %v5773_v46 }
 0x9a0   : > { %v4031_v43 = vmul.f32 %v8555_v62, %v4022_v57  ;;  %v4014_v28 = vmul.f32 %v8566_v41, %v4005_v44  ;;  %v3997_v25 = vmul.f32 %v8574_v2, %v3988_v58  ;;  %v3980_v54 = vmul.f32 1.0614054, %v8586_v50 }
 0x9a1   : > { %v4099_v18 = vsub.f32 1.0, %v4090_v5  ;;  %v4048_v59 = vmul.f32 %v8542_v21, %v4039_v13  ;;  %v4100_v61 = vsub.f32 1.0, %v4091_v35  ;;  %v4092_v53 = vmul.f32 %v8563_v24, %v4047_v36  ;;  %v5736_v15 = vpop.eup %5735 }
 0x9a2   : > { %v4040_v48 = vadd.f32 0.2548296, %v4031_v43  ;;  %v4023_v38 = vadd.f32 -0.28449672, %v4014_v28  ;;  %v4006_v47 = vadd.f32 1.4214138, %v3997_v25 }
 0x9a3   : > { %v3989_v0 = vadd.f32 -1.4531521, %v3980_v54  ;;  %v4108_v51 = vmul.f32 %v4099_v18, %v8520_v9  ;;  %v4093_v33 = vmul.f32 %v5728_v8, %v4048_v59  ;;  %v4109_v21 = vmul.f32 %v4100_v61, %v8547_v14  ;;  %v5738_v5 = vpop.eup %5737 }
 0x9a4   : > { %v4049_v4 = vmul.f32 %v8555_v62, %v4040_v48  ;;  %v4032_v57 = vmul.f32 %v8566_v41, %v4023_v38  ;;  %v4015_v63 = vmul.f32 %v8574_v2, %v4006_v47  ;;  %v4101_v44 = vsub.f32 1.0, %v4092_v53 }
 0x9a5   : > { %v3998_v19 = vmul.f32 %v8586_v50, %v3989_v0  ;;  %v4117_v7 = vadd.f32 1.0, %v4108_v51  ;;  %v3931_v9 = vsel %vm3922_vm7, 1.0, %v5773_v46  ;;  %v4102_v24 = vsub.f32 1.0, %v4093_v33 }
 0x9a6   : > { %v4094_v58 = vmul.f32 %v5732_v42, %v4049_v4  ;;  %v4041_v62 = vadd.f32 0.2548296, %v4032_v57  ;;  %v4024_v37 = vadd.f32 -0.28449672, %v4015_v63  ;;  %v4118_v10 = vadd.f32 1.0, %v4109_v21 }
 0x9a7   : > { %v4126_v8 = vmul.f32 %v4117_v7, %v8509_v29  ;;  %v4110_v43 = vmul.f32 %v4101_v44, %v8550_v17  ;;  %v4007_v13 = vadd.f32 1.4214138, %v3998_v19  ;;  %v4111_v25 = vmul.f32 %v4102_v24, %v3931_v9  ;;  %v5740_v4 = vpop.eup %5739  ;;  %v4524_v24 = vld [vmem:[%s8698_s13] ss:$0 sm:$0xff] }
 0x9a8   : > { %v4050_v14 = vmul.f32 %v8566_v41, %v4041_v62  ;;  %v4033_v42 = vmul.f32 %v8574_v2, %v4024_v37  ;;  %v4127_v12 = vmul.f32 %v4118_v10, %v8536_v3  ;;  %v4103_v54 = vsub.f32 1.0, %v4094_v58 }
 0x9a9   : > { %5260 = vmatmul.mubr.f32.gmra.mrb[90].mxu1 %v4126_v8  ;;  %v4119_v28 = vadd.f32 1.0, %v4110_v43  ;;  %v4016_v35 = vmul.f32 %v8586_v50, %v4007_v13  ;;  %v3903_v17 = vmul.f32 0.5, %v8467_v45  ;;  %v3932_v41 = vsel %vm3923_vm8, 1.0, %v5773_v46 }
 0x9aa   : > { %5262 = vmatprep.mubr.msk.f32.mxu1 %vm5771_vm4, %v8885_v22  ;;  %v4095_v18 = vmul.f32 %v5736_v15, %v4050_v14  ;;  %v4042_v29 = vadd.f32 0.2548296, %v4033_v42  ;;  %v4120_v48 = vadd.f32 1.0, %v4111_v25  ;;  %v4112_v59 = vmul.f32 %v4103_v54, %v3932_v41 }
 0x9ab   : > { %v4025_v55 = vadd.f32 -0.28449672, %v4016_v35  ;;  %v4128_v36 = vmul.f32 %v4119_v28, %v3903_v17  ;;  %v3904_v0 = vmul.f32 0.5, %v8474_v31  ;;  %vm3925_vm10 = vcmp.ge.f32.partialorder %v8515_v52, 0.0 }
 0x9ac   : > { %v4051_v3 = vmul.f32 %v8574_v2, %v4042_v29  ;;  %v4104_v38 = vsub.f32 1.0, %v4095_v18  ;;  %v4121_v51 = vadd.f32 1.0, %v4112_v59  ;;  %v3905_v33 = vmul.f32 0.5, %v8484_v16 }
 0x9ad   : > { %5263 = vmatmul.mubr.f32.gmra.mrb[92].mxu1 %v4127_v12  ;;  %v4034_v45 = vmul.f32 %v8586_v50, %v4025_v55  ;;  %v4129_v2 = vmul.f32 %v4120_v48, %v3904_v0  ;;  %v3934_v31 = vsel %vm3925_vm10, 1.0, %v5773_v46  ;;  %vm3926_vm11 = vcmp.ge.f32.partialorder %v8533_v20, 0.0 }
 0x9ae   : > { %5265 = vmatprep.mubr.msk.f32.mxu1 %vm5771_vm4, %v8885_v22  ;;  %v4096_v47 = vmul.f32 %v5738_v5, %v4051_v3  ;;  %v4113_v61 = vmul.f32 %v4104_v38, %v3933_v23  ;;  %v4130_v52 = vmul.f32 %v4121_v51, %v3905_v33  ;;  %v3906_v21 = vmul.f32 0.5, %v8499_v27 }
 0x9af   : > { %v4043_v6 = vadd.f32 0.2548296, %v4034_v45  ;;  %v3935_v44 = vsel %vm3926_vm11, 1.0, %v5773_v46  ;;  %v3907_v20 = vmul.f32 0.5, %v8505_v56  ;;  %v3908_v27 = vmul.f32 0.5, %v8526_v60 }
 0x9b0   : > { %v4105_v53 = vsub.f32 1.0, %v4096_v47  ;;  %v4122_v63 = vadd.f32 1.0, %v4113_v61 }
 0x9b1   : > { %5266 = vmatmul.mubr.f32.gmra.mrb[94].mxu1 %v4128_v36  ;;  %v4052_v15 = vmul.f32 %v8586_v50, %v4043_v6 }
 0x9b2   : > { %5268 = vmatprep.mubr.msk.f32.mxu1 %vm5771_vm4, %v8885_v22  ;;  %v4114_v19 = vmul.f32 %v4105_v53, %v3934_v31  ;;  %v4131_v50 = vmul.f32 %v4122_v63, %v3906_v21 }
 0x9b3   : > { %v4097_v57 = vmul.f32 %v5740_v4, %v4052_v15 }
 0x9b4   : > { %v4123_v16 = vadd.f32 1.0, %v4114_v19 }
 0x9b5   : > { %5269 = vmatmul.mubr.f32.gmra.mrb[96].mxu1 %v4129_v2  ;;  %v4106_v7 = vsub.f32 1.0, %v4097_v57 }
 0x9b6   : > { %5271 = vmatprep.mubr.msk.f32.mxu1 %vm5771_vm4, %v8885_v22  ;;  %v4132_v5 = vmul.f32 %v4123_v16, %v3907_v20 }
 0x9b7   : > { %v4115_v58 = vmul.f32 %v4106_v7, %v3935_v44 }
 0x9b9   : > { %5272 = vmatmul.mubr.f32.gmra.mrb[98].mxu1 %v4130_v52  ;;  %v4124_v9 = vadd.f32 1.0, %v4115_v58 }
 0x9ba   : > { %5274 = vmatprep.mubr.msk.f32.mxu1 %vm5771_vm4, %v8885_v22 }
 0x9bb   : > { %v4133_v46 = vmul.f32 %v4124_v9, %v3908_v27 }
 0x9bd   : > { %5275 = vmatmul.mubr.f32.gmra.mrb[100].mxu1 %v4131_v50 }
 0x9be   : > { %5277 = vmatprep.mubr.msk.f32.mxu1 %vm5771_vm4, %v8885_v22 }
 0x9c1   : > { %5278 = vmatmul.mubr.f32.gmra.mrb[102].mxu1 %v4132_v5 }
 0x9c2   : > { %5280 = vmatprep.mubr.msk.f32.mxu1 %vm5771_vm4, %v8885_v22 }
 0x9c5   : > { %5281 = vmatmul.mubr.f32.gmra.mrb[104].mxu1 %v4133_v46 }
 0xa6f   : > { %v4223_v62 = vpop.f32.mrb[88].mxu1 }
 0xa70   : > { %v4224_v56 = vadd.f32 %v4524_v24, %v4223_v62  ;;  %v5258_v37 = vpop.f32.mrb[89].mxu1 }
 0xa72   : > { %v4267_v60 = vadd.f32 %v4224_v56, %v8219_v34 }
 0xa74   : > { %4276 = vst.msk [vmem:[%s8653_s19] sm:$0xff] %vm479_vm0, %v4267_v60 }
 0xa7c   : > { %v4228_v22 = vpop.f32.mrb[90].mxu1 }
 0xa7d   : > { %v4229_v8 = vadd.f32 %v4524_v24, %v4228_v22  ;;  %v5261_v10 = vpop.f32.mrb[91].mxu1 }
 0xa7f   : > { %v4268_v43 = vadd.f32 %v4229_v8, %v8224_v11 }
 0xa80   : > { %v4233_v14 = vpop.f32.mrb[92].mxu1 }
 0xa81   : > { %4277 = vst.msk [vmem:[%s8653_s19 + $0x8] sm:$0xff] %vm479_vm0, %v4268_v43  ;;  %v4234_v42 = vadd.f32 %v4524_v24, %v4233_v14  ;;  %v5264_v13 = vpop.f32.mrb[93].mxu1 }
 0xa83   : > { %v4269_v12 = vadd.f32 %v4234_v42, %v8229_v26 }
 0xa84   : > { %v4238_v28 = vpop.f32.mrb[94].mxu1 }
 0xa85   : > { %4278 = vst.msk [vmem:[%s8653_s19 + $0x10] sm:$0xff] %vm479_vm0, %v4269_v12  ;;  %v4239_v34 = vadd.f32 %v4524_v24, %v4238_v28  ;;  %v5267_v25 = vpop.f32.mrb[95].mxu1 }
 0xa87   : > { %v4270_v54 = vadd.f32 %v4239_v34, %v8234_v30 }
 0xa88   : > { %v4243_v18 = vpop.f32.mrb[96].mxu1 }
 0xa89   : > { %4279 = vst.msk [vmem:[%s8653_s19 + $0x18] sm:$0xff] %vm479_vm0, %v4270_v54  ;;  %v4244_v11 = vadd.f32 %v4524_v24, %v4243_v18  ;;  %v5270_v29 = vpop.f32.mrb[97].mxu1 }
 0xa8b   : > { %v4271_v35 = vadd.f32 %v4244_v11, %v8239_v1 }
 0xa8c   : > { %v4248_v17 = vpop.f32.mrb[98].mxu1 }
 0xa8d   : > { %4280 = vst.msk [vmem:[%s8653_s19 + $0x20] sm:$0xff] %vm479_vm0, %v4271_v35  ;;  %v4249_v26 = vadd.f32 %v4524_v24, %v4248_v17  ;;  %v5273_v41 = vpop.f32.mrb[99].mxu1 }
 0xa8f   : > { %v4272_v3 = vadd.f32 %v4249_v26, %v8244_v32 }
 0xa90   : > { %v4253_v55 = vpop.f32.mrb[100].mxu1 }
 0xa91   : > { %4281 = vst.msk [vmem:[%s8653_s19 + $0x28] sm:$0xff] %vm479_vm0, %v4272_v3  ;;  %v4254_v30 = vadd.f32 %v4524_v24, %v4253_v55  ;;  %v5276_v36 = vpop.f32.mrb[101].mxu1 }
 0xa93   : > { %v4273_v48 = vadd.f32 %v4254_v30, %v8249_v40 }
 0xa94   : > { %v4258_v59 = vpop.f32.mrb[102].mxu1 }
 0xa95   : > { %4282 = vst.msk [vmem:[%s8653_s19 + $0x30] sm:$0xff] %vm479_vm0, %v4273_v48  ;;  %v4259_v1 = vadd.f32 %v4524_v24, %v4258_v59  ;;  %v5279_v38 = vpop.f32.mrb[103].mxu1 }
 0xa97   : > { %v4274_v47 = vadd.f32 %v4259_v1, %v8254_v39 }
 0xa98   : > { %v4263_v45 = vpop.f32.mrb[104].mxu1 }
 0xa99   : > { %4283 = vst.msk [vmem:[%s8653_s19 + $0x38] sm:$0xff] %vm479_vm0, %v4274_v47  ;;  %v4264_v0 = vadd.f32 %v4524_v24, %v4263_v45  ;;  %v5282_v32 = vpop.f32.mrb[105].mxu1 }
 0xa9b   : > { %v4275_v23 = vadd.f32 %v4264_v0, %v8259_v49 }
 0xa9d   : > { %4284 = vst.msk [vmem:[%s8653_s19 + $0x40] sm:$0x1] %vm504_vm1, %v4275_v23 }
 0xa9e PF: > { %s24_s29 = sadd.s32 1, %s5765_s29  }
 0xa9f   : > { %p21_p4 = scmp.ge.s32.totalorder %s24_s29, 4  }
 0xaa1   :  { %23 = sbr.rel (!%p21_p4) target bundleno = 1 (0x1), region = 106 }

</bundles_post_ra>
